<compile_context>
chip_gen: v7x
topology: tpu7x:2x2x1
jax: 0.10.0
libtpu: 0.0.40
codegen_flags: <defaults>
</compile_context>

<pallas_src>
import math

import jax
import jax.numpy as jnp
from jax.experimental import pallas as pl
from jax.experimental.pallas import tpu as pltpu

# ----------------------- synthetic ModelArguments ---------------------------
B = 2                 # batch size
S = 8                 # sequence length
H = 32                # bert_hidden_size  (args.bert_hidden_size branch)
NH = 4                # attention heads
HD = H // NH
FF = 4 * H            # BERT FFN intermediate size
N_LAYERS = 2
VOCAB = 64
HEAD_HIDDEN = 64      # args.head_hidden_size
NUM_OUTPUT = 3        # args.num_output
OUT_PAD = 128         # lane-dense padded logits width
LEAKY_SLOPE = 0.01    # nn.LeakyReLU default
BN_EPS = 1e-5
LN_EPS = 1e-12

_VMEM = pl.BlockSpec(memory_space=pltpu.MemorySpace.VMEM)
_SMEM = pl.BlockSpec(memory_space=pltpu.MemorySpace.SMEM)


# ------------------------------ helpers -------------------------------------
def _layernorm(x2, g, b):
    mu = jnp.mean(x2, axis=-1, keepdims=True)
    var = jnp.mean((x2 - mu) ** 2, axis=-1, keepdims=True)
    return (x2 - mu) * jax.lax.rsqrt(var + LN_EPS) * g + b


def _gelu(x):
    # TODO(synk): HF BertModel default is exact (erf) GELU; tanh approximation is
    #             kept for robust Mosaic lowering (tiny numeric drift vs torch).
    c = math.sqrt(2.0 / math.pi)
    return 0.5 * x * (1.0 + jnp.tanh(c * (x + 0.044715 * x * x * x)))


# ------------------- single fused forward-pass kernel -----------------------
def _fused_forward_kernel(
        ids_ref, maskadd_ref, off_ref,
        tok_emb, pos_emb, type0, eln_g, eln_b,
        wqkv, bqkv, wo, bo, ln1g, ln1b, wf1, bf1, wf2, bf2, ln2g, ln2b,
        w1, b1, bn_g, bn_b, bn_m, bn_v, w2p, b2p,
        o_ref):
    f32 = jnp.float32

    # ---- BERT embeddings: token gather via one-hot MXU matmul, + pos + type, LN ----
    ids = ids_ref[...]                                            # [B*S, 1] int32
    vocab_iota = jax.lax.broadcasted_iota(jnp.int32, (B * S, VOCAB), 1)
    onehot = (vocab_iota == ids).astype(f32)                      # [B*S, VOCAB]
    tok = jnp.dot(onehot, tok_emb[...], preferred_element_type=f32)   # [B*S, H]
    pos = jnp.concatenate([pos_emb[...]] * B, axis=0)             # [B*S, H]
    x = _layernorm(tok + pos + type0[...], eln_g[...], eln_b[...])    # [B*S, H]

    mask_add = maskadd_ref[...]                                   # [B, S] (0 / -1e9)
    inv_sqrt_d = 1.0 / math.sqrt(HD)

    # ---- transformer encoder layers (weights stacked along axis 0) ----
    for l in range(N_LAYERS):
        qkv = jnp.dot(x, wqkv[l], preferred_element_type=f32) + bqkv[l]   # [B*S, 3H]
        wo_l = wo[l]                                                      # [H, H]

        attn = jnp.zeros((B * S, H), f32)
        for n in range(NH):                 # static loop, NH = 4
            lo = n * HD
            qh = qkv[:, lo:lo + HD].reshape(B, S, HD)
            kh = qkv[:, H + lo:H + lo + HD].reshape(B, S, HD)
            vh = qkv[:, 2 * H + lo:2 * H + lo + HD].reshape(B, S, HD)
            s = jnp.einsum('bqd,bkd->bqk', qh, kh,
                           preferred_element_type=f32) * inv_sqrt_d
            s = s + mask_add[:, None, :]                          # mask padded keys
            s = s - jnp.max(s, axis=-1, keepdims=True)
            p = jnp.exp(s)
            p = p / jnp.sum(p, axis=-1, keepdims=True)
            ctx = jnp.einsum('bqk,bkd->bqd', p, vh, preferred_element_type=f32)
            # fold this head's slice of the output projection (no lane concat)
            attn = attn + jnp.dot(ctx.reshape(B * S, HD), wo_l[lo:lo + HD, :],
                                  preferred_element_type=f32)
        attn = attn + bo[l]

        h1 = _layernorm(x + attn, ln1g[l], ln1b[l])
        ff = _gelu(jnp.dot(h1, wf1[l], preferred_element_type=f32) + bf1[l])
        ff = jnp.dot(ff, wf2[l], preferred_element_type=f32) + bf2[l]
        x = _layernorm(h1 + ff, ln2g[l], ln2b[l])                 # stays [B*S, H]

    # ---- Entity_Resolution_Head (offsets read as SMEM scalars) ----
    rows = []
    for b in range(B):                      # static loop, B = 2
        a0 = off_ref[b, 0]; a1 = off_ref[b, 1]
        b0 = off_ref[b, 2]; b1_ = off_ref[b, 3]
        pp = off_ref[b, 4]
        xb = x[b * S:(b + 1) * S, :]                              # [S, H]
        posi = jax.lax.broadcasted_iota(jnp.int32, (S, 1), 0)
        ma = ((posi >= a0) & (posi < a1)).astype(f32)
        mb = ((posi >= b0) & (posi < b1_)).astype(f32)
        mp = (posi == pp).astype(f32)
        ca = jnp.maximum(jnp.sum(ma, axis=0, keepdims=True), 1.0)  # 0/0 guard
        cb = jnp.maximum(jnp.sum(mb, axis=0, keepdims=True), 1.0)
        ea = jnp.sum(xb * ma, axis=0, keepdims=True) / ca          # [1, H] mean A
        eb = jnp.sum(xb * mb, axis=0, keepdims=True) / cb          # [1, H] mean B
        ep = jnp.sum(xb * mp, axis=0, keepdims=True)               # [1, H] pronoun
        # first Linear with the [ea|eb|ep] concat folded into row-blocks of w1
        rows.append(jnp.dot(ea, w1[0:H, :], preferred_element_type=f32)
                    + jnp.dot(eb, w1[H:2 * H, :], preferred_element_type=f32)
                    + jnp.dot(ep, w1[2 * H:3 * H, :], preferred_element_type=f32))
    h = jnp.concatenate(rows, axis=0) + b1[...]                    # [B, HEAD_HIDDEN]

    # BatchNorm1d (eval, running stats) -> LeakyReLU -> Dropout (eval = identity)
    h = (h - bn_m[...]) * jax.lax.rsqrt(bn_v[...] + BN_EPS) * bn_g[...] + bn_b[...]
    h = jnp.where(h >= 0.0, h, LEAKY_SLOPE * h)

    # classifier into a lane-dense padded slab (sliced to NUM_OUTPUT in wrapper)
    o_ref[...] = jnp.dot(h, w2p[...], preferred_element_type=f32) + b2p[...]


# --------------------------- params & packing --------------------------------
def init_params(key):
    def w(k, shape, scale=0.02):
        return scale * jax.random.normal(k, shape, dtype=jnp.float32)

    keys = iter(jax.random.split(key, 32))
    params = {
        'tok_emb': w(next(keys), (VOCAB, H)),
        'pos_emb': w(next(keys), (S, H)),
        'type_emb': w(next(keys), (2, H)),
        'emb_ln_g': jnp.ones((H,), jnp.float32),
        'emb_ln_b': jnp.zeros((H,), jnp.float32),
        'layers': [],
    }
    for _ in range(N_LAYERS):
        lp = {
            'wq': w(next(keys), (H, H)),  'bq': jnp.zeros((1, H), jnp.float32),
            'wk': w(next(keys), (H, H)),  'bk': jnp.zeros((1, H), jnp.float32),
            'wv': w(next(keys), (H, H)),  'bv': jnp.zeros((1, H), jnp.float32),
            'wo': w(next(keys), (H, H)),  'bo': jnp.zeros((1, H), jnp.float32),
            'ln1g': jnp.ones((1, H), jnp.float32),
            'ln1b': jnp.zeros((1, H), jnp.float32),
            'wf1': w(next(keys), (H, FF)), 'bf1': jnp.zeros((1, FF), jnp.float32),
            'wf2': w(next(keys), (FF, H)), 'bf2': jnp.zeros((1, H), jnp.float32),
            'ln2g': jnp.ones((1, H), jnp.float32),
            'ln2b': jnp.zeros((1, H), jnp.float32),
        }
        params['layers'].append(lp)
    params['head'] = {
        'w1': w(next(keys), (3 * H, HEAD_HIDDEN)),
        'b1': jnp.zeros((1, HEAD_HIDDEN), jnp.float32),
        'bn_g': jnp.ones((1, HEAD_HIDDEN), jnp.float32),
        'bn_b': jnp.zeros((1, HEAD_HIDDEN), jnp.float32),
        'bn_m': jnp.zeros((1, HEAD_HIDDEN), jnp.float32),   # running_mean
        'bn_v': jnp.ones((1, HEAD_HIDDEN), jnp.float32),    # running_var
        'w2': w(next(keys), (HEAD_HIDDEN, NUM_OUTPUT)),
        'b2': jnp.zeros((1, NUM_OUTPUT), jnp.float32),
    }
    return params


def pack_params(params):
    """Stack per-layer weights, fuse QKV, pad the classifier to lane width."""
    layers = params['layers']

    def stack(name):
        return jnp.stack([lp[name] for lp in layers], axis=0)

    packed = {
        'tok_emb': params['tok_emb'],
        'pos_emb': params['pos_emb'],
        'type0': params['type_emb'][0:1, :],                 # token_type_ids = 0
        'emb_ln_g': params['emb_ln_g'].reshape(1, H),
        'emb_ln_b': params['emb_ln_b'].reshape(1, H),
        'wqkv': jnp.stack([jnp.concatenate([lp['wq'], lp['wk'], lp['wv']], axis=1)
                           for lp in layers], axis=0),       # [L, H, 3H]
        'bqkv': jnp.stack([jnp.concatenate([lp['bq'], lp['bk'], lp['bv']], axis=1)
                           for lp in layers], axis=0),       # [L, 1, 3H]
        'wo': stack('wo'), 'bo': stack('bo'),
        'ln1g': stack('ln1g'), 'ln1b': stack('ln1b'),
        'wf1': stack('wf1'), 'bf1': stack('bf1'),
        'wf2': stack('wf2'), 'bf2': stack('bf2'),
        'ln2g': stack('ln2g'), 'ln2b': stack('ln2b'),
    }
    hp = params['head']
    w2p = jnp.zeros((HEAD_HIDDEN, OUT_PAD), jnp.float32).at[:, :NUM_OUTPUT].set(hp['w2'])
    b2p = jnp.zeros((1, OUT_PAD), jnp.float32).at[:, :NUM_OUTPUT].set(hp['b2'])
    packed.update({'w1': hp['w1'], 'b1': hp['b1'],
                   'bn_g': hp['bn_g'], 'bn_b': hp['bn_b'],
                   'bn_m': hp['bn_m'], 'bn_v': hp['bn_v'],
                   'w2p': w2p, 'b2p': b2p})
    return packed


# ------------------------------- forward -------------------------------------
def cr_model_forward(sample, packed):
    ids = sample['features']                                 # [B, S] int32 token ids
    offsets = sample['offsets']                              # [B, 5] int32
    attn_mask = (ids > 0).astype(jnp.float32)                # == (x > 0).long()
    mask_add = (1.0 - attn_mask) * -1e9                      # additive attention mask
    ids2d = ids.reshape(B * S, 1).astype(jnp.int32)

    args = [ids2d, mask_add, offsets,
            packed['tok_emb'], packed['pos_emb'], packed['type0'],
            packed['emb_ln_g'], packed['emb_ln_b'],
            packed['wqkv'], packed['bqkv'], packed['wo'], packed['bo'],
            packed['ln1g'], packed['ln1b'], packed['wf1'], packed['bf1'],
            packed['wf2'], packed['bf2'], packed['ln2g'], packed['ln2b'],
            packed['w1'], packed['b1'], packed['bn_g'], packed['bn_b'],
            packed['bn_m'], packed['bn_v'], packed['w2p'], packed['b2p']]

    in_specs = [_VMEM, _VMEM, _SMEM] + [_VMEM] * (len(args) - 3)

    logits_pad = pl.pallas_call(
        _fused_forward_kernel,
        out_shape=jax.ShapeDtypeStruct((B, OUT_PAD), jnp.float32),
        in_specs=in_specs,
        out_specs=_VMEM,
        compiler_params=pltpu.CompilerParams(vmem_limit_bytes=8 * 1024 * 1024),
        cost_estimate=pl.CostEstimate(flops=1_000_000, transcendentals=6_000,
                                      bytes_accessed=200_000),
    )(*args)
    return logits_pad[:, :NUM_OUTPUT]                        # output_strategy == 'last'


# ------------------------------- main ---------------------------------------
if __name__ == "__main__":
    key = jax.random.PRNGKey(0)
    pkey, dkey = jax.random.split(key)
    params = init_params(pkey)
    packed = pack_params(params)

    # deterministic token ids (0 = padding) and entity/pronoun offsets
    ids = jax.random.randint(dkey, (B, S), 1, VOCAB, dtype=jnp.int32)
    pad_mask = jnp.array([[1, 1, 1, 1, 1, 1, 1, 0],
                          [1, 1, 1, 1, 1, 1, 0, 0]], dtype=jnp.int32)
    token_ids = ids * pad_mask
    offsets = jnp.array([[1, 3, 3, 5, 6],      # [startA, endA, startB, endB, pron]
                         [0, 2, 2, 4, 5]], dtype=jnp.int32)

    sample = {'features': token_ids, 'offsets': offsets}
    out = cr_model_forward(sample, packed)
    out = jax.block_until_ready(out)
    assert out.shape == (B, NUM_OUTPUT) and out.dtype == jnp.float32
    assert bool(jnp.all(jnp.isfinite(out)))
    print("KERNEL_OK")
</pallas_src>

<mosaic_0001>
module attributes {stable_mosaic.version = 11 : i64} {
  func.func @_fused_forward_kernel(%arg0: memref<16x1xi32, #tpu.memory_space<vmem>>, %arg1: memref<2x8xf32, #tpu.memory_space<vmem>>, %arg2: memref<2x5xi32, #tpu.memory_space<smem>>, %arg3: memref<64x32xf32, #tpu.memory_space<vmem>>, %arg4: memref<8x32xf32, #tpu.memory_space<vmem>>, %arg5: memref<1x32xf32, #tpu.memory_space<vmem>>, %arg6: memref<1x32xf32, #tpu.memory_space<vmem>>, %arg7: memref<1x32xf32, #tpu.memory_space<vmem>>, %arg8: memref<2x32x96xf32, #tpu.memory_space<vmem>>, %arg9: memref<2x1x96xf32, #tpu.memory_space<vmem>>, %arg10: memref<2x32x32xf32, #tpu.memory_space<vmem>>, %arg11: memref<2x1x32xf32, #tpu.memory_space<vmem>>, %arg12: memref<2x1x32xf32, #tpu.memory_space<vmem>>, %arg13: memref<2x1x32xf32, #tpu.memory_space<vmem>>, %arg14: memref<2x32x128xf32, #tpu.memory_space<vmem>>, %arg15: memref<2x1x128xf32, #tpu.memory_space<vmem>>, %arg16: memref<2x128x32xf32, #tpu.memory_space<vmem>>, %arg17: memref<2x1x32xf32, #tpu.memory_space<vmem>>, %arg18: memref<2x1x32xf32, #tpu.memory_space<vmem>>, %arg19: memref<2x1x32xf32, #tpu.memory_space<vmem>>, %arg20: memref<96x64xf32, #tpu.memory_space<vmem>>, %arg21: memref<1x64xf32, #tpu.memory_space<vmem>>, %arg22: memref<1x64xf32, #tpu.memory_space<vmem>>, %arg23: memref<1x64xf32, #tpu.memory_space<vmem>>, %arg24: memref<1x64xf32, #tpu.memory_space<vmem>>, %arg25: memref<1x64xf32, #tpu.memory_space<vmem>>, %arg26: memref<64x128xf32, #tpu.memory_space<vmem>>, %arg27: memref<1x128xf32, #tpu.memory_space<vmem>>, %arg28: memref<2x128xf32, #tpu.memory_space<vmem>>) attributes {dimension_semantics = [], scalar_prefetch = 0 : i64, scratch_operands = 0 : i64, tpu.core_type = #tpu.core_type<tc>} {
    %c0 = arith.constant 0 : index
    %c0_0 = arith.constant 0 : index
    %0 = vector.load %arg0[%c0, %c0_0] : memref<16x1xi32, #tpu.memory_space<vmem>>, vector<16x1xi32>
    %1 = tpu.iota {dimensions = array<i32: 1>} : vector<16x64xi32>
    %2 = vector.broadcast %0 : vector<16x1xi32> to vector<16x64xi32>
    %3 = arith.cmpi eq, %1, %2 : vector<16x64xi32>
    %4 = arith.extui %3 : vector<16x64xi1> to vector<16x64xi32>
    %5 = arith.sitofp %4 : vector<16x64xi32> to vector<16x64xf32>
    %c0_1 = arith.constant 0 : index
    %c0_2 = arith.constant 0 : index
    %6 = vector.load %arg3[%c0_1, %c0_2] : memref<64x32xf32, #tpu.memory_space<vmem>>, vector<64x32xf32>
    %cst = arith.constant dense<0.000000e+00> : vector<16x32xf32>
    %7 = tpu.matmul %5, %6, %cst {dimension_numbers = #tpu.dot_dimension_numbers<[1], [0], [0], [1], [0, 0, 1, 1], [], []>} : vector<16x64xf32>, vector<64x32xf32>, vector<16x32xf32> -> vector<16x32xf32>
    %c0_3 = arith.constant 0 : index
    %c0_4 = arith.constant 0 : index
    %8 = vector.load %arg4[%c0_3, %c0_4] : memref<8x32xf32, #tpu.memory_space<vmem>>, vector<8x32xf32>
    %9 = tpu.concatenate %8, %8 in 0 : vector<8x32xf32>, vector<8x32xf32> -> vector<16x32xf32>
    %10 = arith.addf %7, %9 : vector<16x32xf32>
    %c0_5 = arith.constant 0 : index
    %c0_6 = arith.constant 0 : index
    %11 = vector.load %arg5[%c0_5, %c0_6] : memref<1x32xf32, #tpu.memory_space<vmem>>, vector<1x32xf32>
    %12 = vector.broadcast %11 : vector<1x32xf32> to vector<16x32xf32>
    %13 = arith.addf %10, %12 : vector<16x32xf32>
    %c0_7 = arith.constant 0 : index
    %c0_8 = arith.constant 0 : index
    %14 = vector.load %arg6[%c0_7, %c0_8] : memref<1x32xf32, #tpu.memory_space<vmem>>, vector<1x32xf32>
    %c0_9 = arith.constant 0 : index
    %c0_10 = arith.constant 0 : index
    %15 = vector.load %arg7[%c0_9, %c0_10] : memref<1x32xf32, #tpu.memory_space<vmem>>, vector<1x32xf32>
    %cst_11 = arith.constant dense<0.000000e+00> : vector<16xf32>
    %16 = vector.multi_reduction <add>, %13, %cst_11 [1] : vector<16x32xf32> to vector<16xf32>
    %17 = vector.shape_cast %16 : vector<16xf32> to vector<16x1xf32>
    %cst_12 = arith.constant 3.200000e+01 : f32
    %18 = vector.broadcast %cst_12 : f32 to vector<16x1xf32>
    %19 = arith.divf %17, %18 : vector<16x1xf32>
    %20 = vector.broadcast %19 : vector<16x1xf32> to vector<16x32xf32>
    %21 = arith.subf %13, %20 : vector<16x32xf32>
    %22 = arith.mulf %21, %21 : vector<16x32xf32>
    %cst_13 = arith.constant dense<0.000000e+00> : vector<16xf32>
    %23 = vector.multi_reduction <add>, %22, %cst_13 [1] : vector<16x32xf32> to vector<16xf32>
    %24 = vector.shape_cast %23 : vector<16xf32> to vector<16x1xf32>
    %cst_14 = arith.constant 3.200000e+01 : f32
    %25 = vector.broadcast %cst_14 : f32 to vector<16x1xf32>
    %26 = arith.divf %24, %25 : vector<16x1xf32>
    %27 = vector.broadcast %19 : vector<16x1xf32> to vector<16x32xf32>
    %28 = arith.subf %13, %27 : vector<16x32xf32>
    %cst_15 = arith.constant 9.99999996E-13 : f32
    %29 = vector.broadcast %cst_15 : f32 to vector<16x1xf32>
    %30 = arith.addf %26, %29 : vector<16x1xf32>
    %31 = math.rsqrt %30 : vector<16x1xf32>
    %32 = vector.broadcast %31 : vector<16x1xf32> to vector<16x32xf32>
    %33 = arith.mulf %28, %32 : vector<16x32xf32>
    %34 = vector.broadcast %14 : vector<1x32xf32> to vector<16x32xf32>
    %35 = arith.mulf %33, %34 : vector<16x32xf32>
    %36 = vector.broadcast %15 : vector<1x32xf32> to vector<16x32xf32>
    %37 = arith.addf %35, %36 : vector<16x32xf32>
    %c0_16 = arith.constant 0 : index
    %c0_17 = arith.constant 0 : index
    %38 = vector.load %arg1[%c0_16, %c0_17] : memref<2x8xf32, #tpu.memory_space<vmem>>, vector<2x8xf32>
    %c0_18 = arith.constant 0 : index
    %c0_19 = arith.constant 0 : index
    %c0_20 = arith.constant 0 : index
    %39 = vector.load %arg8[%c0_18, %c0_19, %c0_20] : memref<2x32x96xf32, #tpu.memory_space<vmem>>, vector<1x32x96xf32>
    %40 = vector.shape_cast %39 : vector<1x32x96xf32> to vector<32x96xf32>
    %cst_21 = arith.constant dense<0.000000e+00> : vector<16x96xf32>
    %41 = tpu.matmul %37, %40, %cst_21 {dimension_numbers = #tpu.dot_dimension_numbers<[1], [0], [0], [1], [0, 0, 1, 1], [], []>} : vector<16x32xf32>, vector<32x96xf32>, vector<16x96xf32> -> vector<16x96xf32>
    %c0_22 = arith.constant 0 : index
    %c0_23 = arith.constant 0 : index
    %c0_24 = arith.constant 0 : index
    %42 = vector.load %arg9[%c0_22, %c0_23, %c0_24] : memref<2x1x96xf32, #tpu.memory_space<vmem>>, vector<1x1x96xf32>
    %43 = vector.shape_cast %42 : vector<1x1x96xf32> to vector<1x96xf32>
    %44 = vector.broadcast %43 : vector<1x96xf32> to vector<16x96xf32>
    %45 = arith.addf %41, %44 : vector<16x96xf32>
    %c0_25 = arith.constant 0 : index
    %c0_26 = arith.constant 0 : index
    %c0_27 = arith.constant 0 : index
    %46 = vector.load %arg10[%c0_25, %c0_26, %c0_27] : memref<2x32x32xf32, #tpu.memory_space<vmem>>, vector<1x32x32xf32>
    %47 = vector.shape_cast %46 : vector<1x32x32xf32> to vector<32x32xf32>
    %cst_28 = arith.constant 0.000000e+00 : f32
    %48 = vector.broadcast %cst_28 : f32 to vector<16x32xf32>
    %49 = vector.extract_strided_slice %45 {offsets = [0, 0], sizes = [16, 8], strides = [1, 1]} : vector<16x96xf32> to vector<16x8xf32>
    %50 = vector.shape_cast %49 : vector<16x8xf32> to vector<2x8x8xf32>
    %51 = vector.extract_strided_slice %45 {offsets = [0, 32], sizes = [16, 8], strides = [1, 1]} : vector<16x96xf32> to vector<16x8xf32>
    %52 = vector.shape_cast %51 : vector<16x8xf32> to vector<2x8x8xf32>
    %53 = vector.extract_strided_slice %45 {offsets = [0, 64], sizes = [16, 8], strides = [1, 1]} : vector<16x96xf32> to vector<16x8xf32>
    %54 = vector.shape_cast %53 : vector<16x8xf32> to vector<2x8x8xf32>
    "tpu.trace_start"() <{level = 10 : i32, message = "bqd,bkd->bqk"}> : () -> ()
    %cst_29 = arith.constant dense<0.000000e+00> : vector<2x8x8xf32>
    %55 = tpu.matmul %50, %52, %cst_29 {dimension_numbers = #tpu.dot_dimension_numbers<[2], [2], [1], [1], [0, 0, 0, 1, 1, 1], [0], [0]>} : vector<2x8x8xf32>, vector<2x8x8xf32>, vector<2x8x8xf32> -> vector<2x8x8xf32>
    "tpu.trace_stop"() : () -> ()
    %cst_30 = arith.constant 0.353553385 : f32
    %56 = vector.broadcast %cst_30 : f32 to vector<2x8x8xf32>
    %57 = arith.mulf %55, %56 : vector<2x8x8xf32>
    %58 = vector.shape_cast %38 : vector<2x8xf32> to vector<2x1x8xf32>
    %59 = vector.broadcast %58 : vector<2x1x8xf32> to vector<2x8x8xf32>
    %60 = arith.addf %57, %59 : vector<2x8x8xf32>
    %cst_31 = arith.constant dense<0xFF800000> : vector<2x8xf32>
    %61 = vector.multi_reduction <maximumf>, %60, %cst_31 [2] : vector<2x8x8xf32> to vector<2x8xf32>
    %62 = vector.shape_cast %61 : vector<2x8xf32> to vector<2x8x1xf32>
    %63 = vector.broadcast %62 : vector<2x8x1xf32> to vector<2x8x8xf32>
    %64 = arith.subf %60, %63 : vector<2x8x8xf32>
    %65 = math.exp %64 : vector<2x8x8xf32>
    %cst_32 = arith.constant dense<0.000000e+00> : vector<2x8xf32>
    %66 = vector.multi_reduction <add>, %65, %cst_32 [2] : vector<2x8x8xf32> to vector<2x8xf32>
    %67 = vector.shape_cast %66 : vector<2x8xf32> to vector<2x8x1xf32>
    %68 = vector.broadcast %67 : vector<2x8x1xf32> to vector<2x8x8xf32>
    %69 = arith.divf %65, %68 : vector<2x8x8xf32>
    "tpu.trace_start"() <{level = 10 : i32, message = "bqk,bkd->bqd"}> : () -> ()
    %cst_33 = arith.constant dense<0.000000e+00> : vector<2x8x8xf32>
    %70 = tpu.matmul %69, %54, %cst_33 {dimension_numbers = #tpu.dot_dimension_numbers<[2], [1], [1], [2], [0, 0, 0, 1, 1, 2], [0], [0]>} : vector<2x8x8xf32>, vector<2x8x8xf32>, vector<2x8x8xf32> -> vector<2x8x8xf32>
    "tpu.trace_stop"() : () -> ()
    %71 = vector.shape_cast %70 : vector<2x8x8xf32> to vector<16x8xf32>
    %72 = vector.extract_strided_slice %47 {offsets = [0, 0], sizes = [8, 32], strides = [1, 1]} : vector<32x32xf32> to vector<8x32xf32>
    %cst_34 = arith.constant dense<0.000000e+00> : vector<16x32xf32>
    %73 = tpu.matmul %71, %72, %cst_34 {dimension_numbers = #tpu.dot_dimension_numbers<[1], [0], [0], [1], [0, 0, 1, 1], [], []>} : vector<16x8xf32>, vector<8x32xf32>, vector<16x32xf32> -> vector<16x32xf32>
    %74 = arith.addf %48, %73 : vector<16x32xf32>
    %75 = vector.extract_strided_slice %45 {offsets = [0, 8], sizes = [16, 8], strides = [1, 1]} : vector<16x96xf32> to vector<16x8xf32>
    %76 = vector.shape_cast %75 : vector<16x8xf32> to vector<2x8x8xf32>
    %77 = vector.extract_strided_slice %45 {offsets = [0, 40], sizes = [16, 8], strides = [1, 1]} : vector<16x96xf32> to vector<16x8xf32>
    %78 = vector.shape_cast %77 : vector<16x8xf32> to vector<2x8x8xf32>
    %79 = vector.extract_strided_slice %45 {offsets = [0, 72], sizes = [16, 8], strides = [1, 1]} : vector<16x96xf32> to vector<16x8xf32>
    %80 = vector.shape_cast %79 : vector<16x8xf32> to vector<2x8x8xf32>
    "tpu.trace_start"() <{level = 10 : i32, message = "bqd,bkd->bqk"}> : () -> ()
    %cst_35 = arith.constant dense<0.000000e+00> : vector<2x8x8xf32>
    %81 = tpu.matmul %76, %78, %cst_35 {dimension_numbers = #tpu.dot_dimension_numbers<[2], [2], [1], [1], [0, 0, 0, 1, 1, 1], [0], [0]>} : vector<2x8x8xf32>, vector<2x8x8xf32>, vector<2x8x8xf32> -> vector<2x8x8xf32>
    "tpu.trace_stop"() : () -> ()
    %cst_36 = arith.constant 0.353553385 : f32
    %82 = vector.broadcast %cst_36 : f32 to vector<2x8x8xf32>
    %83 = arith.mulf %81, %82 : vector<2x8x8xf32>
    %84 = vector.shape_cast %38 : vector<2x8xf32> to vector<2x1x8xf32>
    %85 = vector.broadcast %84 : vector<2x1x8xf32> to vector<2x8x8xf32>
    %86 = arith.addf %83, %85 : vector<2x8x8xf32>
    %cst_37 = arith.constant dense<0xFF800000> : vector<2x8xf32>
    %87 = vector.multi_reduction <maximumf>, %86, %cst_37 [2] : vector<2x8x8xf32> to vector<2x8xf32>
    %88 = vector.shape_cast %87 : vector<2x8xf32> to vector<2x8x1xf32>
    %89 = vector.broadcast %88 : vector<2x8x1xf32> to vector<2x8x8xf32>
    %90 = arith.subf %86, %89 : vector<2x8x8xf32>
    %91 = math.exp %90 : vector<2x8x8xf32>
    %cst_38 = arith.constant dense<0.000000e+00> : vector<2x8xf32>
    %92 = vector.multi_reduction <add>, %91, %cst_38 [2] : vector<2x8x8xf32> to vector<2x8xf32>
    %93 = vector.shape_cast %92 : vector<2x8xf32> to vector<2x8x1xf32>
    %94 = vector.broadcast %93 : vector<2x8x1xf32> to vector<2x8x8xf32>
    %95 = arith.divf %91, %94 : vector<2x8x8xf32>
    "tpu.trace_start"() <{level = 10 : i32, message = "bqk,bkd->bqd"}> : () -> ()
    %cst_39 = arith.constant dense<0.000000e+00> : vector<2x8x8xf32>
    %96 = tpu.matmul %95, %80, %cst_39 {dimension_numbers = #tpu.dot_dimension_numbers<[2], [1], [1], [2], [0, 0, 0, 1, 1, 2], [0], [0]>} : vector<2x8x8xf32>, vector<2x8x8xf32>, vector<2x8x8xf32> -> vector<2x8x8xf32>
    "tpu.trace_stop"() : () -> ()
    %97 = vector.shape_cast %96 : vector<2x8x8xf32> to vector<16x8xf32>
    %98 = vector.extract_strided_slice %47 {offsets = [8, 0], sizes = [8, 32], strides = [1, 1]} : vector<32x32xf32> to vector<8x32xf32>
    %cst_40 = arith.constant dense<0.000000e+00> : vector<16x32xf32>
    %99 = tpu.matmul %97, %98, %cst_40 {dimension_numbers = #tpu.dot_dimension_numbers<[1], [0], [0], [1], [0, 0, 1, 1], [], []>} : vector<16x8xf32>, vector<8x32xf32>, vector<16x32xf32> -> vector<16x32xf32>
    %100 = arith.addf %74, %99 : vector<16x32xf32>
    %101 = vector.extract_strided_slice %45 {offsets = [0, 16], sizes = [16, 8], strides = [1, 1]} : vector<16x96xf32> to vector<16x8xf32>
    %102 = vector.shape_cast %101 : vector<16x8xf32> to vector<2x8x8xf32>
    %103 = vector.extract_strided_slice %45 {offsets = [0, 48], sizes = [16, 8], strides = [1, 1]} : vector<16x96xf32> to vector<16x8xf32>
    %104 = vector.shape_cast %103 : vector<16x8xf32> to vector<2x8x8xf32>
    %105 = vector.extract_strided_slice %45 {offsets = [0, 80], sizes = [16, 8], strides = [1, 1]} : vector<16x96xf32> to vector<16x8xf32>
    %106 = vector.shape_cast %105 : vector<16x8xf32> to vector<2x8x8xf32>
    "tpu.trace_start"() <{level = 10 : i32, message = "bqd,bkd->bqk"}> : () -> ()
    %cst_41 = arith.constant dense<0.000000e+00> : vector<2x8x8xf32>
    %107 = tpu.matmul %102, %104, %cst_41 {dimension_numbers = #tpu.dot_dimension_numbers<[2], [2], [1], [1], [0, 0, 0, 1, 1, 1], [0], [0]>} : vector<2x8x8xf32>, vector<2x8x8xf32>, vector<2x8x8xf32> -> vector<2x8x8xf32>
    "tpu.trace_stop"() : () -> ()
    %cst_42 = arith.constant 0.353553385 : f32
    %108 = vector.broadcast %cst_42 : f32 to vector<2x8x8xf32>
    %109 = arith.mulf %107, %108 : vector<2x8x8xf32>
    %110 = vector.shape_cast %38 : vector<2x8xf32> to vector<2x1x8xf32>
    %111 = vector.broadcast %110 : vector<2x1x8xf32> to vector<2x8x8xf32>
    %112 = arith.addf %109, %111 : vector<2x8x8xf32>
    %cst_43 = arith.constant dense<0xFF800000> : vector<2x8xf32>
    %113 = vector.multi_reduction <maximumf>, %112, %cst_43 [2] : vector<2x8x8xf32> to vector<2x8xf32>
    %114 = vector.shape_cast %113 : vector<2x8xf32> to vector<2x8x1xf32>
    %115 = vector.broadcast %114 : vector<2x8x1xf32> to vector<2x8x8xf32>
    %116 = arith.subf %112, %115 : vector<2x8x8xf32>
    %117 = math.exp %116 : vector<2x8x8xf32>
    %cst_44 = arith.constant dense<0.000000e+00> : vector<2x8xf32>
    %118 = vector.multi_reduction <add>, %117, %cst_44 [2] : vector<2x8x8xf32> to vector<2x8xf32>
    %119 = vector.shape_cast %118 : vector<2x8xf32> to vector<2x8x1xf32>
    %120 = vector.broadcast %119 : vector<2x8x1xf32> to vector<2x8x8xf32>
    %121 = arith.divf %117, %120 : vector<2x8x8xf32>
    "tpu.trace_start"() <{level = 10 : i32, message = "bqk,bkd->bqd"}> : () -> ()
    %cst_45 = arith.constant dense<0.000000e+00> : vector<2x8x8xf32>
    %122 = tpu.matmul %121, %106, %cst_45 {dimension_numbers = #tpu.dot_dimension_numbers<[2], [1], [1], [2], [0, 0, 0, 1, 1, 2], [0], [0]>} : vector<2x8x8xf32>, vector<2x8x8xf32>, vector<2x8x8xf32> -> vector<2x8x8xf32>
    "tpu.trace_stop"() : () -> ()
    %123 = vector.shape_cast %122 : vector<2x8x8xf32> to vector<16x8xf32>
    %124 = vector.extract_strided_slice %47 {offsets = [16, 0], sizes = [8, 32], strides = [1, 1]} : vector<32x32xf32> to vector<8x32xf32>
    %cst_46 = arith.constant dense<0.000000e+00> : vector<16x32xf32>
    %125 = tpu.matmul %123, %124, %cst_46 {dimension_numbers = #tpu.dot_dimension_numbers<[1], [0], [0], [1], [0, 0, 1, 1], [], []>} : vector<16x8xf32>, vector<8x32xf32>, vector<16x32xf32> -> vector<16x32xf32>
    %126 = arith.addf %100, %125 : vector<16x32xf32>
    %127 = vector.extract_strided_slice %45 {offsets = [0, 24], sizes = [16, 8], strides = [1, 1]} : vector<16x96xf32> to vector<16x8xf32>
    %128 = vector.shape_cast %127 : vector<16x8xf32> to vector<2x8x8xf32>
    %129 = vector.extract_strided_slice %45 {offsets = [0, 56], sizes = [16, 8], strides = [1, 1]} : vector<16x96xf32> to vector<16x8xf32>
    %130 = vector.shape_cast %129 : vector<16x8xf32> to vector<2x8x8xf32>
    %131 = vector.extract_strided_slice %45 {offsets = [0, 88], sizes = [16, 8], strides = [1, 1]} : vector<16x96xf32> to vector<16x8xf32>
    %132 = vector.shape_cast %131 : vector<16x8xf32> to vector<2x8x8xf32>
    "tpu.trace_start"() <{level = 10 : i32, message = "bqd,bkd->bqk"}> : () -> ()
    %cst_47 = arith.constant dense<0.000000e+00> : vector<2x8x8xf32>
    %133 = tpu.matmul %128, %130, %cst_47 {dimension_numbers = #tpu.dot_dimension_numbers<[2], [2], [1], [1], [0, 0, 0, 1, 1, 1], [0], [0]>} : vector<2x8x8xf32>, vector<2x8x8xf32>, vector<2x8x8xf32> -> vector<2x8x8xf32>
    "tpu.trace_stop"() : () -> ()
    %cst_48 = arith.constant 0.353553385 : f32
    %134 = vector.broadcast %cst_48 : f32 to vector<2x8x8xf32>
    %135 = arith.mulf %133, %134 : vector<2x8x8xf32>
    %136 = vector.shape_cast %38 : vector<2x8xf32> to vector<2x1x8xf32>
    %137 = vector.broadcast %136 : vector<2x1x8xf32> to vector<2x8x8xf32>
    %138 = arith.addf %135, %137 : vector<2x8x8xf32>
    %cst_49 = arith.constant dense<0xFF800000> : vector<2x8xf32>
    %139 = vector.multi_reduction <maximumf>, %138, %cst_49 [2] : vector<2x8x8xf32> to vector<2x8xf32>
    %140 = vector.shape_cast %139 : vector<2x8xf32> to vector<2x8x1xf32>
    %141 = vector.broadcast %140 : vector<2x8x1xf32> to vector<2x8x8xf32>
    %142 = arith.subf %138, %141 : vector<2x8x8xf32>
    %143 = math.exp %142 : vector<2x8x8xf32>
    %cst_50 = arith.constant dense<0.000000e+00> : vector<2x8xf32>
    %144 = vector.multi_reduction <add>, %143, %cst_50 [2] : vector<2x8x8xf32> to vector<2x8xf32>
    %145 = vector.shape_cast %144 : vector<2x8xf32> to vector<2x8x1xf32>
    %146 = vector.broadcast %145 : vector<2x8x1xf32> to vector<2x8x8xf32>
    %147 = arith.divf %143, %146 : vector<2x8x8xf32>
    "tpu.trace_start"() <{level = 10 : i32, message = "bqk,bkd->bqd"}> : () -> ()
    %cst_51 = arith.constant dense<0.000000e+00> : vector<2x8x8xf32>
    %148 = tpu.matmul %147, %132, %cst_51 {dimension_numbers = #tpu.dot_dimension_numbers<[2], [1], [1], [2], [0, 0, 0, 1, 1, 2], [0], [0]>} : vector<2x8x8xf32>, vector<2x8x8xf32>, vector<2x8x8xf32> -> vector<2x8x8xf32>
    "tpu.trace_stop"() : () -> ()
    %149 = vector.shape_cast %148 : vector<2x8x8xf32> to vector<16x8xf32>
    %150 = vector.extract_strided_slice %47 {offsets = [24, 0], sizes = [8, 32], strides = [1, 1]} : vector<32x32xf32> to vector<8x32xf32>
    %cst_52 = arith.constant dense<0.000000e+00> : vector<16x32xf32>
    %151 = tpu.matmul %149, %150, %cst_52 {dimension_numbers = #tpu.dot_dimension_numbers<[1], [0], [0], [1], [0, 0, 1, 1], [], []>} : vector<16x8xf32>, vector<8x32xf32>, vector<16x32xf32> -> vector<16x32xf32>
    %152 = arith.addf %126, %151 : vector<16x32xf32>
    %c0_53 = arith.constant 0 : index
    %c0_54 = arith.constant 0 : index
    %c0_55 = arith.constant 0 : index
    %153 = vector.load %arg11[%c0_53, %c0_54, %c0_55] : memref<2x1x32xf32, #tpu.memory_space<vmem>>, vector<1x1x32xf32>
    %154 = vector.shape_cast %153 : vector<1x1x32xf32> to vector<1x32xf32>
    %155 = vector.broadcast %154 : vector<1x32xf32> to vector<16x32xf32>
    %156 = arith.addf %152, %155 : vector<16x32xf32>
    %157 = arith.addf %37, %156 : vector<16x32xf32>
    %c0_56 = arith.constant 0 : index
    %c0_57 = arith.constant 0 : index
    %c0_58 = arith.constant 0 : index
    %158 = vector.load %arg12[%c0_56, %c0_57, %c0_58] : memref<2x1x32xf32, #tpu.memory_space<vmem>>, vector<1x1x32xf32>
    %159 = vector.shape_cast %158 : vector<1x1x32xf32> to vector<1x32xf32>
    %c0_59 = arith.constant 0 : index
    %c0_60 = arith.constant 0 : index
    %c0_61 = arith.constant 0 : index
    %160 = vector.load %arg13[%c0_59, %c0_60, %c0_61] : memref<2x1x32xf32, #tpu.memory_space<vmem>>, vector<1x1x32xf32>
    %161 = vector.shape_cast %160 : vector<1x1x32xf32> to vector<1x32xf32>
    %cst_62 = arith.constant dense<0.000000e+00> : vector<16xf32>
    %162 = vector.multi_reduction <add>, %157, %cst_62 [1] : vector<16x32xf32> to vector<16xf32>
    %163 = vector.shape_cast %162 : vector<16xf32> to vector<16x1xf32>
    %cst_63 = arith.constant 3.200000e+01 : f32
    %164 = vector.broadcast %cst_63 : f32 to vector<16x1xf32>
    %165 = arith.divf %163, %164 : vector<16x1xf32>
    %166 = vector.broadcast %165 : vector<16x1xf32> to vector<16x32xf32>
    %167 = arith.subf %157, %166 : vector<16x32xf32>
    %168 = arith.mulf %167, %167 : vector<16x32xf32>
    %cst_64 = arith.constant dense<0.000000e+00> : vector<16xf32>
    %169 = vector.multi_reduction <add>, %168, %cst_64 [1] : vector<16x32xf32> to vector<16xf32>
    %170 = vector.shape_cast %169 : vector<16xf32> to vector<16x1xf32>
    %cst_65 = arith.constant 3.200000e+01 : f32
    %171 = vector.broadcast %cst_65 : f32 to vector<16x1xf32>
    %172 = arith.divf %170, %171 : vector<16x1xf32>
    %173 = vector.broadcast %165 : vector<16x1xf32> to vector<16x32xf32>
    %174 = arith.subf %157, %173 : vector<16x32xf32>
    %cst_66 = arith.constant 9.99999996E-13 : f32
    %175 = vector.broadcast %cst_66 : f32 to vector<16x1xf32>
    %176 = arith.addf %172, %175 : vector<16x1xf32>
    %177 = math.rsqrt %176 : vector<16x1xf32>
    %178 = vector.broadcast %177 : vector<16x1xf32> to vector<16x32xf32>
    %179 = arith.mulf %174, %178 : vector<16x32xf32>
    %180 = vector.broadcast %159 : vector<1x32xf32> to vector<16x32xf32>
    %181 = arith.mulf %179, %180 : vector<16x32xf32>
    %182 = vector.broadcast %161 : vector<1x32xf32> to vector<16x32xf32>
    %183 = arith.addf %181, %182 : vector<16x32xf32>
    %c0_67 = arith.constant 0 : index
    %c0_68 = arith.constant 0 : index
    %c0_69 = arith.constant 0 : index
    %184 = vector.load %arg14[%c0_67, %c0_68, %c0_69] : memref<2x32x128xf32, #tpu.memory_space<vmem>>, vector<1x32x128xf32>
    %185 = vector.shape_cast %184 : vector<1x32x128xf32> to vector<32x128xf32>
    %cst_70 = arith.constant dense<0.000000e+00> : vector<16x128xf32>
    %186 = tpu.matmul %183, %185, %cst_70 {dimension_numbers = #tpu.dot_dimension_numbers<[1], [0], [0], [1], [0, 0, 1, 1], [], []>} : vector<16x32xf32>, vector<32x128xf32>, vector<16x128xf32> -> vector<16x128xf32>
    %c0_71 = arith.constant 0 : index
    %c0_72 = arith.constant 0 : index
    %c0_73 = arith.constant 0 : index
    %187 = vector.load %arg15[%c0_71, %c0_72, %c0_73] : memref<2x1x128xf32, #tpu.memory_space<vmem>>, vector<1x1x128xf32>
    %188 = vector.shape_cast %187 : vector<1x1x128xf32> to vector<1x128xf32>
    %189 = vector.broadcast %188 : vector<1x128xf32> to vector<16x128xf32>
    %190 = arith.addf %186, %189 : vector<16x128xf32>
    %cst_74 = arith.constant 5.000000e-01 : f32
    %191 = vector.broadcast %cst_74 : f32 to vector<16x128xf32>
    %192 = arith.mulf %191, %190 : vector<16x128xf32>
    %cst_75 = arith.constant 4.471500e-02 : f32
    %193 = vector.broadcast %cst_75 : f32 to vector<16x128xf32>
    %194 = arith.mulf %193, %190 : vector<16x128xf32>
    %195 = arith.mulf %194, %190 : vector<16x128xf32>
    %196 = arith.mulf %195, %190 : vector<16x128xf32>
    %197 = arith.addf %190, %196 : vector<16x128xf32>
    %cst_76 = arith.constant 0.797884583 : f32
    %198 = vector.broadcast %cst_76 : f32 to vector<16x128xf32>
    %199 = arith.mulf %198, %197 : vector<16x128xf32>
    %200 = math.tanh %199 : vector<16x128xf32>
    %cst_77 = arith.constant 1.000000e+00 : f32
    %201 = vector.broadcast %cst_77 : f32 to vector<16x128xf32>
    %202 = arith.addf %201, %200 : vector<16x128xf32>
    %203 = arith.mulf %192, %202 : vector<16x128xf32>
    %c0_78 = arith.constant 0 : index
    %c0_79 = arith.constant 0 : index
    %c0_80 = arith.constant 0 : index
    %204 = vector.load %arg16[%c0_78, %c0_79, %c0_80] : memref<2x128x32xf32, #tpu.memory_space<vmem>>, vector<1x128x32xf32>
    %205 = vector.shape_cast %204 : vector<1x128x32xf32> to vector<128x32xf32>
    %cst_81 = arith.constant dense<0.000000e+00> : vector<16x32xf32>
    %206 = tpu.matmul %203, %205, %cst_81 {dimension_numbers = #tpu.dot_dimension_numbers<[1], [0], [0], [1], [0, 0, 1, 1], [], []>} : vector<16x128xf32>, vector<128x32xf32>, vector<16x32xf32> -> vector<16x32xf32>
    %c0_82 = arith.constant 0 : index
    %c0_83 = arith.constant 0 : index
    %c0_84 = arith.constant 0 : index
    %207 = vector.load %arg17[%c0_82, %c0_83, %c0_84] : memref<2x1x32xf32, #tpu.memory_space<vmem>>, vector<1x1x32xf32>
    %208 = vector.shape_cast %207 : vector<1x1x32xf32> to vector<1x32xf32>
    %209 = vector.broadcast %208 : vector<1x32xf32> to vector<16x32xf32>
    %210 = arith.addf %206, %209 : vector<16x32xf32>
    %211 = arith.addf %183, %210 : vector<16x32xf32>
    %c0_85 = arith.constant 0 : index
    %c0_86 = arith.constant 0 : index
    %c0_87 = arith.constant 0 : index
    %212 = vector.load %arg18[%c0_85, %c0_86, %c0_87] : memref<2x1x32xf32, #tpu.memory_space<vmem>>, vector<1x1x32xf32>
    %213 = vector.shape_cast %212 : vector<1x1x32xf32> to vector<1x32xf32>
    %c0_88 = arith.constant 0 : index
    %c0_89 = arith.constant 0 : index
    %c0_90 = arith.constant 0 : index
    %214 = vector.load %arg19[%c0_88, %c0_89, %c0_90] : memref<2x1x32xf32, #tpu.memory_space<vmem>>, vector<1x1x32xf32>
    %215 = vector.shape_cast %214 : vector<1x1x32xf32> to vector<1x32xf32>
    %cst_91 = arith.constant dense<0.000000e+00> : vector<16xf32>
    %216 = vector.multi_reduction <add>, %211, %cst_91 [1] : vector<16x32xf32> to vector<16xf32>
    %217 = vector.shape_cast %216 : vector<16xf32> to vector<16x1xf32>
    %cst_92 = arith.constant 3.200000e+01 : f32
    %218 = vector.broadcast %cst_92 : f32 to vector<16x1xf32>
    %219 = arith.divf %217, %218 : vector<16x1xf32>
    %220 = vector.broadcast %219 : vector<16x1xf32> to vector<16x32xf32>
    %221 = arith.subf %211, %220 : vector<16x32xf32>
    %222 = arith.mulf %221, %221 : vector<16x32xf32>
    %cst_93 = arith.constant dense<0.000000e+00> : vector<16xf32>
    %223 = vector.multi_reduction <add>, %222, %cst_93 [1] : vector<16x32xf32> to vector<16xf32>
    %224 = vector.shape_cast %223 : vector<16xf32> to vector<16x1xf32>
    %cst_94 = arith.constant 3.200000e+01 : f32
    %225 = vector.broadcast %cst_94 : f32 to vector<16x1xf32>
    %226 = arith.divf %224, %225 : vector<16x1xf32>
    %227 = vector.broadcast %219 : vector<16x1xf32> to vector<16x32xf32>
    %228 = arith.subf %211, %227 : vector<16x32xf32>
    %cst_95 = arith.constant 9.99999996E-13 : f32
    %229 = vector.broadcast %cst_95 : f32 to vector<16x1xf32>
    %230 = arith.addf %226, %229 : vector<16x1xf32>
    %231 = math.rsqrt %230 : vector<16x1xf32>
    %232 = vector.broadcast %231 : vector<16x1xf32> to vector<16x32xf32>
    %233 = arith.mulf %228, %232 : vector<16x32xf32>
    %234 = vector.broadcast %213 : vector<1x32xf32> to vector<16x32xf32>
    %235 = arith.mulf %233, %234 : vector<16x32xf32>
    %236 = vector.broadcast %215 : vector<1x32xf32> to vector<16x32xf32>
    %237 = arith.addf %235, %236 : vector<16x32xf32>
    %c1 = arith.constant 1 : index
    %c0_96 = arith.constant 0 : index
    %c0_97 = arith.constant 0 : index
    %238 = vector.load %arg8[%c1, %c0_96, %c0_97] : memref<2x32x96xf32, #tpu.memory_space<vmem>>, vector<1x32x96xf32>
    %239 = vector.shape_cast %238 : vector<1x32x96xf32> to vector<32x96xf32>
    %cst_98 = arith.constant dense<0.000000e+00> : vector<16x96xf32>
    %240 = tpu.matmul %237, %239, %cst_98 {dimension_numbers = #tpu.dot_dimension_numbers<[1], [0], [0], [1], [0, 0, 1, 1], [], []>} : vector<16x32xf32>, vector<32x96xf32>, vector<16x96xf32> -> vector<16x96xf32>
    %c1_99 = arith.constant 1 : index
    %c0_100 = arith.constant 0 : index
    %c0_101 = arith.constant 0 : index
    %241 = vector.load %arg9[%c1_99, %c0_100, %c0_101] : memref<2x1x96xf32, #tpu.memory_space<vmem>>, vector<1x1x96xf32>
    %242 = vector.shape_cast %241 : vector<1x1x96xf32> to vector<1x96xf32>
    %243 = vector.broadcast %242 : vector<1x96xf32> to vector<16x96xf32>
    %244 = arith.addf %240, %243 : vector<16x96xf32>
    %c1_102 = arith.constant 1 : index
    %c0_103 = arith.constant 0 : index
    %c0_104 = arith.constant 0 : index
    %245 = vector.load %arg10[%c1_102, %c0_103, %c0_104] : memref<2x32x32xf32, #tpu.memory_space<vmem>>, vector<1x32x32xf32>
    %246 = vector.shape_cast %245 : vector<1x32x32xf32> to vector<32x32xf32>
    %cst_105 = arith.constant 0.000000e+00 : f32
    %247 = vector.broadcast %cst_105 : f32 to vector<16x32xf32>
    %248 = vector.extract_strided_slice %244 {offsets = [0, 0], sizes = [16, 8], strides = [1, 1]} : vector<16x96xf32> to vector<16x8xf32>
    %249 = vector.shape_cast %248 : vector<16x8xf32> to vector<2x8x8xf32>
    %250 = vector.extract_strided_slice %244 {offsets = [0, 32], sizes = [16, 8], strides = [1, 1]} : vector<16x96xf32> to vector<16x8xf32>
    %251 = vector.shape_cast %250 : vector<16x8xf32> to vector<2x8x8xf32>
    %252 = vector.extract_strided_slice %244 {offsets = [0, 64], sizes = [16, 8], strides = [1, 1]} : vector<16x96xf32> to vector<16x8xf32>
    %253 = vector.shape_cast %252 : vector<16x8xf32> to vector<2x8x8xf32>
    "tpu.trace_start"() <{level = 10 : i32, message = "bqd,bkd->bqk"}> : () -> ()
    %cst_106 = arith.constant dense<0.000000e+00> : vector<2x8x8xf32>
    %254 = tpu.matmul %249, %251, %cst_106 {dimension_numbers = #tpu.dot_dimension_numbers<[2], [2], [1], [1], [0, 0, 0, 1, 1, 1], [0], [0]>} : vector<2x8x8xf32>, vector<2x8x8xf32>, vector<2x8x8xf32> -> vector<2x8x8xf32>
    "tpu.trace_stop"() : () -> ()
    %cst_107 = arith.constant 0.353553385 : f32
    %255 = vector.broadcast %cst_107 : f32 to vector<2x8x8xf32>
    %256 = arith.mulf %254, %255 : vector<2x8x8xf32>
    %257 = vector.shape_cast %38 : vector<2x8xf32> to vector<2x1x8xf32>
    %258 = vector.broadcast %257 : vector<2x1x8xf32> to vector<2x8x8xf32>
    %259 = arith.addf %256, %258 : vector<2x8x8xf32>
    %cst_108 = arith.constant dense<0xFF800000> : vector<2x8xf32>
    %260 = vector.multi_reduction <maximumf>, %259, %cst_108 [2] : vector<2x8x8xf32> to vector<2x8xf32>
    %261 = vector.shape_cast %260 : vector<2x8xf32> to vector<2x8x1xf32>
    %262 = vector.broadcast %261 : vector<2x8x1xf32> to vector<2x8x8xf32>
    %263 = arith.subf %259, %262 : vector<2x8x8xf32>
    %264 = math.exp %263 : vector<2x8x8xf32>
    %cst_109 = arith.constant dense<0.000000e+00> : vector<2x8xf32>
    %265 = vector.multi_reduction <add>, %264, %cst_109 [2] : vector<2x8x8xf32> to vector<2x8xf32>
    %266 = vector.shape_cast %265 : vector<2x8xf32> to vector<2x8x1xf32>
    %267 = vector.broadcast %266 : vector<2x8x1xf32> to vector<2x8x8xf32>
    %268 = arith.divf %264, %267 : vector<2x8x8xf32>
    "tpu.trace_start"() <{level = 10 : i32, message = "bqk,bkd->bqd"}> : () -> ()
    %cst_110 = arith.constant dense<0.000000e+00> : vector<2x8x8xf32>
    %269 = tpu.matmul %268, %253, %cst_110 {dimension_numbers = #tpu.dot_dimension_numbers<[2], [1], [1], [2], [0, 0, 0, 1, 1, 2], [0], [0]>} : vector<2x8x8xf32>, vector<2x8x8xf32>, vector<2x8x8xf32> -> vector<2x8x8xf32>
    "tpu.trace_stop"() : () -> ()
    %270 = vector.shape_cast %269 : vector<2x8x8xf32> to vector<16x8xf32>
    %271 = vector.extract_strided_slice %246 {offsets = [0, 0], sizes = [8, 32], strides = [1, 1]} : vector<32x32xf32> to vector<8x32xf32>
    %cst_111 = arith.constant dense<0.000000e+00> : vector<16x32xf32>
    %272 = tpu.matmul %270, %271, %cst_111 {dimension_numbers = #tpu.dot_dimension_numbers<[1], [0], [0], [1], [0, 0, 1, 1], [], []>} : vector<16x8xf32>, vector<8x32xf32>, vector<16x32xf32> -> vector<16x32xf32>
    %273 = arith.addf %247, %272 : vector<16x32xf32>
    %274 = vector.extract_strided_slice %244 {offsets = [0, 8], sizes = [16, 8], strides = [1, 1]} : vector<16x96xf32> to vector<16x8xf32>
    %275 = vector.shape_cast %274 : vector<16x8xf32> to vector<2x8x8xf32>
    %276 = vector.extract_strided_slice %244 {offsets = [0, 40], sizes = [16, 8], strides = [1, 1]} : vector<16x96xf32> to vector<16x8xf32>
    %277 = vector.shape_cast %276 : vector<16x8xf32> to vector<2x8x8xf32>
    %278 = vector.extract_strided_slice %244 {offsets = [0, 72], sizes = [16, 8], strides = [1, 1]} : vector<16x96xf32> to vector<16x8xf32>
    %279 = vector.shape_cast %278 : vector<16x8xf32> to vector<2x8x8xf32>
    "tpu.trace_start"() <{level = 10 : i32, message = "bqd,bkd->bqk"}> : () -> ()
    %cst_112 = arith.constant dense<0.000000e+00> : vector<2x8x8xf32>
    %280 = tpu.matmul %275, %277, %cst_112 {dimension_numbers = #tpu.dot_dimension_numbers<[2], [2], [1], [1], [0, 0, 0, 1, 1, 1], [0], [0]>} : vector<2x8x8xf32>, vector<2x8x8xf32>, vector<2x8x8xf32> -> vector<2x8x8xf32>
    "tpu.trace_stop"() : () -> ()
    %cst_113 = arith.constant 0.353553385 : f32
    %281 = vector.broadcast %cst_113 : f32 to vector<2x8x8xf32>
    %282 = arith.mulf %280, %281 : vector<2x8x8xf32>
    %283 = vector.shape_cast %38 : vector<2x8xf32> to vector<2x1x8xf32>
    %284 = vector.broadcast %283 : vector<2x1x8xf32> to vector<2x8x8xf32>
    %285 = arith.addf %282, %284 : vector<2x8x8xf32>
    %cst_114 = arith.constant dense<0xFF800000> : vector<2x8xf32>
    %286 = vector.multi_reduction <maximumf>, %285, %cst_114 [2] : vector<2x8x8xf32> to vector<2x8xf32>
    %287 = vector.shape_cast %286 : vector<2x8xf32> to vector<2x8x1xf32>
    %288 = vector.broadcast %287 : vector<2x8x1xf32> to vector<2x8x8xf32>
    %289 = arith.subf %285, %288 : vector<2x8x8xf32>
    %290 = math.exp %289 : vector<2x8x8xf32>
    %cst_115 = arith.constant dense<0.000000e+00> : vector<2x8xf32>
    %291 = vector.multi_reduction <add>, %290, %cst_115 [2] : vector<2x8x8xf32> to vector<2x8xf32>
    %292 = vector.shape_cast %291 : vector<2x8xf32> to vector<2x8x1xf32>
    %293 = vector.broadcast %292 : vector<2x8x1xf32> to vector<2x8x8xf32>
    %294 = arith.divf %290, %293 : vector<2x8x8xf32>
    "tpu.trace_start"() <{level = 10 : i32, message = "bqk,bkd->bqd"}> : () -> ()
    %cst_116 = arith.constant dense<0.000000e+00> : vector<2x8x8xf32>
    %295 = tpu.matmul %294, %279, %cst_116 {dimension_numbers = #tpu.dot_dimension_numbers<[2], [1], [1], [2], [0, 0, 0, 1, 1, 2], [0], [0]>} : vector<2x8x8xf32>, vector<2x8x8xf32>, vector<2x8x8xf32> -> vector<2x8x8xf32>
    "tpu.trace_stop"() : () -> ()
    %296 = vector.shape_cast %295 : vector<2x8x8xf32> to vector<16x8xf32>
    %297 = vector.extract_strided_slice %246 {offsets = [8, 0], sizes = [8, 32], strides = [1, 1]} : vector<32x32xf32> to vector<8x32xf32>
    %cst_117 = arith.constant dense<0.000000e+00> : vector<16x32xf32>
    %298 = tpu.matmul %296, %297, %cst_117 {dimension_numbers = #tpu.dot_dimension_numbers<[1], [0], [0], [1], [0, 0, 1, 1], [], []>} : vector<16x8xf32>, vector<8x32xf32>, vector<16x32xf32> -> vector<16x32xf32>
    %299 = arith.addf %273, %298 : vector<16x32xf32>
    %300 = vector.extract_strided_slice %244 {offsets = [0, 16], sizes = [16, 8], strides = [1, 1]} : vector<16x96xf32> to vector<16x8xf32>
    %301 = vector.shape_cast %300 : vector<16x8xf32> to vector<2x8x8xf32>
    %302 = vector.extract_strided_slice %244 {offsets = [0, 48], sizes = [16, 8], strides = [1, 1]} : vector<16x96xf32> to vector<16x8xf32>
    %303 = vector.shape_cast %302 : vector<16x8xf32> to vector<2x8x8xf32>
    %304 = vector.extract_strided_slice %244 {offsets = [0, 80], sizes = [16, 8], strides = [1, 1]} : vector<16x96xf32> to vector<16x8xf32>
    %305 = vector.shape_cast %304 : vector<16x8xf32> to vector<2x8x8xf32>
    "tpu.trace_start"() <{level = 10 : i32, message = "bqd,bkd->bqk"}> : () -> ()
    %cst_118 = arith.constant dense<0.000000e+00> : vector<2x8x8xf32>
    %306 = tpu.matmul %301, %303, %cst_118 {dimension_numbers = #tpu.dot_dimension_numbers<[2], [2], [1], [1], [0, 0, 0, 1, 1, 1], [0], [0]>} : vector<2x8x8xf32>, vector<2x8x8xf32>, vector<2x8x8xf32> -> vector<2x8x8xf32>
    "tpu.trace_stop"() : () -> ()
    %cst_119 = arith.constant 0.353553385 : f32
    %307 = vector.broadcast %cst_119 : f32 to vector<2x8x8xf32>
    %308 = arith.mulf %306, %307 : vector<2x8x8xf32>
    %309 = vector.shape_cast %38 : vector<2x8xf32> to vector<2x1x8xf32>
    %310 = vector.broadcast %309 : vector<2x1x8xf32> to vector<2x8x8xf32>
    %311 = arith.addf %308, %310 : vector<2x8x8xf32>
    %cst_120 = arith.constant dense<0xFF800000> : vector<2x8xf32>
    %312 = vector.multi_reduction <maximumf>, %311, %cst_120 [2] : vector<2x8x8xf32> to vector<2x8xf32>
    %313 = vector.shape_cast %312 : vector<2x8xf32> to vector<2x8x1xf32>
    %314 = vector.broadcast %313 : vector<2x8x1xf32> to vector<2x8x8xf32>
    %315 = arith.subf %311, %314 : vector<2x8x8xf32>
    %316 = math.exp %315 : vector<2x8x8xf32>
    %cst_121 = arith.constant dense<0.000000e+00> : vector<2x8xf32>
    %317 = vector.multi_reduction <add>, %316, %cst_121 [2] : vector<2x8x8xf32> to vector<2x8xf32>
    %318 = vector.shape_cast %317 : vector<2x8xf32> to vector<2x8x1xf32>
    %319 = vector.broadcast %318 : vector<2x8x1xf32> to vector<2x8x8xf32>
    %320 = arith.divf %316, %319 : vector<2x8x8xf32>
    "tpu.trace_start"() <{level = 10 : i32, message = "bqk,bkd->bqd"}> : () -> ()
    %cst_122 = arith.constant dense<0.000000e+00> : vector<2x8x8xf32>
    %321 = tpu.matmul %320, %305, %cst_122 {dimension_numbers = #tpu.dot_dimension_numbers<[2], [1], [1], [2], [0, 0, 0, 1, 1, 2], [0], [0]>} : vector<2x8x8xf32>, vector<2x8x8xf32>, vector<2x8x8xf32> -> vector<2x8x8xf32>
    "tpu.trace_stop"() : () -> ()
    %322 = vector.shape_cast %321 : vector<2x8x8xf32> to vector<16x8xf32>
    %323 = vector.extract_strided_slice %246 {offsets = [16, 0], sizes = [8, 32], strides = [1, 1]} : vector<32x32xf32> to vector<8x32xf32>
    %cst_123 = arith.constant dense<0.000000e+00> : vector<16x32xf32>
    %324 = tpu.matmul %322, %323, %cst_123 {dimension_numbers = #tpu.dot_dimension_numbers<[1], [0], [0], [1], [0, 0, 1, 1], [], []>} : vector<16x8xf32>, vector<8x32xf32>, vector<16x32xf32> -> vector<16x32xf32>
    %325 = arith.addf %299, %324 : vector<16x32xf32>
    %326 = vector.extract_strided_slice %244 {offsets = [0, 24], sizes = [16, 8], strides = [1, 1]} : vector<16x96xf32> to vector<16x8xf32>
    %327 = vector.shape_cast %326 : vector<16x8xf32> to vector<2x8x8xf32>
    %328 = vector.extract_strided_slice %244 {offsets = [0, 56], sizes = [16, 8], strides = [1, 1]} : vector<16x96xf32> to vector<16x8xf32>
    %329 = vector.shape_cast %328 : vector<16x8xf32> to vector<2x8x8xf32>
    %330 = vector.extract_strided_slice %244 {offsets = [0, 88], sizes = [16, 8], strides = [1, 1]} : vector<16x96xf32> to vector<16x8xf32>
    %331 = vector.shape_cast %330 : vector<16x8xf32> to vector<2x8x8xf32>
    "tpu.trace_start"() <{level = 10 : i32, message = "bqd,bkd->bqk"}> : () -> ()
    %cst_124 = arith.constant dense<0.000000e+00> : vector<2x8x8xf32>
    %332 = tpu.matmul %327, %329, %cst_124 {dimension_numbers = #tpu.dot_dimension_numbers<[2], [2], [1], [1], [0, 0, 0, 1, 1, 1], [0], [0]>} : vector<2x8x8xf32>, vector<2x8x8xf32>, vector<2x8x8xf32> -> vector<2x8x8xf32>
    "tpu.trace_stop"() : () -> ()
    %cst_125 = arith.constant 0.353553385 : f32
    %333 = vector.broadcast %cst_125 : f32 to vector<2x8x8xf32>
    %334 = arith.mulf %332, %333 : vector<2x8x8xf32>
    %335 = vector.shape_cast %38 : vector<2x8xf32> to vector<2x1x8xf32>
    %336 = vector.broadcast %335 : vector<2x1x8xf32> to vector<2x8x8xf32>
    %337 = arith.addf %334, %336 : vector<2x8x8xf32>
    %cst_126 = arith.constant dense<0xFF800000> : vector<2x8xf32>
    %338 = vector.multi_reduction <maximumf>, %337, %cst_126 [2] : vector<2x8x8xf32> to vector<2x8xf32>
    %339 = vector.shape_cast %338 : vector<2x8xf32> to vector<2x8x1xf32>
    %340 = vector.broadcast %339 : vector<2x8x1xf32> to vector<2x8x8xf32>
    %341 = arith.subf %337, %340 : vector<2x8x8xf32>
    %342 = math.exp %341 : vector<2x8x8xf32>
    %cst_127 = arith.constant dense<0.000000e+00> : vector<2x8xf32>
    %343 = vector.multi_reduction <add>, %342, %cst_127 [2] : vector<2x8x8xf32> to vector<2x8xf32>
    %344 = vector.shape_cast %343 : vector<2x8xf32> to vector<2x8x1xf32>
    %345 = vector.broadcast %344 : vector<2x8x1xf32> to vector<2x8x8xf32>
    %346 = arith.divf %342, %345 : vector<2x8x8xf32>
    "tpu.trace_start"() <{level = 10 : i32, message = "bqk,bkd->bqd"}> : () -> ()
    %cst_128 = arith.constant dense<0.000000e+00> : vector<2x8x8xf32>
    %347 = tpu.matmul %346, %331, %cst_128 {dimension_numbers = #tpu.dot_dimension_numbers<[2], [1], [1], [2], [0, 0, 0, 1, 1, 2], [0], [0]>} : vector<2x8x8xf32>, vector<2x8x8xf32>, vector<2x8x8xf32> -> vector<2x8x8xf32>
    "tpu.trace_stop"() : () -> ()
    %348 = vector.shape_cast %347 : vector<2x8x8xf32> to vector<16x8xf32>
    %349 = vector.extract_strided_slice %246 {offsets = [24, 0], sizes = [8, 32], strides = [1, 1]} : vector<32x32xf32> to vector<8x32xf32>
    %cst_129 = arith.constant dense<0.000000e+00> : vector<16x32xf32>
    %350 = tpu.matmul %348, %349, %cst_129 {dimension_numbers = #tpu.dot_dimension_numbers<[1], [0], [0], [1], [0, 0, 1, 1], [], []>} : vector<16x8xf32>, vector<8x32xf32>, vector<16x32xf32> -> vector<16x32xf32>
    %351 = arith.addf %325, %350 : vector<16x32xf32>
    %c1_130 = arith.constant 1 : index
    %c0_131 = arith.constant 0 : index
    %c0_132 = arith.constant 0 : index
    %352 = vector.load %arg11[%c1_130, %c0_131, %c0_132] : memref<2x1x32xf32, #tpu.memory_space<vmem>>, vector<1x1x32xf32>
    %353 = vector.shape_cast %352 : vector<1x1x32xf32> to vector<1x32xf32>
    %354 = vector.broadcast %353 : vector<1x32xf32> to vector<16x32xf32>
    %355 = arith.addf %351, %354 : vector<16x32xf32>
    %356 = arith.addf %237, %355 : vector<16x32xf32>
    %c1_133 = arith.constant 1 : index
    %c0_134 = arith.constant 0 : index
    %c0_135 = arith.constant 0 : index
    %357 = vector.load %arg12[%c1_133, %c0_134, %c0_135] : memref<2x1x32xf32, #tpu.memory_space<vmem>>, vector<1x1x32xf32>
    %358 = vector.shape_cast %357 : vector<1x1x32xf32> to vector<1x32xf32>
    %c1_136 = arith.constant 1 : index
    %c0_137 = arith.constant 0 : index
    %c0_138 = arith.constant 0 : index
    %359 = vector.load %arg13[%c1_136, %c0_137, %c0_138] : memref<2x1x32xf32, #tpu.memory_space<vmem>>, vector<1x1x32xf32>
    %360 = vector.shape_cast %359 : vector<1x1x32xf32> to vector<1x32xf32>
    %cst_139 = arith.constant dense<0.000000e+00> : vector<16xf32>
    %361 = vector.multi_reduction <add>, %356, %cst_139 [1] : vector<16x32xf32> to vector<16xf32>
    %362 = vector.shape_cast %361 : vector<16xf32> to vector<16x1xf32>
    %cst_140 = arith.constant 3.200000e+01 : f32
    %363 = vector.broadcast %cst_140 : f32 to vector<16x1xf32>
    %364 = arith.divf %362, %363 : vector<16x1xf32>
    %365 = vector.broadcast %364 : vector<16x1xf32> to vector<16x32xf32>
    %366 = arith.subf %356, %365 : vector<16x32xf32>
    %367 = arith.mulf %366, %366 : vector<16x32xf32>
    %cst_141 = arith.constant dense<0.000000e+00> : vector<16xf32>
    %368 = vector.multi_reduction <add>, %367, %cst_141 [1] : vector<16x32xf32> to vector<16xf32>
    %369 = vector.shape_cast %368 : vector<16xf32> to vector<16x1xf32>
    %cst_142 = arith.constant 3.200000e+01 : f32
    %370 = vector.broadcast %cst_142 : f32 to vector<16x1xf32>
    %371 = arith.divf %369, %370 : vector<16x1xf32>
    %372 = vector.broadcast %364 : vector<16x1xf32> to vector<16x32xf32>
    %373 = arith.subf %356, %372 : vector<16x32xf32>
    %cst_143 = arith.constant 9.99999996E-13 : f32
    %374 = vector.broadcast %cst_143 : f32 to vector<16x1xf32>
    %375 = arith.addf %371, %374 : vector<16x1xf32>
    %376 = math.rsqrt %375 : vector<16x1xf32>
    %377 = vector.broadcast %376 : vector<16x1xf32> to vector<16x32xf32>
    %378 = arith.mulf %373, %377 : vector<16x32xf32>
    %379 = vector.broadcast %358 : vector<1x32xf32> to vector<16x32xf32>
    %380 = arith.mulf %378, %379 : vector<16x32xf32>
    %381 = vector.broadcast %360 : vector<1x32xf32> to vector<16x32xf32>
    %382 = arith.addf %380, %381 : vector<16x32xf32>
    %c1_144 = arith.constant 1 : index
    %c0_145 = arith.constant 0 : index
    %c0_146 = arith.constant 0 : index
    %383 = vector.load %arg14[%c1_144, %c0_145, %c0_146] : memref<2x32x128xf32, #tpu.memory_space<vmem>>, vector<1x32x128xf32>
    %384 = vector.shape_cast %383 : vector<1x32x128xf32> to vector<32x128xf32>
    %cst_147 = arith.constant dense<0.000000e+00> : vector<16x128xf32>
    %385 = tpu.matmul %382, %384, %cst_147 {dimension_numbers = #tpu.dot_dimension_numbers<[1], [0], [0], [1], [0, 0, 1, 1], [], []>} : vector<16x32xf32>, vector<32x128xf32>, vector<16x128xf32> -> vector<16x128xf32>
    %c1_148 = arith.constant 1 : index
    %c0_149 = arith.constant 0 : index
    %c0_150 = arith.constant 0 : index
    %386 = vector.load %arg15[%c1_148, %c0_149, %c0_150] : memref<2x1x128xf32, #tpu.memory_space<vmem>>, vector<1x1x128xf32>
    %387 = vector.shape_cast %386 : vector<1x1x128xf32> to vector<1x128xf32>
    %388 = vector.broadcast %387 : vector<1x128xf32> to vector<16x128xf32>
    %389 = arith.addf %385, %388 : vector<16x128xf32>
    %cst_151 = arith.constant 5.000000e-01 : f32
    %390 = vector.broadcast %cst_151 : f32 to vector<16x128xf32>
    %391 = arith.mulf %390, %389 : vector<16x128xf32>
    %cst_152 = arith.constant 4.471500e-02 : f32
    %392 = vector.broadcast %cst_152 : f32 to vector<16x128xf32>
    %393 = arith.mulf %392, %389 : vector<16x128xf32>
    %394 = arith.mulf %393, %389 : vector<16x128xf32>
    %395 = arith.mulf %394, %389 : vector<16x128xf32>
    %396 = arith.addf %389, %395 : vector<16x128xf32>
    %cst_153 = arith.constant 0.797884583 : f32
    %397 = vector.broadcast %cst_153 : f32 to vector<16x128xf32>
    %398 = arith.mulf %397, %396 : vector<16x128xf32>
    %399 = math.tanh %398 : vector<16x128xf32>
    %cst_154 = arith.constant 1.000000e+00 : f32
    %400 = vector.broadcast %cst_154 : f32 to vector<16x128xf32>
    %401 = arith.addf %400, %399 : vector<16x128xf32>
    %402 = arith.mulf %391, %401 : vector<16x128xf32>
    %c1_155 = arith.constant 1 : index
    %c0_156 = arith.constant 0 : index
    %c0_157 = arith.constant 0 : index
    %403 = vector.load %arg16[%c1_155, %c0_156, %c0_157] : memref<2x128x32xf32, #tpu.memory_space<vmem>>, vector<1x128x32xf32>
    %404 = vector.shape_cast %403 : vector<1x128x32xf32> to vector<128x32xf32>
    %cst_158 = arith.constant dense<0.000000e+00> : vector<16x32xf32>
    %405 = tpu.matmul %402, %404, %cst_158 {dimension_numbers = #tpu.dot_dimension_numbers<[1], [0], [0], [1], [0, 0, 1, 1], [], []>} : vector<16x128xf32>, vector<128x32xf32>, vector<16x32xf32> -> vector<16x32xf32>
    %c1_159 = arith.constant 1 : index
    %c0_160 = arith.constant 0 : index
    %c0_161 = arith.constant 0 : index
    %406 = vector.load %arg17[%c1_159, %c0_160, %c0_161] : memref<2x1x32xf32, #tpu.memory_space<vmem>>, vector<1x1x32xf32>
    %407 = vector.shape_cast %406 : vector<1x1x32xf32> to vector<1x32xf32>
    %408 = vector.broadcast %407 : vector<1x32xf32> to vector<16x32xf32>
    %409 = arith.addf %405, %408 : vector<16x32xf32>
    %410 = arith.addf %382, %409 : vector<16x32xf32>
    %c1_162 = arith.constant 1 : index
    %c0_163 = arith.constant 0 : index
    %c0_164 = arith.constant 0 : index
    %411 = vector.load %arg18[%c1_162, %c0_163, %c0_164] : memref<2x1x32xf32, #tpu.memory_space<vmem>>, vector<1x1x32xf32>
    %412 = vector.shape_cast %411 : vector<1x1x32xf32> to vector<1x32xf32>
    %c1_165 = arith.constant 1 : index
    %c0_166 = arith.constant 0 : index
    %c0_167 = arith.constant 0 : index
    %413 = vector.load %arg19[%c1_165, %c0_166, %c0_167] : memref<2x1x32xf32, #tpu.memory_space<vmem>>, vector<1x1x32xf32>
    %414 = vector.shape_cast %413 : vector<1x1x32xf32> to vector<1x32xf32>
    %cst_168 = arith.constant dense<0.000000e+00> : vector<16xf32>
    %415 = vector.multi_reduction <add>, %410, %cst_168 [1] : vector<16x32xf32> to vector<16xf32>
    %416 = vector.shape_cast %415 : vector<16xf32> to vector<16x1xf32>
    %cst_169 = arith.constant 3.200000e+01 : f32
    %417 = vector.broadcast %cst_169 : f32 to vector<16x1xf32>
    %418 = arith.divf %416, %417 : vector<16x1xf32>
    %419 = vector.broadcast %418 : vector<16x1xf32> to vector<16x32xf32>
    %420 = arith.subf %410, %419 : vector<16x32xf32>
    %421 = arith.mulf %420, %420 : vector<16x32xf32>
    %cst_170 = arith.constant dense<0.000000e+00> : vector<16xf32>
    %422 = vector.multi_reduction <add>, %421, %cst_170 [1] : vector<16x32xf32> to vector<16xf32>
    %423 = vector.shape_cast %422 : vector<16xf32> to vector<16x1xf32>
    %cst_171 = arith.constant 3.200000e+01 : f32
    %424 = vector.broadcast %cst_171 : f32 to vector<16x1xf32>
    %425 = arith.divf %423, %424 : vector<16x1xf32>
    %426 = vector.broadcast %418 : vector<16x1xf32> to vector<16x32xf32>
    %427 = arith.subf %410, %426 : vector<16x32xf32>
    %cst_172 = arith.constant 9.99999996E-13 : f32
    %428 = vector.broadcast %cst_172 : f32 to vector<16x1xf32>
    %429 = arith.addf %425, %428 : vector<16x1xf32>
    %430 = math.rsqrt %429 : vector<16x1xf32>
    %431 = vector.broadcast %430 : vector<16x1xf32> to vector<16x32xf32>
    %432 = arith.mulf %427, %431 : vector<16x32xf32>
    %433 = vector.broadcast %412 : vector<1x32xf32> to vector<16x32xf32>
    %434 = arith.mulf %432, %433 : vector<16x32xf32>
    %435 = vector.broadcast %414 : vector<1x32xf32> to vector<16x32xf32>
    %436 = arith.addf %434, %435 : vector<16x32xf32>
    %c0_173 = arith.constant 0 : index
    %c0_174 = arith.constant 0 : index
    %437 = memref.load %arg2[%c0_173, %c0_174] : memref<2x5xi32, #tpu.memory_space<smem>>
    %c0_175 = arith.constant 0 : index
    %c1_176 = arith.constant 1 : index
    %438 = memref.load %arg2[%c0_175, %c1_176] : memref<2x5xi32, #tpu.memory_space<smem>>
    %c0_177 = arith.constant 0 : index
    %c2 = arith.constant 2 : index
    %439 = memref.load %arg2[%c0_177, %c2] : memref<2x5xi32, #tpu.memory_space<smem>>
    %c0_178 = arith.constant 0 : index
    %c3 = arith.constant 3 : index
    %440 = memref.load %arg2[%c0_178, %c3] : memref<2x5xi32, #tpu.memory_space<smem>>
    %c0_179 = arith.constant 0 : index
    %c4 = arith.constant 4 : index
    %441 = memref.load %arg2[%c0_179, %c4] : memref<2x5xi32, #tpu.memory_space<smem>>
    %442 = vector.extract_strided_slice %436 {offsets = [0, 0], sizes = [8, 32], strides = [1, 1]} : vector<16x32xf32> to vector<8x32xf32>
    %443 = tpu.iota {dimensions = array<i32: 0>} : vector<8x1xi32>
    %444 = vector.broadcast %437 : i32 to vector<8x1xi32>
    %445 = arith.cmpi sge, %443, %444 : vector<8x1xi32>
    %446 = vector.broadcast %438 : i32 to vector<8x1xi32>
    %447 = arith.cmpi slt, %443, %446 : vector<8x1xi32>
    %448 = arith.andi %445, %447 : vector<8x1xi1>
    %449 = arith.extui %448 : vector<8x1xi1> to vector<8x1xi32>
    %450 = arith.sitofp %449 : vector<8x1xi32> to vector<8x1xf32>
    %451 = vector.broadcast %439 : i32 to vector<8x1xi32>
    %452 = arith.cmpi sge, %443, %451 : vector<8x1xi32>
    %453 = vector.broadcast %440 : i32 to vector<8x1xi32>
    %454 = arith.cmpi slt, %443, %453 : vector<8x1xi32>
    %455 = arith.andi %452, %454 : vector<8x1xi1>
    %456 = arith.extui %455 : vector<8x1xi1> to vector<8x1xi32>
    %457 = arith.sitofp %456 : vector<8x1xi32> to vector<8x1xf32>
    %458 = vector.broadcast %441 : i32 to vector<8x1xi32>
    %459 = arith.cmpi eq, %443, %458 : vector<8x1xi32>
    %460 = arith.extui %459 : vector<8x1xi1> to vector<8x1xi32>
    %461 = arith.sitofp %460 : vector<8x1xi32> to vector<8x1xf32>
    %cst_180 = arith.constant dense<0.000000e+00> : vector<1xf32>
    %462 = vector.multi_reduction <add>, %450, %cst_180 [0] : vector<8x1xf32> to vector<1xf32>
    %463 = vector.shape_cast %462 : vector<1xf32> to vector<1x1xf32>
    %cst_181 = arith.constant 1.000000e+00 : f32
    %464 = vector.broadcast %cst_181 : f32 to vector<1x1xf32>
    %465 = arith.maximumf %463, %464 : vector<1x1xf32>
    %cst_182 = arith.constant dense<0.000000e+00> : vector<1xf32>
    %466 = vector.multi_reduction <add>, %457, %cst_182 [0] : vector<8x1xf32> to vector<1xf32>
    %467 = vector.shape_cast %466 : vector<1xf32> to vector<1x1xf32>
    %cst_183 = arith.constant 1.000000e+00 : f32
    %468 = vector.broadcast %cst_183 : f32 to vector<1x1xf32>
    %469 = arith.maximumf %467, %468 : vector<1x1xf32>
    %470 = vector.broadcast %450 : vector<8x1xf32> to vector<8x32xf32>
    %471 = arith.mulf %442, %470 : vector<8x32xf32>
    %cst_184 = arith.constant dense<0.000000e+00> : vector<32xf32>
    %472 = vector.multi_reduction <add>, %471, %cst_184 [0] : vector<8x32xf32> to vector<32xf32>
    %473 = vector.shape_cast %472 : vector<32xf32> to vector<1x32xf32>
    %474 = vector.broadcast %465 : vector<1x1xf32> to vector<1x32xf32>
    %475 = arith.divf %473, %474 : vector<1x32xf32>
    %476 = vector.broadcast %457 : vector<8x1xf32> to vector<8x32xf32>
    %477 = arith.mulf %442, %476 : vector<8x32xf32>
    %cst_185 = arith.constant dense<0.000000e+00> : vector<32xf32>
    %478 = vector.multi_reduction <add>, %477, %cst_185 [0] : vector<8x32xf32> to vector<32xf32>
    %479 = vector.shape_cast %478 : vector<32xf32> to vector<1x32xf32>
    %480 = vector.broadcast %469 : vector<1x1xf32> to vector<1x32xf32>
    %481 = arith.divf %479, %480 : vector<1x32xf32>
    %482 = vector.broadcast %461 : vector<8x1xf32> to vector<8x32xf32>
    %483 = arith.mulf %442, %482 : vector<8x32xf32>
    %cst_186 = arith.constant dense<0.000000e+00> : vector<32xf32>
    %484 = vector.multi_reduction <add>, %483, %cst_186 [0] : vector<8x32xf32> to vector<32xf32>
    %485 = vector.shape_cast %484 : vector<32xf32> to vector<1x32xf32>
    %c0_187 = arith.constant 0 : index
    %c0_188 = arith.constant 0 : index
    %486 = vector.load %arg20[%c0_187, %c0_188] : memref<96x64xf32, #tpu.memory_space<vmem>>, vector<32x64xf32>
    %cst_189 = arith.constant dense<0.000000e+00> : vector<1x64xf32>
    %487 = tpu.matmul %475, %486, %cst_189 {dimension_numbers = #tpu.dot_dimension_numbers<[1], [0], [0], [1], [0, 0, 1, 1], [], []>} : vector<1x32xf32>, vector<32x64xf32>, vector<1x64xf32> -> vector<1x64xf32>
    %c32 = arith.constant 32 : index
    %c0_190 = arith.constant 0 : index
    %488 = vector.load %arg20[%c32, %c0_190] : memref<96x64xf32, #tpu.memory_space<vmem>>, vector<32x64xf32>
    %cst_191 = arith.constant dense<0.000000e+00> : vector<1x64xf32>
    %489 = tpu.matmul %481, %488, %cst_191 {dimension_numbers = #tpu.dot_dimension_numbers<[1], [0], [0], [1], [0, 0, 1, 1], [], []>} : vector<1x32xf32>, vector<32x64xf32>, vector<1x64xf32> -> vector<1x64xf32>
    %490 = arith.addf %487, %489 : vector<1x64xf32>
    %c64 = arith.constant 64 : index
    %c0_192 = arith.constant 0 : index
    %491 = vector.load %arg20[%c64, %c0_192] : memref<96x64xf32, #tpu.memory_space<vmem>>, vector<32x64xf32>
    %cst_193 = arith.constant dense<0.000000e+00> : vector<1x64xf32>
    %492 = tpu.matmul %485, %491, %cst_193 {dimension_numbers = #tpu.dot_dimension_numbers<[1], [0], [0], [1], [0, 0, 1, 1], [], []>} : vector<1x32xf32>, vector<32x64xf32>, vector<1x64xf32> -> vector<1x64xf32>
    %493 = arith.addf %490, %492 : vector<1x64xf32>
    %c1_194 = arith.constant 1 : index
    %c0_195 = arith.constant 0 : index
    %494 = memref.load %arg2[%c1_194, %c0_195] : memref<2x5xi32, #tpu.memory_space<smem>>
    %c1_196 = arith.constant 1 : index
    %c1_197 = arith.constant 1 : index
    %495 = memref.load %arg2[%c1_196, %c1_197] : memref<2x5xi32, #tpu.memory_space<smem>>
    %c1_198 = arith.constant 1 : index
    %c2_199 = arith.constant 2 : index
    %496 = memref.load %arg2[%c1_198, %c2_199] : memref<2x5xi32, #tpu.memory_space<smem>>
    %c1_200 = arith.constant 1 : index
    %c3_201 = arith.constant 3 : index
    %497 = memref.load %arg2[%c1_200, %c3_201] : memref<2x5xi32, #tpu.memory_space<smem>>
    %c1_202 = arith.constant 1 : index
    %c4_203 = arith.constant 4 : index
    %498 = memref.load %arg2[%c1_202, %c4_203] : memref<2x5xi32, #tpu.memory_space<smem>>
    %499 = vector.extract_strided_slice %436 {offsets = [8, 0], sizes = [8, 32], strides = [1, 1]} : vector<16x32xf32> to vector<8x32xf32>
    %500 = tpu.iota {dimensions = array<i32: 0>} : vector<8x1xi32>
    %501 = vector.broadcast %494 : i32 to vector<8x1xi32>
    %502 = arith.cmpi sge, %500, %501 : vector<8x1xi32>
    %503 = vector.broadcast %495 : i32 to vector<8x1xi32>
    %504 = arith.cmpi slt, %500, %503 : vector<8x1xi32>
    %505 = arith.andi %502, %504 : vector<8x1xi1>
    %506 = arith.extui %505 : vector<8x1xi1> to vector<8x1xi32>
    %507 = arith.sitofp %506 : vector<8x1xi32> to vector<8x1xf32>
    %508 = vector.broadcast %496 : i32 to vector<8x1xi32>
    %509 = arith.cmpi sge, %500, %508 : vector<8x1xi32>
    %510 = vector.broadcast %497 : i32 to vector<8x1xi32>
    %511 = arith.cmpi slt, %500, %510 : vector<8x1xi32>
    %512 = arith.andi %509, %511 : vector<8x1xi1>
    %513 = arith.extui %512 : vector<8x1xi1> to vector<8x1xi32>
    %514 = arith.sitofp %513 : vector<8x1xi32> to vector<8x1xf32>
    %515 = vector.broadcast %498 : i32 to vector<8x1xi32>
    %516 = arith.cmpi eq, %500, %515 : vector<8x1xi32>
    %517 = arith.extui %516 : vector<8x1xi1> to vector<8x1xi32>
    %518 = arith.sitofp %517 : vector<8x1xi32> to vector<8x1xf32>
    %cst_204 = arith.constant dense<0.000000e+00> : vector<1xf32>
    %519 = vector.multi_reduction <add>, %507, %cst_204 [0] : vector<8x1xf32> to vector<1xf32>
    %520 = vector.shape_cast %519 : vector<1xf32> to vector<1x1xf32>
    %cst_205 = arith.constant 1.000000e+00 : f32
    %521 = vector.broadcast %cst_205 : f32 to vector<1x1xf32>
    %522 = arith.maximumf %520, %521 : vector<1x1xf32>
    %cst_206 = arith.constant dense<0.000000e+00> : vector<1xf32>
    %523 = vector.multi_reduction <add>, %514, %cst_206 [0] : vector<8x1xf32> to vector<1xf32>
    %524 = vector.shape_cast %523 : vector<1xf32> to vector<1x1xf32>
    %cst_207 = arith.constant 1.000000e+00 : f32
    %525 = vector.broadcast %cst_207 : f32 to vector<1x1xf32>
    %526 = arith.maximumf %524, %525 : vector<1x1xf32>
    %527 = vector.broadcast %507 : vector<8x1xf32> to vector<8x32xf32>
    %528 = arith.mulf %499, %527 : vector<8x32xf32>
    %cst_208 = arith.constant dense<0.000000e+00> : vector<32xf32>
    %529 = vector.multi_reduction <add>, %528, %cst_208 [0] : vector<8x32xf32> to vector<32xf32>
    %530 = vector.shape_cast %529 : vector<32xf32> to vector<1x32xf32>
    %531 = vector.broadcast %522 : vector<1x1xf32> to vector<1x32xf32>
    %532 = arith.divf %530, %531 : vector<1x32xf32>
    %533 = vector.broadcast %514 : vector<8x1xf32> to vector<8x32xf32>
    %534 = arith.mulf %499, %533 : vector<8x32xf32>
    %cst_209 = arith.constant dense<0.000000e+00> : vector<32xf32>
    %535 = vector.multi_reduction <add>, %534, %cst_209 [0] : vector<8x32xf32> to vector<32xf32>
    %536 = vector.shape_cast %535 : vector<32xf32> to vector<1x32xf32>
    %537 = vector.broadcast %526 : vector<1x1xf32> to vector<1x32xf32>
    %538 = arith.divf %536, %537 : vector<1x32xf32>
    %539 = vector.broadcast %518 : vector<8x1xf32> to vector<8x32xf32>
    %540 = arith.mulf %499, %539 : vector<8x32xf32>
    %cst_210 = arith.constant dense<0.000000e+00> : vector<32xf32>
    %541 = vector.multi_reduction <add>, %540, %cst_210 [0] : vector<8x32xf32> to vector<32xf32>
    %542 = vector.shape_cast %541 : vector<32xf32> to vector<1x32xf32>
    %c0_211 = arith.constant 0 : index
    %c0_212 = arith.constant 0 : index
    %543 = vector.load %arg20[%c0_211, %c0_212] : memref<96x64xf32, #tpu.memory_space<vmem>>, vector<32x64xf32>
    %cst_213 = arith.constant dense<0.000000e+00> : vector<1x64xf32>
    %544 = tpu.matmul %532, %543, %cst_213 {dimension_numbers = #tpu.dot_dimension_numbers<[1], [0], [0], [1], [0, 0, 1, 1], [], []>} : vector<1x32xf32>, vector<32x64xf32>, vector<1x64xf32> -> vector<1x64xf32>
    %c32_214 = arith.constant 32 : index
    %c0_215 = arith.constant 0 : index
    %545 = vector.load %arg20[%c32_214, %c0_215] : memref<96x64xf32, #tpu.memory_space<vmem>>, vector<32x64xf32>
    %cst_216 = arith.constant dense<0.000000e+00> : vector<1x64xf32>
    %546 = tpu.matmul %538, %545, %cst_216 {dimension_numbers = #tpu.dot_dimension_numbers<[1], [0], [0], [1], [0, 0, 1, 1], [], []>} : vector<1x32xf32>, vector<32x64xf32>, vector<1x64xf32> -> vector<1x64xf32>
    %547 = arith.addf %544, %546 : vector<1x64xf32>
    %c64_217 = arith.constant 64 : index
    %c0_218 = arith.constant 0 : index
    %548 = vector.load %arg20[%c64_217, %c0_218] : memref<96x64xf32, #tpu.memory_space<vmem>>, vector<32x64xf32>
    %cst_219 = arith.constant dense<0.000000e+00> : vector<1x64xf32>
    %549 = tpu.matmul %542, %548, %cst_219 {dimension_numbers = #tpu.dot_dimension_numbers<[1], [0], [0], [1], [0, 0, 1, 1], [], []>} : vector<1x32xf32>, vector<32x64xf32>, vector<1x64xf32> -> vector<1x64xf32>
    %550 = arith.addf %547, %549 : vector<1x64xf32>
    %551 = tpu.concatenate %493, %550 in 0 : vector<1x64xf32>, vector<1x64xf32> -> vector<2x64xf32>
    %c0_220 = arith.constant 0 : index
    %c0_221 = arith.constant 0 : index
    %552 = vector.load %arg21[%c0_220, %c0_221] : memref<1x64xf32, #tpu.memory_space<vmem>>, vector<1x64xf32>
    %553 = vector.broadcast %552 : vector<1x64xf32> to vector<2x64xf32>
    %554 = arith.addf %551, %553 : vector<2x64xf32>
    %c0_222 = arith.constant 0 : index
    %c0_223 = arith.constant 0 : index
    %555 = vector.load %arg24[%c0_222, %c0_223] : memref<1x64xf32, #tpu.memory_space<vmem>>, vector<1x64xf32>
    %556 = vector.broadcast %555 : vector<1x64xf32> to vector<2x64xf32>
    %557 = arith.subf %554, %556 : vector<2x64xf32>
    %c0_224 = arith.constant 0 : index
    %c0_225 = arith.constant 0 : index
    %558 = vector.load %arg25[%c0_224, %c0_225] : memref<1x64xf32, #tpu.memory_space<vmem>>, vector<1x64xf32>
    %cst_226 = arith.constant 9.99999974E-6 : f32
    %559 = vector.broadcast %cst_226 : f32 to vector<1x64xf32>
    %560 = arith.addf %558, %559 : vector<1x64xf32>
    %561 = math.rsqrt %560 : vector<1x64xf32>
    %562 = vector.broadcast %561 : vector<1x64xf32> to vector<2x64xf32>
    %563 = arith.mulf %557, %562 : vector<2x64xf32>
    %c0_227 = arith.constant 0 : index
    %c0_228 = arith.constant 0 : index
    %564 = vector.load %arg22[%c0_227, %c0_228] : memref<1x64xf32, #tpu.memory_space<vmem>>, vector<1x64xf32>
    %565 = vector.broadcast %564 : vector<1x64xf32> to vector<2x64xf32>
    %566 = arith.mulf %563, %565 : vector<2x64xf32>
    %c0_229 = arith.constant 0 : index
    %c0_230 = arith.constant 0 : index
    %567 = vector.load %arg23[%c0_229, %c0_230] : memref<1x64xf32, #tpu.memory_space<vmem>>, vector<1x64xf32>
    %568 = vector.broadcast %567 : vector<1x64xf32> to vector<2x64xf32>
    %569 = arith.addf %566, %568 : vector<2x64xf32>
    %cst_231 = arith.constant 0.000000e+00 : f32
    %570 = vector.broadcast %cst_231 : f32 to vector<2x64xf32>
    %571 = arith.cmpf oge, %569, %570 : vector<2x64xf32>
    %cst_232 = arith.constant 0.00999999977 : f32
    %572 = vector.broadcast %cst_232 : f32 to vector<2x64xf32>
    %573 = arith.mulf %572, %569 : vector<2x64xf32>
    %574 = arith.select %571, %569, %573 : vector<2x64xi1>, vector<2x64xf32>
    %c0_233 = arith.constant 0 : index
    %c0_234 = arith.constant 0 : index
    %575 = vector.load %arg26[%c0_233, %c0_234] : memref<64x128xf32, #tpu.memory_space<vmem>>, vector<64x128xf32>
    %cst_235 = arith.constant dense<0.000000e+00> : vector<2x128xf32>
    %576 = tpu.matmul %574, %575, %cst_235 {dimension_numbers = #tpu.dot_dimension_numbers<[1], [0], [0], [1], [0, 0, 1, 1], [], []>} : vector<2x64xf32>, vector<64x128xf32>, vector<2x128xf32> -> vector<2x128xf32>
    %c0_236 = arith.constant 0 : index
    %c0_237 = arith.constant 0 : index
    %577 = vector.load %arg27[%c0_236, %c0_237] : memref<1x128xf32, #tpu.memory_space<vmem>>, vector<1x128xf32>
    %578 = vector.broadcast %577 : vector<1x128xf32> to vector<2x128xf32>
    %579 = arith.addf %576, %578 : vector<2x128xf32>
    %c0_238 = arith.constant 0 : index
    %c0_239 = arith.constant 0 : index
    %580 = vector.load %arg28[%c0_238, %c0_239] : memref<2x128xf32, #tpu.memory_space<vmem>>, vector<2x128xf32>
    tpu.vector_store %arg28[%c0_238, %c0_239], %579 {strides = array<i32>} : memref<2x128xf32, #tpu.memory_space<vmem>>, vector<2x128xf32>,
    return
  }
}

</mosaic_0001>

<bundles_post_ra>
// kernel: tpu_custom_call.1
= control target key start
LH: loop header
LB: loop body
LE: loop exit
PB: predicated region body
PF: predicated region fallthrough
CT: control target
= control target key end

     0   :  { %s7318_s0 = inlined_call_operand.vmem [shape: s32[16,1], index: 0, kind: input, shape index: {}]   ;;  %s7319_s1 = inlined_call_operand.vmem [shape: f32[2,8], index: 1, kind: input, shape index: {}]   ;;  %s7320_s2 = inlined_call_operand.vmem [shape: s32[2,5], index: 2, kind: input, shape index: {}]   ;;  %s7321_s3 = inlined_call_operand.vmem [shape: f32[64,32], index: 3, kind: input, shape index: {}]   ;;  %s7322_s4 = inlined_call_operand.vmem [shape: f32[8,32], index: 4, kind: input, shape index: {}]   ;;  %s7323_s5 = inlined_call_operand.vmem [shape: f32[1,32], index: 5, kind: input, shape index: {}]   ;;  %s7324_s6 = inlined_call_operand.vmem [shape: f32[1,32], index: 6, kind: input, shape index: {}]   ;;  %s7325_s7 = inlined_call_operand.vmem [shape: f32[1,32], index: 7, kind: input, shape index: {}]   ;;  %s7326_s8 = inlined_call_operand.vmem [shape: f32[2,32,96], index: 8, kind: input, shape index: {}]   ;;  %s7327_s9 = inlined_call_operand.vmem [shape: f32[2,1,96], index: 9, kind: input, shape index: {}]   ;;  %s7328_s10 = inlined_call_operand.vmem [shape: f32[2,32,32], index: 10, kind: input, shape index: {}]   ;;  %s7329_s11 = inlined_call_operand.vmem [shape: f32[2,1,32], index: 11, kind: input, shape index: {}]   ;;  %s7330_s12 = inlined_call_operand.vmem [shape: f32[2,1,32], index: 12, kind: input, shape index: {}]   ;;  %s7331_s13 = inlined_call_operand.vmem [shape: f32[2,1,32], index: 13, kind: input, shape index: {}]   ;;  %s7332_s14 = inlined_call_operand.vmem [shape: f32[2,32,128], index: 14, kind: input, shape index: {}]   ;;  %s7333_s15 = inlined_call_operand.vmem [shape: f32[2,1,128], index: 15, kind: input, shape index: {}]   ;;  %s7334_s16 = inlined_call_operand.vmem [shape: f32[2,128,32], index: 16, kind: input, shape index: {}]   ;;  %s7335_s17 = inlined_call_operand.vmem [shape: f32[2,1,32], index: 17, kind: input, shape index: {}]   ;;  %s7336_s18 = inlined_call_operand.vmem [shape: f32[2,1,32], index: 18, kind: input, shape index: {}]   ;;  %s7337_s19 = inlined_call_operand.vmem [shape: f32[2,1,32], index: 19, kind: input, shape index: {}]   ;;  %s7338_s20 = inlined_call_operand.vmem [shape: f32[96,64], index: 20, kind: input, shape index: {}]   ;;  %s7339_s21 = inlined_call_operand.vmem [shape: f32[1,64], index: 21, kind: input, shape index: {}]   ;;  %s7340_s22 = inlined_call_operand.vmem [shape: f32[1,64], index: 22, kind: input, shape index: {}]   ;;  %s7341_s23 = inlined_call_operand.vmem [shape: f32[1,64], index: 23, kind: input, shape index: {}]   ;;  %s7342_s24 = inlined_call_operand.vmem [shape: f32[1,64], index: 24, kind: input, shape index: {}]   ;;  %s7343_s25 = inlined_call_operand.vmem [shape: f32[1,64], index: 25, kind: input, shape index: {}]   ;;  %s7344_s26 = inlined_call_operand.vmem [shape: f32[64,128], index: 26, kind: input, shape index: {}]   ;;  %s7345_s27 = inlined_call_operand.vmem [shape: f32[1,128], index: 27, kind: input, shape index: {}]   ;;  %s7346_s28 = inlined_call_operand.hbm [shape: f32[2,128], index: 28, kind: output, shape index: {}]  }
   0x1   :  { %7376 = sst [smem:[#allocation8_spill]] %s7318_s0 }
   0x2   :  { %7377 = sst [smem:[#allocation9_spill]] %s7319_s1 }
   0x3   :  { %7378 = sst [smem:[#allocation10_spill]] %s7320_s2 }
   0x4   :  { %7379 = sst [smem:[#allocation11_spill]] %s7321_s3 }
   0x5   :  { %7380 = sst [smem:[#allocation12_spill]] %s7322_s4 }
   0x6   :  { %7381 = sst [smem:[#allocation13_spill]] %s7323_s5 }
   0x7   :  { %7382 = sst [smem:[#allocation14_spill]] %s7324_s6 }
   0x8   :  { %7383 = sst [smem:[#allocation15_spill]] %s7325_s7 }
   0x9   :  { %7384 = sst [smem:[#allocation16_spill]] %s7326_s8 }
   0xa   :  { %7385 = sst [smem:[#allocation17_spill]] %s7327_s9 }
   0xb   :  { %7386 = sst [smem:[#allocation18_spill]] %s7328_s10 }
   0xc   :  { %7387 = sst [smem:[#allocation19_spill]] %s7329_s11 }
   0xd   :  { %7388 = sst [smem:[#allocation20_spill]] %s7330_s12 }
   0xe   :  { %33 = vsyncpa [#allocation4], 0 }
   0xf   :  { %34 = vsyncpa [#allocation3], 0  ;;  %s7389_s9 = sld [smem:[#allocation10_spill]] }
  0x15   :  { %s45_s30 = sshll.u32 %s7389_s9, 4  ;;  %s46_s30 = int_to_ptr.vmem [resolvable:$true] %s45_s30 }
  0x16   :  { %s6259_s3 = scalar_lea.vmem %s46_s30, 32  ;;  %p6264_p1 = scmp.lt.s32.totalorder %s46_s30, %s46_s30 }
  0x17   :  { %p6260_p0 = scmp.ne.s32.totalorder %s46_s30, %s6259_s3  ;;  %p6265_p2 = scmp.lt.s32.totalorder %s6259_s3, %s6259_s3 }
  0x19   :  { %p6266_p3 = por %p6265_p2, %p6264_p1 }
  0x1b   :  { %p6267_p4 = pnand %p6266_p3, %p6260_p0 }
  0x1d   :  { %6270 = shalt.err (!%p6267_p4)
}
  0x1e   :  { %s6297_s6 = smov [#allocation2]  }
  0x1f   :  { %48 = dma.vmem_to_smem %s46_s30, 32, %s6297_s6, [#allocation4]  }
  0x20   :  { %6293 = dma.done.wait [#allocation4], 32  }
  0x21   :  { %6294 = vsyncadd [#allocation4], 4294967264 }
  0x22   :  { %102 = sfence }
  0x23   :  { %s7390_s11 = sld [smem:[#allocation8_spill]]  ;;  %s7391_s7 = sld [smem:[#allocation11_spill]]  ;;  %v6298_v2 = vmov 0   ;;  %v6299_v15 = vmov 0.0   ;;  %v105_v16 = vlaneseq  ;;  %vm128_vm0 = vcmask 523264  }
  0x24   :  { %6156 = vset.pattern.permute.xlu0 %v6298_v2  ;;  %s7392_s8 = sld [smem:[#allocation12_spill]]  ;;  %s7393_s30 = sld [smem:[#allocation13_spill]]  ;;  %vm221_vm3 = vcmask 261120   ;;  %vm6300_vm4 = vmmov 0   ;;  %vm365_vm5 = vcmask 64512  }
  0x25   :  { %v106_v17 = vand.u32 127, %v105_v16  ;;  %s7394_s10 = sld [smem:[#allocation16_spill]]  ;;  %s7397_s0 = sld [smem:[#allocation17_spill]] }
  0x26   :  { %s7372_s29 = smov 64   ;;  %s7374_s2 = smov 96  }
  0x27   :  { %s7370_s12 = smov 88   ;;  %s7366_s5 = smov 80  }
  0x28   :  { %s7362_s9 = smov 112   ;;  %s7399_s1 = sld [smem:[#allocation18_spill]] }
  0x29   :  { %v103_v0 = vld [vmem:[%s7390_s11] sm:$0xff]  ;;  %v120_v3 = vld [vmem:[%s7391_s7 + $0x8] sm:$0xff]  ;;  %v121_v4 = vld [vmem:[%s7391_s7 + $0x10] sm:$0xff]  ;;  %s7354_s3 = smov 104   ;;  %s7358_s6 = smov 72  }
  0x2a   :  { %v119_v1 = vld [vmem:[%s7391_s7] sm:$0xff]  ;;  %v122_v5 = vld [vmem:[%s7391_s7 + $0x18] sm:$0xff]  ;;  %108 = vperm.xlu0 %6156, %v103_v0   ;;  %v104_v8 = vld [vmem:[%s7390_s11 + $0x8] sm:$0xff]  ;;  %s7398_s11 = sld [smem:[#allocation9_spill]]  ;;  %s7356_s4 = smov 40  }
  0x2b   :  { %v5958_v6 = vpack.c.bf16 %v120_v3, %v119_v1  ;;  %v5962_v7 = vpack.c.bf16 %v122_v5, %v121_v4  ;;  %v123_v9 = vld [vmem:[%s7391_s7 + $0x20] sm:$0xff]  ;;  %v124_v10 = vld [vmem:[%s7391_s7 + $0x28] sm:$0xff]  ;;  %v125_v12 = vld [vmem:[%s7391_s7 + $0x30] sm:$0xff] }
  0x2c   :  { %v5966_v11 = vpack.c.bf16 %v124_v10, %v123_v9  ;;  %v126_v13 = vld [vmem:[%s7391_s7 + $0x38] sm:$0xff]  ;;  %v127_v22 = vld [vmem:[%s7392_s8] sm:$0xff]  ;;  %v267_v43 = vld [vmem:[%s7394_s10 + $0x8] sm:$0xff]  ;;  %s7395_s8 = sld [smem:[#allocation14_spill]]  ;;  %v6569_v10 = vshrl.u32 %v105_v16, 7  ;;  %s7368_s7 = smov 120  }
  0x2d   :  { %5959 = vmatprep.subr.bf16.mxu0 %v5958_v6  ;;  %v5970_v14 = vpack.c.bf16 %v126_v13, %v125_v12  ;;  %v5188_v25 = vld [vmem:[%s7393_s30] ss:$0 sm:$0xff]  ;;  %v268_v44 = vld [vmem:[%s7394_s10 + $0x10] sm:$0xff]  ;;  %v269_v46 = vld [vmem:[%s7394_s10 + $0x18] sm:$0xff]  ;;  %s7396_s30 = sld [smem:[#allocation15_spill]] }
  0x2e   :  { %5961 = vmatpush3.bf16.msra.mxu0 %v5958_v6  ;;  %111 = vperm.xlu0 %6156, %v104_v8   ;;  %v266_v42 = vld [vmem:[%s7394_s10] sm:$0xff]  ;;  %v5978_v47 = vpack.c.bf16 %v269_v46, %v268_v44  ;;  %v6304_v8 = vmov 1966171168  }
  0x2f   :  { %5963 = vmatprep.subr.bf16.mxu0 %v5962_v7  ;;  %v5974_v45 = vpack.c.bf16 %v267_v43, %v266_v42  ;;  %v5191_v0 = vld [vmem:[%s7397_s0] ss:$0 sm:$0xff]  ;;  %v529_v9 = vunpack.c.l.s4 %v6304_v8 }
  0x30   :  { %v5198_v12 = vld.sshfl [vmem:[%s7398_s11] sm:$0x11 pattern:$0x75316420]  ;;  %s7408_s11 = smov 112  }
  0x31   :  { %5975 = vmatprep.subr.bf16.mxu1 %v5974_v45  ;;  %v527_v13 = vcombine.high %v5198_v12, %v5198_v12 }
  0x32   :  { %5965 = vmatpush3.bf16.msra.mxu0 %v5962_v7  ;;  %5977 = vmatpush3.bf16.msra.mxu1 %v5974_v45  ;;  %v5189_v55 = vld [vmem:[%s7395_s8] ss:$0 sm:$0xff]  ;;  %s7364_s8 = smov 56  }
  0x33   :  { %5967 = vmatprep.subr.bf16.mxu0 %v5966_v11  ;;  %5979 = vmatprep.subr.bf16.mxu1 %v5978_v47  ;;  %v5190_v57 = vld [vmem:[%s7396_s30] ss:$0 sm:$0xff]  ;;  %s7360_s30 = smov 48  }
  0x36   :  { %5969 = vmatpush3.bf16.msra.mxu0 %v5966_v11  ;;  %5981 = vmatpush3.bf16.msra.mxu1 %v5978_v47  ;;  %v530_v11 = vunpack.c.0.s8 %v529_v9 }
  0x37   :  { %5971 = vmatprep.subr.bf16.mxu0 %v5970_v14  ;;  %5570 = vmatprep.subr.mxu1 %v6299_v15 }
  0x3a   :  { %5973 = vmatpush3.bf16.msra.mxu0 %v5970_v14  ;;  %v533_v14 = vsub.s32 %v530_v11, %v6569_v10 }
  0x3b   :  { %5580 = vmatprep.subr.mxu0 %v6299_v15 }
  0xa9   :  { %v109_v18 = vpop.permute.xlu0 %108 }
  0xaa   :  { %vm113_vm1 = vcmp.eq.s32.totalorder %v106_v17, %v109_v18 }
  0xab   :  { %v5184_v19 = vsel %vm113_vm1, 1.0, %v6299_v15 }
  0xac   :  { %5556 = vmatprep.mubr.msk.f32.mxu0 %vm128_vm0, %v5184_v19 }
  0xad   :  { %v112_v20 = vpop.permute.xlu0 %111 }
  0xae   :  { %vm114_vm2 = vcmp.eq.s32.totalorder %v106_v17, %v112_v20  ;;  %v541_v17 = vrot.slane %v527_v13, %v533_v14  ;;  %v6576_v20 = vsub.s32 0, %v6569_v10 }
  0xaf   :  { %v5185_v21 = vsel %vm114_vm2, 1.0, %v6299_v15 }
  0xb0   :  { %5557 = vmatmul.mubr.msk.f32.vlgmr.msra.gmra.mrb[0].mxu0 %vm128_vm0, %v5185_v21  ;;  %v534_v21 = vrot.slane %v5198_v12, %v533_v14 }
  0xb1   :  { %5582 = vmatprep.mubr.msk.f32.mxu0 %vm6300_vm4, %v6299_v15 }
 0x183   :  { %v5558_v23 = vpop.f32.mrb[0].mxu0 }
 0x184   :  { %v201_v24 = vpop.f32.mrb[1].mxu0  ;;  %v207_v26 = vadd.f32 %v5558_v23, %v127_v22 }
 0x185   :  { %v202_v27 = vadd.f32 %v201_v24, %v127_v22  ;;  %v6579_v22 = vrot.slane %v541_v17, %v6576_v20 }
 0x186   :  { %v218_v30 = vadd.f32 %v5188_v25, %v207_v26  ;;  %v6582_v26 = vrot.slane %v534_v21, %v6576_v20 }
 0x187   :  { %v217_v28 = vadd.f32 %v5188_v25, %v202_v27 }
 0x188   :  { %v225_v31 = vsel %vm221_vm3, %v218_v30, 0.0 }
 0x189   :  { %v222_v29 = vsel %vm221_vm3, %v217_v28, 0.0 }
 0x18a   :  { %223 = vadd.xlane.f32.xlu1 %v222_v29 }
 0x18e   :  { %226 = vadd.xlane.f32.xlu1 %v225_v31 }
 0x217   :  { %v224_v32 = vpop.xlane.xlu1 %223 }
 0x218   :  { %v229_v33 = vmul.f32 0.03125, %v224_v32 }
 0x21a   :  { %v231_v34 = vsub.f32 %v217_v28, %v229_v33 }
 0x21b   :  { %v227_v35 = vpop.xlane.xlu1 %226 }
 0x21c   :  { %v230_v36 = vmul.f32 0.03125, %v227_v35  ;;  %v233_v37 = vmul.f32 %v231_v34, %v231_v34 }
 0x21e   :  { %v232_v38 = vsub.f32 %v218_v30, %v230_v36  ;;  %v235_v39 = vsel %vm221_vm3, %v233_v37, 0.0 }
 0x21f   :  { %236 = vadd.xlane.f32.xlu0 %v235_v39 }
 0x220   :  { %v234_v40 = vmul.f32 %v232_v38, %v232_v38 }
 0x222   :  { %v238_v41 = vsel %vm221_vm3, %v234_v40, 0.0 }
 0x223   :  { %239 = vadd.xlane.f32.xlu1 %v238_v41 }
 0x2ac   :  { %v237_v48 = vpop.xlane.xlu0 %236 }
 0x2ad   :  { %v241_v49 = vmul.f32 0.03125, %v237_v48 }
 0x2af   :  { %v243_v50 = vadd.f32 1e-12, %v241_v49 }
 0x2b0   :  { %v240_v51 = vpop.xlane.xlu1 %239 }
 0x2b1   :  { %6157 = vrsqrt.f32 %v243_v50  ;;  %v242_v52 = vmul.f32 0.03125, %v240_v51 }
 0x2b3   :  { %v244_v53 = vadd.f32 1e-12, %v242_v52 }
 0x2b5   :  { %6159 = vrsqrt.f32 %v244_v53 }
 0x2bb   :  { %v6158_v54 = vpop.eup %6157 }
 0x2bc   :  { %v247_v56 = vmul.f32 %v6158_v54, %v231_v34 }
 0x2be   :  { %v255_v58 = vmul.f32 %v5189_v55, %v247_v56 }
 0x2bf   :  { %v6160_v59 = vpop.eup %6159 }
 0x2c0   :  { %v248_v60 = vmul.f32 %v6160_v59, %v232_v38  ;;  %v6528_v61 = vadd.f32 %v5190_v57, %v255_v58 }
 0x2c2   :  { %v256_v62 = vmul.f32 %v5189_v55, %v248_v60  ;;  %5567 = vmatprep.mubr.msk.f32.mxu1 %vm221_vm3, %v6528_v61 }
 0x2c4   :  { %v6532_v63 = vadd.f32 %v5190_v57, %v256_v62 }
 0x2c6   :  { %5568 = vmatmul.mubr.msk.f32.vlgmr.msra.gmra.mrb[0].mxu1 %vm221_vm3, %v6532_v63 }
 0x2c7   :  { %5572 = vmatprep.mubr.msk.f32.mxu1 %vm6300_vm4, %v6299_v15 }
 0x399   :  { %v5569_v1 = vpop.f32.mrb[0].mxu1 }
 0x39a   :  { %v6543_v2 = vadd.f32 %v5569_v1, %v5191_v0  ;;  %v349_v3 = vpop.f32.mrb[1].mxu1 }
 0x39b   :  { %v6545_v4 = vadd.f32 %v5191_v0, %v349_v3 }
 0x39c   :  { %652 = vrot.lane.b32.xlu0 %v6543_v2, %s7372_s29 }
 0x39d   :  { %363 = vrot.lane.b32.xlu1 %v6545_v4, %s7374_s2 }
 0x3a0   :  { %808 = vrot.lane.b32.xlu0 %v6543_v2, %s7370_s12 }
 0x3a1   :  { %441 = vrot.lane.b32.xlu1 %v6543_v2, %s7374_s2  ;;  %s7411_s2 = smov 104  }
 0x40e   :  { %v653_v7 = vpop.permute.xlu0 %652 }
 0x40f   :  { %v364_v5 = vpop.permute.xlu1 %363 }
 0x410   :  { %5571 = vmatpush3.xpose.msk.msra.mxu1 %vm365_vm5, %v364_v5 }
 0x411   :  { %5575 = vmatprep.subr.mxu1 %v6299_v15 }
 0x412   :  { %v809_v42 = vpop.permute.xlu0 %808 }
 0x413   :  { %5573 = vmatmul.mubr.msk.f32.vlgmr.msra.gmra.mrb[2].mxu1 %vm365_vm5, %v6545_v4  ;;  %v442_v6 = vpop.permute.xlu1 %441 }
 0x414   :  { %5576 = vmatpush3.xpose.msk.msra.mxu1 %vm365_vm5, %v442_v6  ;;  %5577 = vmatprep.mubr.msk.f32.mxu1 %vm6300_vm4, %v6299_v15 }
 0x415   :  { %5585 = vmatprep.subr.mxu1 %v6299_v15 }
 0x417   :  { %5578 = vmatmul.mubr.msk.f32.vlgmr.msra.gmra.mrb[4].mxu1 %vm365_vm5, %v6543_v2 }
 0x418   :  { %5586 = vmatpush3.msra.mxu1 %v653_v7  ;;  %5587 = vmatprep.mubr.msk.f32.mxu1 %vm6300_vm4, %v6299_v15 }
 0x419   :  { %5595 = vmatprep.subr.mxu1 %v6299_v15 }
 0x4e6   :  { %v436_v18 = vpop.f32.mrb[2].mxu1 }
 0x4e7   :  { %v5574_v19 = vpop.f32.mrb[3].mxu1  ;;  %v517_v23 = vmul.f32 0.35355338, %v436_v18 }
 0x4e9   :  { %v552_v29 = vadd.f32 %v6582_v26, %v517_v23 }
 0x4ea   :  { %v513_v16 = vpop.f32.mrb[4].mxu1 }
 0x4eb   :  { %v518_v24 = vmul.f32 0.35355338, %v513_v16  ;;  %v5579_v25 = vpop.f32.mrb[5].mxu1  ;;  %v554_v30 = vsel %vm365_vm5, %v552_v29, -inf }
 0x4ed   :  { %v553_v27 = vadd.f32 %v6579_v22, %v518_v24 }
 0x4ef   :  { %v557_v28 = vsel %vm365_vm5, %v553_v27, -inf }
 0x4f0   :  { %558 = vmax.xlane.f32.xlu1 %v557_v28 }
 0x4f4   :  { %555 = vmax.xlane.f32.xlu1 %v554_v30 }
 0x505   :  { %576 = vrot.lane.b32.xlu1 %v6545_v4, %s7372_s29  ;;  %s7409_s29 = smov 48  }
 0x509   :  { %730 = vrot.lane.b32.xlu1 %v6545_v4, %s7370_s12  ;;  %s7404_s12 = smov 88  }
 0x50d   :  { %728 = vrot.lane.b32.xlu1 %v6545_v4, %s7368_s7 }
 0x57d   :  { %v559_v31 = vpop.xlane.xlu1 %558 }
 0x57e   :  { %v561_v32 = vsub.f32 %v553_v27, %v559_v31 }
 0x580   :  { %v564_v33 = vmul.f32 1.442695, %v561_v32 }
 0x581   :  { %v556_v34 = vpop.xlane.xlu1 %555 }
 0x582   :  { %6161 = vpow2.f32 %v564_v33  ;;  %v560_v38 = vsub.f32 %v552_v29, %v556_v34 }
 0x584   :  { %v562_v39 = vmul.f32 1.442695, %v560_v38 }
 0x585   :  { %v577_v35 = vpop.permute.xlu1 %576 }
 0x586   :  { %5581 = vmatpush3.msra.mxu0 %v577_v35  ;;  %6163 = vpow2.f32 %v562_v39 }
 0x587   :  { %5590 = vmatprep.subr.mxu0 %v6299_v15 }
 0x589   :  { %v731_v50 = vpop.permute.xlu1 %730 }
 0x58c   :  { %v6162_v36 = vpop.eup %6161 }
 0x58d   :  { %v569_v37 = vsel %vm365_vm5, %v6162_v36, 0.0  ;;  %v729_v52 = vpop.permute.xlu1 %728 }
 0x58e   :  { %570 = vadd.xlane.f32.xlu0 %v569_v37 }
 0x590   :  { %v6164_v40 = vpop.eup %6163 }
 0x591   :  { %v566_v41 = vsel %vm365_vm5, %v6164_v40, 0.0 }
 0x5a4   :  { %806 = vrot.lane.b32.xlu0 %v6543_v2, %s7368_s7  ;;  %s5318_s7 = sld [smem:[#allocation2 + $0x3]] }
 0x5c3   :  { %567 = vadd.xlane.f32.xlu0 %v566_v41 }
 0x5d9   :  { %986 = vrot.lane.b32.xlu0 %v6543_v2, %s7364_s8 }
 0x5dd   :  { %1226 = vrot.lane.b32.xlu0 %v6545_v4, %s7366_s5 }
 0x61b   :  { %v571_v43 = vpop.xlane.xlu0 %570 }
 0x61c   :  { %6165 = vrcp.f32 %v571_v43 }
 0x61f   :  { %v807_v46 = vpop.permute.xlu0 %806 }
 0x626   :  { %v6166_v44 = vpop.eup %6165 }
 0x627   :  { %v575_v45 = vmul.f32 %v6166_v44, %v6162_v36 }
 0x629   :  { %5588 = vmatmul.mubr.msk.f32.vlgmr.msra.gmra.mrb[6].mxu1 %vm365_vm5, %v575_v45  ;;  %v359_v45 = vld [vmem:[%s7399_s1 + $0x8] sm:$0xff] }
 0x62a   :  { %5596 = vmatpush3.xpose.msk.msra.mxu1 %vm365_vm5, %v809_v42  ;;  %5597 = vmatprep.mubr.msk.f32.mxu1 %vm6300_vm4, %v6299_v15 }
 0x62b   :  { %5605 = vmatprep.subr.mxu1 %v6299_v15 }
 0x62d   :  { %5598 = vmatmul.mubr.msk.f32.vlgmr.msra.gmra.mrb[8].mxu1 %vm365_vm5, %v807_v46  ;;  %v358_v46 = vld [vmem:[%s7399_s1] sm:$0xff] }
 0x62e   :  { %5607 = vmatprep.mubr.msk.f32.mxu1 %vm6300_vm4, %v6299_v15 }
 0x650   :  { %v568_v47 = vpop.xlane.xlu0 %567 }
 0x651   :  { %6167 = vrcp.f32 %v568_v47 }
 0x654   :  { %v987_v48 = vpop.permute.xlu0 %986 }
 0x655   :  { %5606 = vmatpush3.msra.mxu1 %v987_v48 }
 0x656   :  { %5620 = vmatprep.subr.mxu1 %v6299_v15 }
 0x658   :  { %v1227_v13 = vpop.permute.xlu0 %1226 }
 0x65b   :  { %v6168_v49 = vpop.eup %6167 }
 0x65c   :  { %v573_v51 = vmul.f32 %v6168_v49, %v6164_v40 }
 0x65e   :  { %5583 = vmatmul.mubr.msk.f32.vlgmr.msra.gmra.mrb[2].mxu0 %vm365_vm5, %v573_v51 }
 0x65f   :  { %5591 = vmatpush3.xpose.msk.msra.mxu0 %vm365_vm5, %v731_v50  ;;  %5592 = vmatprep.mubr.msk.f32.mxu0 %vm6300_vm4, %v6299_v15 }
 0x660   :  { %5600 = vmatprep.subr.mxu0 %v6299_v15 }
 0x662   :  { %5593 = vmatmul.mubr.msk.f32.vlgmr.msra.gmra.mrb[4].mxu0 %vm365_vm5, %v729_v52 }
 0x663   :  { %5602 = vmatprep.mubr.msk.f32.mxu0 %vm6300_vm4, %v6299_v15 }
 0x6fc   :  { %v6620_v53 = vpop.f32.mrb[6].mxu1 }
 0x6fd   :  { %v5589_v54 = vpop.f32.mrb[7].mxu1 }
 0x700   :  { %v880_v55 = vpop.f32.mrb[8].mxu1 }
 0x701   :  { %v885_v56 = vmul.f32 0.35355338, %v880_v55  ;;  %v5599_v57 = vpop.f32.mrb[9].mxu1 }
 0x703   :  { %v887_v58 = vadd.f32 %v885_v56, %v6579_v22 }
 0x705   :  { %v891_v59 = vsel %vm365_vm5, %v887_v58, -inf }
 0x706   :  { %892 = vmax.xlane.f32.xlu1 %v891_v59 }
 0x717   :  { %1304 = vrot.lane.b32.xlu1 %v6543_v2, %s7366_s5  ;;  %s7401_s5 = sld [smem:[#allocation20_spill]] }
 0x731   :  { %v6626_v60 = vpop.f32.mrb[2].mxu0 }
 0x732   :  { %v5584_v62 = vpop.f32.mrb[3].mxu0 }
 0x733   :  { %v360_v62 = vld [vmem:[%s7399_s1 + $0x10] sm:$0xff] }
 0x735   :  { %v802_v0 = vpop.f32.mrb[4].mxu0 }
 0x736   :  { %v5594_v1 = vpop.f32.mrb[5].mxu0  ;;  %v884_v9 = vmul.f32 0.35355338, %v802_v0 }
 0x738   :  { %v886_v11 = vadd.f32 %v884_v9, %v6582_v26 }
 0x73a   :  { %v888_v12 = vsel %vm365_vm5, %v886_v11, -inf }
 0x793   :  { %v893_v3 = vpop.xlane.xlu1 %892 }
 0x794   :  { %v895_v5 = vsub.f32 %v887_v58, %v893_v3 }
 0x796   :  { %v898_v6 = vmul.f32 1.442695, %v895_v5 }
 0x797   :  { %v1305_v21 = vpop.permute.xlu1 %1304 }
 0x798   :  { %6169 = vpow2.f32 %v898_v6 }
 0x7a2   :  { %v6170_v7 = vpop.eup %6169 }
 0x7a3   :  { %v903_v8 = vsel %vm365_vm5, %v6170_v7, 0.0 }
 0x7a4   :  { %904 = vadd.xlane.f32.xlu0 %v903_v8 }
 0x7ba   :  { %1224 = vrot.lane.b32.xlu0 %v6545_v4, %s7362_s9 }
 0x7be   :  { %1302 = vrot.lane.b32.xlu0 %v6543_v2, %s7362_s9  ;;  %s7402_s9 = smov 96  }
 0x7dd   :  { %889 = vmax.xlane.f32.xlu0 %v888_v12 }
 0x7f3   :  { %910 = vrot.lane.b32.xlu0 %v6545_v4, %s7364_s8  ;;  %s4446_s8 = sld [smem:[#allocation2]] }
 0x831   :  { %v905_v14 = vpop.xlane.xlu0 %904 }
 0x832   :  { %6171 = vrcp.f32 %v905_v14 }
 0x835   :  { %v1225_v19 = vpop.permute.xlu0 %1224 }
 0x839   :  { %v1303_v16 = vpop.permute.xlu0 %1302 }
 0x83c   :  { %v6172_v17 = vpop.eup %6171 }
 0x83d   :  { %v909_v18 = vmul.f32 %v6172_v17, %v6170_v7 }
 0x83f   :  { %5608 = vmatmul.mubr.msk.f32.vlgmr.msra.gmra.mrb[10].mxu1 %vm365_vm5, %v909_v18 }
 0x840   :  { %5621 = vmatpush3.xpose.msk.msra.mxu1 %vm365_vm5, %v1227_v13  ;;  %5622 = vmatprep.mubr.msk.f32.mxu1 %vm6300_vm4, %v6299_v15 }
 0x841   :  { %5625 = vmatprep.subr.mxu1 %v6299_v15 }
 0x843   :  { %5623 = vmatmul.mubr.msk.f32.vlgmr.msra.gmra.mrb[12].mxu1 %vm365_vm5, %v1225_v19 }
 0x844   :  { %5626 = vmatpush3.xpose.msk.msra.mxu1 %vm365_vm5, %v1305_v21  ;;  %5627 = vmatprep.mubr.msk.f32.mxu1 %vm6300_vm4, %v6299_v15 }
 0x845   :  { %5635 = vmatprep.subr.mxu1 %v6299_v15 }
 0x847   :  { %5628 = vmatmul.mubr.msk.f32.vlgmr.msra.gmra.mrb[14].mxu1 %vm365_vm5, %v1303_v16 }
 0x848   :  { %5637 = vmatprep.mubr.msk.f32.mxu1 %vm6300_vm4, %v6299_v15 }
 0x86a   :  { %v890_v23 = vpop.xlane.xlu0 %889 }
 0x86b   :  { %v894_v24 = vsub.f32 %v886_v11, %v890_v23 }
 0x86d   :  { %v896_v25 = vmul.f32 1.442695, %v894_v24 }
 0x86e   :  { %v911_v27 = vpop.permute.xlu0 %910 }
 0x86f   :  { %6173 = vpow2.f32 %v896_v25  ;;  %5601 = vmatpush3.msra.mxu0 %v911_v27 }
 0x870   :  { %5610 = vmatprep.subr.mxu0 %v359_v45 }
 0x879   :  { %v6174_v28 = vpop.eup %6173 }
 0x87a   :  { %v900_v29 = vsel %vm365_vm5, %v6174_v28, 0.0 }
 0x87b   :  { %901 = vadd.xlane.f32.xlu1 %v900_v29 }
 0x908   :  { %v902_v30 = vpop.xlane.xlu1 %901 }
 0x909   :  { %6175 = vrcp.f32 %v902_v30 }
 0x912   :  { %v1058_v31 = vpop.f32.mrb[10].mxu1 }
 0x913   :  { %v6176_v32 = vpop.eup %6175  ;;  %v5609_v33 = vpop.f32.mrb[11].mxu1 }
 0x914   :  { %v907_v34 = vmul.f32 %v6176_v32, %v6174_v28 }
 0x916   :  { %5603 = vmatmul.mubr.msk.f32.vlgmr.msra.gmra.mrb[6].mxu0 %vm365_vm5, %v907_v34  ;;  %v1298_v35 = vpop.f32.mrb[12].mxu1 }
 0x917   :  { %v1380_v36 = vmul.f32 0.35355338, %v1298_v35  ;;  %v5624_v37 = vpop.f32.mrb[13].mxu1  ;;  %5611 = vmatpush3.msra.mxu0 %v359_v45 }
 0x918   :  { %5615 = vmatprep.subr.mxu0 %v358_v46 }
 0x919   :  { %v1382_v38 = vadd.f32 %v1380_v36, %v6582_v26 }
 0x91a   :  { %v1376_v39 = vpop.f32.mrb[14].mxu1 }
 0x91b   :  { %v1381_v40 = vmul.f32 0.35355338, %v1376_v39  ;;  %v5629_v41 = vpop.f32.mrb[15].mxu1  ;;  %v1384_v42 = vsel %vm365_vm5, %v1382_v38, -inf }
 0x91c   :  { %1385 = vmax.xlane.f32.xlu1 %v1384_v42 }
 0x91d   :  { %v1383_v43 = vadd.f32 %v1381_v40, %v6579_v22 }
 0x91f   :  { %v1387_v44 = vsel %vm365_vm5, %v1383_v43, -inf }
 0x920   :  { %1388 = vmax.xlane.f32.xlu1 %v1387_v44 }
 0x931   :  { %1406 = vrot.lane.b32.xlu1 %v6545_v4, %s7360_s30 }
 0x9a9   :  { %v1386_v47 = vpop.xlane.xlu1 %1385 }
 0x9aa   :  { %v1390_v48 = vsub.f32 %v1382_v38, %v1386_v47 }
 0x9ac   :  { %v1392_v49 = vmul.f32 1.442695, %v1390_v48  ;;  %v361_v48 = vld [vmem:[%s7399_s1 + $0x18] sm:$0xff] }
 0x9ad   :  { %v1389_v50 = vpop.xlane.xlu1 %1388 }
 0x9ae   :  { %6177 = vpow2.f32 %v1392_v49  ;;  %v1391_v51 = vsub.f32 %v1383_v43, %v1389_v50 }
 0x9b0   :  { %v1394_v52 = vmul.f32 1.442695, %v1391_v51 }
 0x9b1   :  { %v1407_v0 = vpop.permute.xlu1 %1406 }
 0x9b2   :  { %6179 = vpow2.f32 %v1394_v52 }
 0x9b8   :  { %v6178_v54 = vpop.eup %6177 }
 0x9b9   :  { %v1396_v55 = vsel %vm365_vm5, %v6178_v54, 0.0 }
 0x9ba   :  { %1397 = vadd.xlane.f32.xlu0 %v1396_v55 }
 0x9bc   :  { %v6180_v56 = vpop.eup %6179 }
 0x9bd   :  { %v1399_v57 = vsel %vm365_vm5, %v6180_v56, 0.0 }
 0x9be   :  { %1400 = vadd.xlane.f32.xlu1 %v1399_v57 }
 0x9cf   :  { %1482 = vrot.lane.b32.xlu1 %v6543_v2, %s7360_s30  ;;  %s7400_s30 = sld [smem:[#allocation19_spill]] }
 0x9d0   :  { %1641 = vrot.lane.b32.xlu0 %v6545_v4, %s7354_s3 }
 0x9d3   :  { %1643 = vrot.lane.b32.xlu1 %v6545_v4, %s7358_s6 }
 0x9d5   :  { %v5227_v52 = vld [vmem:[%s7400_s30] ss:$0 sm:$0xff] }
 0x9d7   :  { %1721 = vrot.lane.b32.xlu1 %v6543_v2, %s7358_s6  ;;  %s7406_s6 = smov 80  }
 0x9db   :  { %1719 = vrot.lane.b32.xlu1 %v6543_v2, %s7354_s3  ;;  %s7405_s3 = smov 120  }
 0x9e9   :  { %v982_v58 = vpop.f32.mrb[6].mxu0 }
 0x9ea   :  { %v5604_v59 = vpop.f32.mrb[7].mxu0  ;;  %5612 = vmatprep.mubr.msk.f32.mxu0 %vm365_vm5, %v982_v58 }
 0x9eb   :  { %5613 = vmatmul.mubr.msk.f32.vlgmr.msra.gmra.mrb[8].mxu0 %vm365_vm5, %v1058_v31 }
 0x9ec   :  { %5617 = vmatprep.mubr.msk.f32.mxu0 %vm365_vm5, %v6626_v60  ;;  %5616 = vmatpush3.msra.mxu0 %v358_v46 }
 0x9ed   :  { %5630 = vmatprep.subr.mxu0 %v6299_v15 }
 0x9f3   :  { %5618 = vmatmul.mubr.msk.f32.vlgmr.msra.gmra.mrb[8].mxu0 %vm365_vm5, %v6620_v53 }
 0x9f4   :  { %5631 = vmatpush3.msra.mxu0 %v1407_v0  ;;  %5632 = vmatprep.mubr.msk.f32.mxu0 %vm6300_vm4, %v6299_v15 }
 0x9f5   :  { %5640 = vmatprep.subr.mxu0 %v360_v62 }
 0xa47   :  { %v1398_v1 = vpop.xlane.xlu0 %1397 }
 0xa48   :  { %6181 = vrcp.f32 %v1398_v1 }
 0xa4b   :  { %v1401_v3 = vpop.xlane.xlu1 %1400  ;;  %v1642_v9 = vpop.permute.xlu0 %1641 }
 0xa4c   :  { %6183 = vrcp.f32 %v1401_v3 }
 0xa4f   :  { %v1483_v60 = vpop.permute.xlu1 %1482 }
 0xa50   :  { %5636 = vmatpush3.msra.mxu1 %v1483_v60 }
 0xa51   :  { %5645 = vmatprep.subr.mxu1 %v6299_v15 }
 0xa52   :  { %v6182_v5 = vpop.eup %6181 }
 0xa53   :  { %v1403_v6 = vmul.f32 %v6182_v5, %v6178_v54  ;;  %v1644_v8 = vpop.permute.xlu1 %1643 }
 0xa55   :  { %5633 = vmatmul.mubr.msk.f32.vlgmr.msra.gmra.mrb[10].mxu0 %vm365_vm5, %v1403_v6 }
 0xa56   :  { %v6184_v7 = vpop.eup %6183  ;;  %5641 = vmatpush3.msra.mxu0 %v360_v62 }
 0xa57   :  { %v1405_v53 = vmul.f32 %v6184_v7, %v6180_v56  ;;  %5650 = vmatprep.subr.mxu0 %v6299_v15  ;;  %v1722_v13 = vpop.permute.xlu1 %1721 }
 0xa59   :  { %5638 = vmatmul.mubr.msk.f32.vlgmr.msra.gmra.mrb[16].mxu1 %vm365_vm5, %v1405_v53 }
 0xa5a   :  { %5646 = vmatpush3.xpose.msk.msra.mxu1 %vm365_vm5, %v1644_v8  ;;  %5647 = vmatprep.mubr.msk.f32.mxu1 %vm6300_vm4, %v6299_v15 }
 0xa5b   :  { %5655 = vmatprep.subr.mxu1 %v6299_v15  ;;  %v1720_v18 = vpop.permute.xlu1 %1719 }
 0xa5d   :  { %5648 = vmatmul.mubr.msk.f32.vlgmr.msra.gmra.mrb[18].mxu1 %vm365_vm5, %v1642_v9 }
 0xa5e   :  { %5657 = vmatprep.mubr.msk.f32.mxu1 %vm6300_vm4, %v6299_v15 }
 0xb28   :  { %v1478_v11 = vpop.f32.mrb[10].mxu0 }
 0xb29   :  { %v5634_v12 = vpop.f32.mrb[11].mxu0  ;;  %5642 = vmatprep.mubr.msk.f32.mxu0 %vm365_vm5, %v1478_v11  ;;  %v2114_v11 = vld [vmem:[%s7332_s14 + $0x8] sm:$0xff] }
 0xb2c   :  { %v1554_v14 = vpop.f32.mrb[16].mxu1 }
 0xb2d   :  { %v5639_v17 = vpop.f32.mrb[17].mxu1  ;;  %5643 = vmatmul.mubr.msk.f32.vlgmr.msra.gmra.mrb[8].mxu0 %vm365_vm5, %v1554_v14  ;;  %v2116_v14 = vld [vmem:[%s7332_s14 + $0x18] sm:$0xff] }
 0xb2e   :  { %5651 = vmatpush3.xpose.msk.msra.mxu0 %vm365_vm5, %v1722_v13  ;;  %5652 = vmatprep.mubr.msk.f32.mxu0 %vm6300_vm4, %v6299_v15  ;;  %v2115_v13 = vld [vmem:[%s7332_s14 + $0x10] sm:$0xff] }
 0xb2f   :  { %5660 = vmatprep.subr.mxu0 %v6299_v15  ;;  %v5986_v17 = vpack.c.bf16 %v2116_v14, %v2115_v13 }
 0xb30   :  { %v1715_v19 = vpop.f32.mrb[18].mxu1 }
 0xb31   :  { %v1797_v21 = vmul.f32 0.35355338, %v1715_v19  ;;  %v5649_v16 = vpop.f32.mrb[19].mxu1  ;;  %5653 = vmatmul.mubr.msk.f32.vlgmr.msra.gmra.mrb[12].mxu0 %vm365_vm5, %v1720_v18  ;;  %v2223_v18 = vld [vmem:[%s7334_s16] sm:$0xff]  ;;  %v2224_v19 = vld [vmem:[%s7334_s16 + $0x8] sm:$0xff] }
 0xb32   :  { %5662 = vmatprep.mubr.msk.f32.mxu0 %vm6300_vm4, %v6299_v15 }
 0xb33   :  { %v1799_v23 = vadd.f32 %v1797_v21, %v6582_v26  ;;  %v5990_v21 = vpack.c.bf16 %v2224_v19, %v2223_v18 }
 0xb35   :  { %v1801_v24 = vsel %vm365_vm5, %v1799_v23, -inf }
 0xb36   :  { %1802 = vmax.xlane.f32.xlu1 %v1801_v24 }
 0xbc3   :  { %v1803_v25 = vpop.xlane.xlu1 %1802 }
 0xbc4   :  { %v1807_v27 = vsub.f32 %v1799_v23, %v1803_v25 }
 0xbc6   :  { %v1809_v28 = vmul.f32 1.442695, %v1807_v27 }
 0xbc8   :  { %6185 = vpow2.f32 %v1809_v28 }
 0xbd2   :  { %v6186_v29 = vpop.eup %6185 }
 0xbd3   :  { %v1813_v30 = vsel %vm365_vm5, %v6186_v29, 0.0 }
 0xbd4   :  { %1814 = vadd.xlane.f32.xlu1 %v1813_v30  ;;  %v5228_v30 = vld [vmem:[%s7401_s5] ss:$0 sm:$0xff] }
 0xc04   :  { %v1793_v31 = vpop.f32.mrb[12].mxu0 }
 0xc05   :  { %v1798_v32 = vmul.f32 0.35355338, %v1793_v31  ;;  %v5654_v33 = vpop.f32.mrb[13].mxu0 }
 0xc07   :  { %v1800_v34 = vadd.f32 %v1798_v32, %v6579_v22 }
 0xc09   :  { %v1804_v35 = vsel %vm365_vm5, %v1800_v34, -inf }
 0xc0a   :  { %1805 = vmax.xlane.f32.xlu0 %v1804_v35 }
 0xc20   :  { %1899 = vrot.lane.b32.xlu0 %v6543_v2, %s7356_s4 }
 0xc61   :  { %v1815_v42 = vpop.xlane.xlu1 %1814 }
 0xc97   :  { %v1806_v36 = vpop.xlane.xlu0 %1805 }
 0xc98   :  { %v1808_v37 = vsub.f32 %v1800_v34, %v1806_v36  ;;  %v5229_v34 = vld [vmem:[%s7331_s13] ss:$0 sm:$0xff] }
 0xc9a   :  { %v1811_v38 = vmul.f32 1.442695, %v1808_v37 }
 0xc9b   :  { %v1900_v39 = vpop.permute.xlu0 %1899 }
 0xc9c   :  { %6187 = vpow2.f32 %v1811_v38  ;;  %5661 = vmatpush3.msra.mxu0 %v1900_v39  ;;  %v2225_v39 = vld [vmem:[%s7334_s16 + $0x10] sm:$0xff] }
 0xc9d   :  { %6189 = vrcp.f32 %v1815_v42  ;;  %5665 = vmatprep.subr.mxu0 %v361_v48  ;;  %v2227_v42 = vld [vmem:[%s7334_s16 + $0x20] sm:$0xff] }
 0xca6   :  { %v6188_v40 = vpop.eup %6187 }
 0xca7   :  { %v1816_v41 = vsel %vm365_vm5, %v6188_v40, 0.0  ;;  %v6190_v44 = vpop.eup %6189 }
 0xca8   :  { %1817 = vadd.xlane.f32.xlu1 %v1816_v41  ;;  %v1820_v45 = vmul.f32 %v6190_v44, %v6186_v29 }
 0xcb9   :  { %1823 = vrot.lane.b32.xlu1 %v6545_v4, %s7356_s4  ;;  %s7407_s4 = smov 56  }
 0xd35   :  { %v1818_v43 = vpop.xlane.xlu1 %1817 }
 0xd36   :  { %6191 = vrcp.f32 %v1818_v43  ;;  %v2228_v43 = vld [vmem:[%s7334_s16 + $0x28] sm:$0xff] }
 0xd37   :  { %v5998_v44 = vpack.c.bf16 %v2228_v43, %v2227_v42 }
 0xd39   :  { %v1824_v2 = vpop.permute.xlu1 %1823 }
 0xd3a   :  { %5656 = vmatpush3.msra.mxu1 %v1824_v2  ;;  %v2230_v2 = vld [vmem:[%s7334_s16 + $0x38] sm:$0xff] }
 0xd3b   :  { %5658 = vmatmul.mubr.msk.f32.vlgmr.msra.gmra.mrb[20].mxu1 %vm365_vm5, %v1820_v45  ;;  %v2229_v45 = vld [vmem:[%s7334_s16 + $0x30] sm:$0xff] }
 0xd40   :  { %v6192_v46 = vpop.eup %6191 }
 0xd41   :  { %v1822_v47 = vmul.f32 %v6192_v46, %v6188_v40  ;;  %v2226_v40 = vld [vmem:[%s7334_s16 + $0x18] sm:$0xff]  ;;  %v6002_v46 = vpack.c.bf16 %v2230_v2, %v2229_v45  ;;  %v5238_v2 = vld [vmem:[%s7394_s10 + $0x30] sm:$0xff] }
 0xd42   :  { %v5994_v41 = vpack.c.bf16 %v2226_v40, %v2225_v39 }
 0xd43   :  { %5663 = vmatmul.mubr.msk.f32.vlgmr.msra.gmra.mrb[14].mxu0 %vm365_vm5, %v1822_v47  ;;  %v2231_v47 = vld [vmem:[%s7334_s16 + $0x40] sm:$0xff] }
 0xd44   :  { %5666 = vmatpush3.msra.mxu0 %v361_v48  ;;  %v2232_v48 = vld [vmem:[%s7334_s16 + $0x48] sm:$0xff] }
 0xd45   :  { %5991 = vmatprep.subr.bf16.mxu0 %v5990_v21 }
 0xe0e   :  { %v1895_v4 = vpop.f32.mrb[20].mxu1 }
 0xe0f   :  { %v5659_v49 = vpop.f32.mrb[21].mxu1  ;;  %5667 = vmatprep.mubr.msk.f32.mxu0 %vm365_vm5, %v1895_v4  ;;  %v6006_v4 = vpack.c.bf16 %v2232_v48, %v2231_v47 }
 0xe10   :  { %v2233_v49 = vld [vmem:[%s7334_s16 + $0x50] sm:$0xff] }
 0xe16   :  { %v1971_v50 = vpop.f32.mrb[14].mxu0 }
 0xe17   :  { %v5664_v51 = vpop.f32.mrb[15].mxu0  ;;  %5668 = vmatmul.mubr.msk.f32.vlgmr.msra.gmra.mrb[8].mxu0 %vm365_vm5, %v1971_v50  ;;  %v2234_v50 = vld [vmem:[%s7334_s16 + $0x58] sm:$0xff] }
 0xe18   :  { %5993 = vmatpush3.bf16.msra.mxu0 %v5990_v21  ;;  %v6010_v51 = vpack.c.bf16 %v2234_v50, %v2233_v49 }
 0xe19   :  { %5995 = vmatprep.subr.bf16.mxu0 %v5994_v41 }
 0xe1c   :  { %5997 = vmatpush3.bf16.msra.mxu0 %v5994_v41 }
 0xe1d   :  { %5999 = vmatprep.subr.bf16.mxu0 %v5998_v44 }
 0xe20   :  { %6001 = vmatpush3.bf16.msra.mxu0 %v5998_v44  ;;  %v5237_v44 = vld [vmem:[%s7394_s10 + $0x28] sm:$0xff] }
 0xe21   :  { %6003 = vmatprep.subr.bf16.mxu0 %v6002_v46 }
 0xe24   :  { %6005 = vmatpush3.bf16.msra.mxu0 %v6002_v46  ;;  %v5239_v46 = vld [vmem:[%s7394_s10 + $0x38] sm:$0xff] }
 0xe25   :  { %6007 = vmatprep.subr.bf16.mxu0 %v6006_v4  ;;  %v6026_v47 = vpack.c.bf16 %v5239_v46, %v5238_v2 }
 0xe28   :  { %6009 = vmatpush3.bf16.msra.mxu0 %v6006_v4 }
 0xe29   :  { %6011 = vmatprep.subr.bf16.mxu0 %v6010_v51 }
 0xe2c   :  { %6013 = vmatpush3.bf16.msra.mxu0 %v6010_v51 }
 0xeea   :  { %v5669_v54 = vpop.f32.mrb[8].mxu0 }
 0xeeb   :  { %v2066_v55 = vadd.f32 %v5669_v54, %v5227_v52  ;;  %v2047_v56 = vpop.f32.mrb[9].mxu0  ;;  %v2236_v54 = vld [vmem:[%s7334_s16 + $0x68] sm:$0xff] }
 0xeec   :  { %v2065_v57 = vadd.f32 %v5227_v52, %v2047_v56  ;;  %v2235_v52 = vld [vmem:[%s7334_s16 + $0x60] sm:$0xff]  ;;  %v2237_v56 = vld [vmem:[%s7334_s16 + $0x70] sm:$0xff] }
 0xeed   :  { %v2068_v58 = vadd.f32 %v2066_v55, %v6532_v63  ;;  %v6014_v55 = vpack.c.bf16 %v2236_v54, %v2235_v52 }
 0xeee   :  { %v2067_v59 = vadd.f32 %v2065_v57, %v6528_v61  ;;  %v2113_v61 = vld [vmem:[%s7332_s14] sm:$0xff]  ;;  %v2238_v57 = vld [vmem:[%s7334_s16 + $0x78] sm:$0xff] }
 0xeef   :  { %v2074_v62 = vsel %vm221_vm3, %v2068_v58, 0.0  ;;  %v5982_v12 = vpack.c.bf16 %v2114_v11, %v2113_v61  ;;  %6015 = vmatprep.subr.bf16.mxu0 %v6014_v55 }
 0xef0   :  { %2075 = vadd.xlane.f32.xlu0 %v2074_v62  ;;  %v2071_v0 = vsel %vm221_vm3, %v2067_v59, 0.0  ;;  %6017 = vmatpush3.bf16.msra.mxu0 %v6014_v55  ;;  %v5234_v55 = vld [vmem:[%s7336_s18] ss:$0 sm:$0xff] }
 0xef1   :  { %2072 = vadd.xlane.f32.xlu1 %v2071_v0  ;;  %5983 = vmatprep.subr.bf16.mxu1 %v5982_v12 }
 0xef2   :  { %5985 = vmatpush3.bf16.msra.mxu1 %v5982_v12 }
 0xef3   :  { %5987 = vmatprep.subr.bf16.mxu1 %v5986_v17 }
 0xef6   :  { %5989 = vmatpush3.bf16.msra.mxu1 %v5986_v17 }
 0xf7d   :  { %v2076_v1 = vpop.xlane.xlu0 %2075 }
 0xf7e   :  { %v2078_v3 = vmul.f32 0.03125, %v2076_v1  ;;  %v2073_v60 = vpop.xlane.xlu1 %2072 }
 0xf7f   :  { %v2077_v5 = vmul.f32 0.03125, %v2073_v60 }
 0xf80   :  { %v2080_v6 = vsub.f32 %v2068_v58, %v2078_v3  ;;  %v6018_v58 = vpack.c.bf16 %v2238_v57, %v2237_v56 }
 0xf81   :  { %v2079_v7 = vsub.f32 %v2067_v59, %v2077_v5  ;;  %v5230_v59 = vld [vmem:[%s7333_s15] ss:$0 sm:$0xff] }
 0xf82   :  { %v2082_v53 = vmul.f32 %v2080_v6, %v2080_v6  ;;  %6019 = vmatprep.subr.bf16.mxu0 %v6018_v58 }
 0xf83   :  { %v2081_v8 = vmul.f32 %v2079_v7, %v2079_v7  ;;  %6021 = vmatpush3.bf16.msra.mxu0 %v6018_v58 }
 0xf84   :  { %v2086_v9 = vsel %vm221_vm3, %v2082_v53, 0.0  ;;  %5757 = vmatprep.subr.mxu0 %v6299_v15 }
 0xf85   :  { %2087 = vadd.xlane.f32.xlu0 %v2086_v9  ;;  %v2083_v63 = vsel %vm221_vm3, %v2081_v8, 0.0 }
 0xf86   :  { %2084 = vadd.xlane.f32.xlu1 %v2083_v63 }
0x1012   :  { %v2088_v16 = vpop.xlane.xlu0 %2087 }
0x1013   :  { %v2090_v23 = vmul.f32 0.03125, %v2088_v16  ;;  %v2085_v24 = vpop.xlane.xlu1 %2084 }
0x1014   :  { %v2089_v25 = vmul.f32 0.03125, %v2085_v24 }
0x1015   :  { %v2092_v27 = vadd.f32 1e-12, %v2090_v23  ;;  %v5233_v23 = vld [vmem:[%s7335_s17] ss:$0 sm:$0xff] }
0x1016   :  { %v2091_v28 = vadd.f32 1e-12, %v2089_v25 }
0x1017   :  { %6193 = vrsqrt.f32 %v2092_v27 }
0x1018   :  { %6195 = vrsqrt.f32 %v2091_v28 }
0x1021   :  { %v6194_v29 = vpop.eup %6193 }
0x1022   :  { %v6196_v31 = vpop.eup %6195  ;;  %v2096_v32 = vmul.f32 %v6194_v29, %v2080_v6 }
0x1023   :  { %v2095_v33 = vmul.f32 %v6196_v31, %v2079_v7 }
0x1024   :  { %v2104_v35 = vmul.f32 %v5228_v30, %v2096_v32 }
0x1025   :  { %v2103_v36 = vmul.f32 %v5228_v30, %v2095_v33 }
0x1026   :  { %v6760_v38 = vadd.f32 %v5229_v34, %v2104_v35 }
0x1027   :  { %v6758_v37 = vadd.f32 %v5229_v34, %v2103_v36 }
0x1029   :  { %5678 = vmatprep.mubr.msk.f32.mxu1 %vm221_vm3, %v6758_v37 }
0x102a   :  { %5679 = vmatmul.mubr.msk.f32.vlgmr.msra.gmra.mrb[22].mxu1 %vm221_vm3, %v6760_v38 }
0x10fd   :  { %v5680_v62 = vpop.f32.mrb[22].mxu1 }
0x10fe   :  { %v2202_v0 = vadd.f32 %v5680_v62, %v5230_v59  ;;  %v2196_v1 = vpop.f32.mrb[23].mxu1 }
0x10ff   :  { %v2197_v3 = vadd.f32 %v5230_v59, %v2196_v1  ;;  %v5235_v59 = vld [vmem:[%s7337_s19] ss:$0 sm:$0xff] }
0x1100   :  { %v2208_v60 = vmul.f32 0.044715, %v2202_v0  ;;  %v2206_v19 = vmul.f32 0.5, %v2202_v0 }
0x1101   :  { %v2207_v5 = vmul.f32 0.044715, %v2197_v3  ;;  %v2205_v17 = vmul.f32 0.5, %v2197_v3 }
0x1102   :  { %v2210_v6 = vmul.f32 %v2208_v60, %v2202_v0  ;;  %v5241_v60 = vld [vmem:[%s7397_s0 + $0x1] ss:$0 sm:$0xff]  ;;  %s7403_s0 = smov 64  }
0x1103   :  { %v2209_v7 = vmul.f32 %v2207_v5, %v2197_v3 }
0x1104   :  { %v2212_v53 = vmul.f32 %v2210_v6, %v2202_v0 }
0x1105   :  { %v2211_v8 = vmul.f32 %v2209_v7, %v2197_v3 }
0x1106   :  { %v2214_v9 = vadd.f32 %v2212_v53, %v2202_v0 }
0x1107   :  { %v2213_v63 = vadd.f32 %v2211_v8, %v2197_v3 }
0x1108   :  { %v2216_v61 = vmul.f32 0.7978846, %v2214_v9 }
0x1109   :  { %v2215_v11 = vmul.f32 0.7978846, %v2213_v63 }
0x110a   :  { %6197 = vtanh.f32 %v2216_v61 }
0x110b   :  { %6199 = vtanh.f32 %v2215_v11 }
0x1114   :  { %v6198_v12 = vpop.eup %6197 }
0x1115   :  { %v6200_v13 = vpop.eup %6199  ;;  %v2220_v14 = vadd.f32 1.0, %v6198_v12 }
0x1116   :  { %v2219_v18 = vadd.f32 1.0, %v6200_v13 }
0x1117   :  { %v2222_v16 = vmul.f32 %v2220_v14, %v2206_v19 }
0x1118   :  { %v2221_v21 = vmul.f32 %v2219_v18, %v2205_v17 }
0x111a   :  { %5713 = vmatprep.mubr.f32.mxu0 %v2221_v21 }
0x111b   :  { %5714 = vmatmul.mubr.f32.vlgmr.msra.gmra.mrb[16].mxu0 %v2222_v16 }
0x111c   :  { %5759 = vmatprep.mubr.msk.f32.mxu0 %vm6300_vm4, %v6299_v15 }
0x11ee   :  { %v5715_v24 = vpop.f32.mrb[16].mxu0 }
0x11ef   :  { %v2318_v25 = vadd.f32 %v5715_v24, %v5233_v23  ;;  %v2312_v27 = vpop.f32.mrb[17].mxu0 }
0x11f0   :  { %v2313_v28 = vadd.f32 %v5233_v23, %v2312_v27 }
0x11f1   :  { %v2322_v29 = vadd.f32 %v2318_v25, %v6760_v38 }
0x11f2   :  { %v2321_v30 = vadd.f32 %v2313_v28, %v6758_v37  ;;  %v5236_v37 = vld [vmem:[%s7394_s10 + $0x20] sm:$0xff]  ;;  %s7410_s10 = smov 72  }
0x11f3   :  { %v2328_v31 = vsel %vm221_vm3, %v2322_v29, 0.0  ;;  %v6022_v45 = vpack.c.bf16 %v5237_v44, %v5236_v37 }
0x11f4   :  { %2329 = vadd.xlane.f32.xlu0 %v2328_v31  ;;  %v2325_v32 = vsel %vm221_vm3, %v2321_v30, 0.0 }
0x11f5   :  { %2326 = vadd.xlane.f32.xlu1 %v2325_v32  ;;  %6023 = vmatprep.subr.bf16.mxu1 %v6022_v45 }
0x11f6   :  { %6025 = vmatpush3.bf16.msra.mxu1 %v6022_v45 }
0x11f7   :  { %6027 = vmatprep.subr.bf16.mxu1 %v6026_v47 }
0x11fa   :  { %6029 = vmatpush3.bf16.msra.mxu1 %v6026_v47 }
0x11fb   :  { %5727 = vmatprep.subr.mxu1 %v6299_v15 }
0x1281   :  { %v2330_v33 = vpop.xlane.xlu0 %2329 }
0x1282   :  { %v2332_v34 = vmul.f32 0.03125, %v2330_v33  ;;  %v2327_v35 = vpop.xlane.xlu1 %2326 }
0x1283   :  { %v2331_v36 = vmul.f32 0.03125, %v2327_v35 }
0x1284   :  { %v2334_v39 = vsub.f32 %v2322_v29, %v2332_v34 }
0x1285   :  { %v2333_v40 = vsub.f32 %v2321_v30, %v2331_v36 }
0x1286   :  { %v2336_v41 = vmul.f32 %v2334_v39, %v2334_v39 }
0x1287   :  { %v2335_v42 = vmul.f32 %v2333_v40, %v2333_v40 }
0x1288   :  { %v2340_v43 = vsel %vm221_vm3, %v2336_v41, 0.0 }
0x1289   :  { %2341 = vadd.xlane.f32.xlu0 %v2340_v43  ;;  %v2337_v38 = vsel %vm221_vm3, %v2335_v42, 0.0 }
0x128a   :  { %2338 = vadd.xlane.f32.xlu1 %v2337_v38 }
0x1316   :  { %v2342_v48 = vpop.xlane.xlu0 %2341 }
0x1317   :  { %v2344_v4 = vmul.f32 0.03125, %v2342_v48  ;;  %v2339_v49 = vpop.xlane.xlu1 %2338 }
0x1318   :  { %v2343_v50 = vmul.f32 0.03125, %v2339_v49 }
0x1319   :  { %v2346_v51 = vadd.f32 1e-12, %v2344_v4 }
0x131a   :  { %v2345_v52 = vadd.f32 1e-12, %v2343_v50 }
0x131b   :  { %6201 = vrsqrt.f32 %v2346_v51 }
0x131c   :  { %6203 = vrsqrt.f32 %v2345_v52 }
0x1325   :  { %v6202_v54 = vpop.eup %6201 }
0x1326   :  { %v6204_v56 = vpop.eup %6203  ;;  %v2350_v57 = vmul.f32 %v6202_v54, %v2334_v39 }
0x1327   :  { %v2349_v58 = vmul.f32 %v6204_v56, %v2333_v40 }
0x1328   :  { %v2358_v62 = vmul.f32 %v5234_v55, %v2350_v57 }
0x1329   :  { %v2357_v0 = vmul.f32 %v5234_v55, %v2349_v58 }
0x132a   :  { %v6844_v3 = vadd.f32 %v5235_v59, %v2358_v62 }
0x132b   :  { %v6842_v1 = vadd.f32 %v5235_v59, %v2357_v0 }
0x132d   :  { %5724 = vmatprep.mubr.msk.f32.mxu1 %vm221_vm3, %v6842_v1 }
0x132e   :  { %5725 = vmatmul.mubr.msk.f32.vlgmr.msra.gmra.mrb[24].mxu1 %vm221_vm3, %v6844_v3 }
0x132f   :  { %5729 = vmatprep.mubr.msk.f32.mxu1 %vm6300_vm4, %v6299_v15 }
0x1401   :  { %v5726_v5 = vpop.f32.mrb[24].mxu1 }
0x1402   :  { %v6855_v6 = vadd.f32 %v5726_v5, %v5241_v60  ;;  %v2452_v7 = vpop.f32.mrb[25].mxu1 }
0x1403   :  { %v6857_v53 = vadd.f32 %v5241_v60, %v2452_v7 }
0x1404   :  { %2544 = vrot.lane.b32.xlu0 %v6855_v6, %s7402_s9 }
0x1405   :  { %2467 = vrot.lane.b32.xlu1 %v6857_v53, %s7402_s9  ;;  %s5316_s9 = sld [smem:[#allocation2 + $0x1]] }
0x1476   :  { %v2545_v9 = vpop.permute.xlu0 %2544 }
0x1477   :  { %v2468_v8 = vpop.permute.xlu1 %2467 }
0x1478   :  { %5728 = vmatpush3.xpose.msk.msra.mxu1 %vm365_vm5, %v2468_v8 }
0x1479   :  { %5732 = vmatprep.subr.mxu1 %v6299_v15 }
0x147b   :  { %5730 = vmatmul.mubr.msk.f32.vlgmr.msra.gmra.mrb[26].mxu1 %vm365_vm5, %v6857_v53 }
0x147c   :  { %5733 = vmatpush3.xpose.msk.msra.mxu1 %vm365_vm5, %v2545_v9  ;;  %5734 = vmatprep.mubr.msk.f32.mxu1 %vm6300_vm4, %v6299_v15 }
0x147d   :  { %5737 = vmatprep.subr.mxu1 %v6299_v15 }
0x147f   :  { %5735 = vmatmul.mubr.msk.f32.vlgmr.msra.gmra.mrb[28].mxu1 %vm365_vm5, %v6855_v6 }
0x1480   :  { %5739 = vmatprep.mubr.msk.f32.mxu1 %vm6300_vm4, %v6299_v15 }
0x154e   :  { %v2539_v63 = vpop.f32.mrb[26].mxu1 }
0x154f   :  { %v2620_v61 = vmul.f32 0.35355338, %v2539_v63  ;;  %v5731_v11 = vpop.f32.mrb[27].mxu1 }
0x1551   :  { %v2622_v12 = vadd.f32 %v2620_v61, %v6582_v26 }
0x1552   :  { %v2616_v13 = vpop.f32.mrb[28].mxu1 }
0x1553   :  { %v2621_v14 = vmul.f32 0.35355338, %v2616_v13  ;;  %v5736_v17 = vpop.f32.mrb[29].mxu1  ;;  %v2624_v18 = vsel %vm365_vm5, %v2622_v12, -inf }
0x1554   :  { %2625 = vmax.xlane.f32.xlu1 %v2624_v18 }
0x1555   :  { %v2623_v19 = vadd.f32 %v2621_v14, %v6579_v22 }
0x1557   :  { %v2627_v21 = vsel %vm365_vm5, %v2623_v19, -inf }
0x1558   :  { %2628 = vmax.xlane.f32.xlu0 %v2627_v21 }
0x1565   :  { %2646 = vrot.lane.b32.xlu1 %v6857_v53, %s7403_s0 }
0x15e1   :  { %v2626_v16 = vpop.xlane.xlu1 %2625 }
0x15e2   :  { %v2630_v23 = vsub.f32 %v2622_v12, %v2626_v16 }
0x15e4   :  { %v2632_v24 = vmul.f32 1.442695, %v2630_v23 }
0x15e5   :  { %v2647_v25 = vpop.permute.xlu1 %2646  ;;  %v2629_v27 = vpop.xlane.xlu0 %2628 }
0x15e6   :  { %6205 = vpow2.f32 %v2632_v24  ;;  %v2631_v28 = vsub.f32 %v2623_v19, %v2629_v27  ;;  %5738 = vmatpush3.msra.mxu1 %v2647_v25 }
0x15e7   :  { %5742 = vmatprep.subr.mxu1 %v6299_v15 }
0x15e8   :  { %v2634_v29 = vmul.f32 1.442695, %v2631_v28 }
0x15ea   :  { %6207 = vpow2.f32 %v2634_v29 }
0x15f0   :  { %v6206_v30 = vpop.eup %6205 }
0x15f1   :  { %v2636_v31 = vsel %vm365_vm5, %v6206_v30, 0.0 }
0x15f2   :  { %2637 = vadd.xlane.f32.xlu1 %v2636_v31 }
0x15f4   :  { %v6208_v32 = vpop.eup %6207 }
0x15f5   :  { %v2639_v33 = vsel %vm365_vm5, %v6208_v32, 0.0 }
0x15f6   :  { %2640 = vadd.xlane.f32.xlu0 %v2639_v33 }
0x1603   :  { %2800 = vrot.lane.b32.xlu1 %v6857_v53, %s7404_s12 }
0x1607   :  { %2798 = vrot.lane.b32.xlu1 %v6857_v53, %s7405_s3 }
0x160b   :  { %2876 = vrot.lane.b32.xlu1 %v6855_v6, %s7405_s3  ;;  %s5326_s3 = sld [smem:[#allocation2 + $0x80]] }
0x160c   :  { %2722 = vrot.lane.b32.xlu0 %v6855_v6, %s7403_s0  ;;  %s5328_s0 = sld [smem:[#allocation2 + $0x82]] }
0x160f   :  { %3296 = vrot.lane.b32.xlu1 %v6857_v53, %s7406_s6 }
0x1610   :  { %2878 = vrot.lane.b32.xlu0 %v6855_v6, %s7404_s12  ;;  %s5329_s12 = sld [smem:[#allocation2 + $0x83]] }
0x167f   :  { %v2638_v34 = vpop.xlane.xlu1 %2637 }
0x1680   :  { %6209 = vrcp.f32 %v2638_v34 }
0x1683   :  { %v2641_v35 = vpop.xlane.xlu0 %2640  ;;  %v2801_v42 = vpop.permute.xlu1 %2800 }
0x1684   :  { %6211 = vrcp.f32 %v2641_v35 }
0x1687   :  { %v2723_v40 = vpop.permute.xlu0 %2722  ;;  %v2799_v38 = vpop.permute.xlu1 %2798 }
0x168a   :  { %v6210_v36 = vpop.eup %6209 }
0x168b   :  { %v2643_v39 = vmul.f32 %v6210_v36, %v6206_v30  ;;  %v2879_v37 = vpop.permute.xlu0 %2878  ;;  %v2877_v44 = vpop.permute.xlu1 %2876 }
0x168d   :  { %5740 = vmatmul.mubr.msk.f32.vlgmr.msra.gmra.mrb[30].mxu1 %vm365_vm5, %v2643_v39 }
0x168e   :  { %v6212_v41 = vpop.eup %6211  ;;  %5743 = vmatpush3.msra.mxu1 %v2723_v40  ;;  %5744 = vmatprep.mubr.msk.f32.mxu1 %vm6300_vm4, %v6299_v15 }
0x168f   :  { %v2645_v43 = vmul.f32 %v6212_v41, %v6208_v32  ;;  %5747 = vmatprep.subr.mxu1 %v6299_v15  ;;  %v3297_v7 = vpop.permute.xlu1 %3296  ;;  %v5245_v41 = vld [vmem:[%s7399_s1 + $0x28] sm:$0xff] }
0x1691   :  { %5745 = vmatmul.mubr.msk.f32.vlgmr.msra.gmra.mrb[32].mxu1 %vm365_vm5, %v2645_v43 }
0x1692   :  { %5749 = vmatprep.mubr.msk.f32.mxu1 %vm6300_vm4, %v6299_v15 }
0x1695   :  { %5748 = vmatpush3.xpose.msk.msra.mxu1 %vm365_vm5, %v2801_v42  ;;  %v5244_v42 = vld [vmem:[%s7399_s1 + $0x20] sm:$0xff] }
0x1696   :  { %5752 = vmatprep.subr.mxu1 %v6299_v15 }
0x1698   :  { %5750 = vmatmul.mubr.msk.f32.vlgmr.msra.gmra.mrb[34].mxu1 %vm365_vm5, %v2799_v38 }
0x1699   :  { %5753 = vmatpush3.xpose.msk.msra.mxu1 %vm365_vm5, %v2879_v37  ;;  %5754 = vmatprep.mubr.msk.f32.mxu1 %vm6300_vm4, %v6299_v15 }
0x169a   :  { %5762 = vmatprep.subr.mxu1 %v6299_v15 }
0x169c   :  { %5755 = vmatmul.mubr.msk.f32.vlgmr.msra.gmra.mrb[36].mxu1 %vm365_vm5, %v2877_v44 }
0x169d   :  { %5764 = vmatprep.mubr.msk.f32.mxu1 %vm6300_vm4, %v6299_v15 }
0x1760   :  { %v6913_v45 = vpop.f32.mrb[30].mxu1 }
0x1761   :  { %v5741_v2 = vpop.f32.mrb[31].mxu1 }
0x1764   :  { %v6915_v46 = vpop.f32.mrb[32].mxu1 }
0x1765   :  { %v5746_v47 = vpop.f32.mrb[33].mxu1 }
0x176b   :  { %v2872_v48 = vpop.f32.mrb[34].mxu1 }
0x176c   :  { %v5751_v4 = vpop.f32.mrb[35].mxu1  ;;  %v2954_v0 = vmul.f32 0.35355338, %v2872_v48 }
0x176e   :  { %v2956_v60 = vadd.f32 %v2954_v0, %v6582_v26 }
0x176f   :  { %v2950_v49 = vpop.f32.mrb[36].mxu1 }
0x1770   :  { %v2955_v50 = vmul.f32 0.35355338, %v2950_v49  ;;  %v5756_v51 = vpop.f32.mrb[37].mxu1  ;;  %v2958_v5 = vsel %vm365_vm5, %v2956_v60, -inf }
0x1772   :  { %v2957_v52 = vadd.f32 %v2955_v50, %v6579_v22 }
0x1774   :  { %v2961_v54 = vsel %vm365_vm5, %v2957_v52, -inf }
0x1775   :  { %2962 = vmax.xlane.f32.xlu0 %v2961_v54 }
0x178b   :  { %3056 = vrot.lane.b32.xlu0 %v6855_v6, %s7407_s4 }
0x178f   :  { %3294 = vrot.lane.b32.xlu0 %v6857_v53, %s7408_s11 }
0x1793   :  { %3372 = vrot.lane.b32.xlu0 %v6855_v6, %s7408_s11 }
0x1802   :  { %v2963_v55 = vpop.xlane.xlu0 %2962 }
0x1803   :  { %v2965_v56 = vsub.f32 %v2957_v52, %v2963_v55 }
0x1805   :  { %v2968_v57 = vmul.f32 1.442695, %v2965_v56  ;;  %v5246_v56 = vld [vmem:[%s7399_s1 + $0x30] sm:$0xff] }
0x1806   :  { %v3057_v58 = vpop.permute.xlu0 %3056 }
0x1807   :  { %6213 = vpow2.f32 %v2968_v57  ;;  %5763 = vmatpush3.msra.mxu1 %v3057_v58 }
0x1808   :  { %5777 = vmatprep.subr.mxu1 %v6299_v15 }
0x180a   :  { %v3295_v61 = vpop.permute.xlu0 %3294 }
0x180e   :  { %v3373_v12 = vpop.permute.xlu0 %3372 }
0x1811   :  { %v6214_v59 = vpop.eup %6213 }
0x1812   :  { %v2973_v62 = vsel %vm365_vm5, %v6214_v59, 0.0 }
0x1813   :  { %2974 = vadd.xlane.f32.xlu1 %v2973_v62 }
0x1824   :  { %3374 = vrot.lane.b32.xlu1 %v6855_v6, %s7406_s6  ;;  %s7412_s6 = smov 40  }
0x1848   :  { %2959 = vmax.xlane.f32.xlu1 %v2958_v5 }
0x18a0   :  { %v2975_v8 = vpop.xlane.xlu1 %2974 }
0x18a1   :  { %6215 = vrcp.f32 %v2975_v8 }
0x18a4   :  { %v3375_v11 = vpop.permute.xlu1 %3374 }
0x18ab   :  { %v6216_v9 = vpop.eup %6215 }
0x18ac   :  { %v2979_v63 = vmul.f32 %v6216_v9, %v6214_v59 }
0x18ae   :  { %5765 = vmatmul.mubr.msk.f32.vlgmr.msra.gmra.mrb[38].mxu1 %vm365_vm5, %v2979_v63 }
0x18af   :  { %5778 = vmatpush3.xpose.msk.msra.mxu1 %vm365_vm5, %v3297_v7  ;;  %5779 = vmatprep.mubr.msk.f32.mxu1 %vm6300_vm4, %v6299_v15 }
0x18b0   :  { %5782 = vmatprep.subr.mxu1 %v6299_v15 }
0x18b2   :  { %5780 = vmatmul.mubr.msk.f32.vlgmr.msra.gmra.mrb[40].mxu1 %vm365_vm5, %v3295_v61 }
0x18b3   :  { %5783 = vmatpush3.xpose.msk.msra.mxu1 %vm365_vm5, %v3375_v11  ;;  %5784 = vmatprep.mubr.msk.f32.mxu1 %vm6300_vm4, %v6299_v15 }
0x18b4   :  { %5792 = vmatprep.subr.mxu1 %v6299_v15 }
0x18b6   :  { %5785 = vmatmul.mubr.msk.f32.vlgmr.msra.gmra.mrb[42].mxu1 %vm365_vm5, %v3373_v12 }
0x18b7   :  { %5794 = vmatprep.mubr.msk.f32.mxu1 %vm6300_vm4, %v6299_v15 }
0x18d5   :  { %v2960_v13 = vpop.xlane.xlu1 %2959 }
0x18d6   :  { %v2964_v14 = vsub.f32 %v2956_v60, %v2960_v13 }
0x18d8   :  { %v2966_v17 = vmul.f32 1.442695, %v2964_v14 }
0x18da   :  { %6217 = vpow2.f32 %v2966_v17 }
0x18e4   :  { %v6218_v18 = vpop.eup %6217 }
0x18e5   :  { %v2970_v19 = vsel %vm365_vm5, %v6218_v18, 0.0 }
0x18e6   :  { %2971 = vadd.xlane.f32.xlu0 %v2970_v19 }
0x18fc   :  { %2980 = vrot.lane.b32.xlu0 %v6857_v53, %s7407_s4  ;;  %s5319_s4 = sld [smem:[#allocation2 + $0x4]] }
0x1900   :  { %3552 = vrot.lane.b32.xlu0 %v6855_v6, %s7409_s29 }
0x1904   :  { %3713 = vrot.lane.b32.xlu0 %v6857_v53, %s7410_s10 }
0x1908   :  { %3791 = vrot.lane.b32.xlu0 %v6855_v6, %s7410_s10  ;;  %s7196_s10 = sld [smem:[#allocation2 + $0x84]] }
0x190c   :  { %3711 = vrot.lane.b32.xlu0 %v6857_v53, %s7411_s2 }
0x1973   :  { %v2972_v21 = vpop.xlane.xlu0 %2971 }
0x1974   :  { %6219 = vrcp.f32 %v2972_v21 }
0x1977   :  { %v2981_v16 = vpop.permute.xlu0 %2980 }
0x1978   :  { %5758 = vmatpush3.msra.mxu0 %v2981_v16 }
0x1979   :  { %5767 = vmatprep.subr.mxu0 %v5245_v41 }
0x197b   :  { %v3553_v23 = vpop.permute.xlu0 %3552 }
0x197c   :  { %5793 = vmatpush3.msra.mxu1 %v3553_v23 }
0x197d   :  { %5802 = vmatprep.subr.mxu1 %v6299_v15 }
0x197e   :  { %v6220_v24 = vpop.eup %6219 }
0x197f   :  { %v2977_v25 = vmul.f32 %v6220_v24, %v6218_v18  ;;  %v3714_v58 = vpop.permute.xlu0 %3713 }
0x1981   :  { %5760 = vmatmul.mubr.msk.f32.vlgmr.msra.gmra.mrb[18].mxu0 %vm365_vm5, %v2977_v25  ;;  %v3128_v27 = vpop.f32.mrb[38].mxu1 }
0x1982   :  { %v5766_v28 = vpop.f32.mrb[39].mxu1  ;;  %5768 = vmatpush3.msra.mxu0 %v5245_v41 }
0x1983   :  { %5772 = vmatprep.subr.mxu0 %v5244_v42  ;;  %v3792_v62 = vpop.permute.xlu0 %3791 }
0x1985   :  { %v3368_v29 = vpop.f32.mrb[40].mxu1 }
0x1986   :  { %v3450_v30 = vmul.f32 0.35355338, %v3368_v29  ;;  %v5781_v31 = vpop.f32.mrb[41].mxu1 }
0x1987   :  { %v3712_v60 = vpop.permute.xlu0 %3711 }
0x1988   :  { %v3452_v32 = vadd.f32 %v3450_v30, %v6582_v26 }
0x1989   :  { %v3446_v33 = vpop.f32.mrb[42].mxu1 }
0x198a   :  { %v3451_v34 = vmul.f32 0.35355338, %v3446_v33  ;;  %v5786_v35 = vpop.f32.mrb[43].mxu1  ;;  %v3454_v36 = vsel %vm365_vm5, %v3452_v32, -inf }
0x198b   :  { %3455 = vmax.xlane.f32.xlu1 %v3454_v36  ;;  %v5247_v36 = vld [vmem:[%s7399_s1 + $0x38] sm:$0xff] }
0x198c   :  { %v3453_v39 = vadd.f32 %v3451_v34, %v6579_v22 }
0x198e   :  { %v3457_v40 = vsel %vm365_vm5, %v3453_v39, -inf }
0x198f   :  { %3458 = vmax.xlane.f32.xlu1 %v3457_v40 }
0x1a18   :  { %v3456_v43 = vpop.xlane.xlu1 %3455 }
0x1a19   :  { %v3460_v38 = vsub.f32 %v3452_v32, %v3456_v43 }
0x1a1b   :  { %v3462_v37 = vmul.f32 1.442695, %v3460_v38 }
0x1a1c   :  { %v3459_v44 = vpop.xlane.xlu1 %3458 }
0x1a1d   :  { %6221 = vpow2.f32 %v3462_v37  ;;  %v3461_v2 = vsub.f32 %v3453_v39, %v3459_v44  ;;  %v5281_v37 = vld [vmem:[%s7400_s30 + $0x1] ss:$0 sm:$0xff] }
0x1a1f   :  { %v3464_v47 = vmul.f32 1.442695, %v3461_v2 }
0x1a21   :  { %6223 = vpow2.f32 %v3464_v47 }
0x1a27   :  { %v6222_v48 = vpop.eup %6221 }
0x1a28   :  { %v3466_v4 = vsel %vm365_vm5, %v6222_v48, 0.0 }
0x1a29   :  { %3467 = vadd.xlane.f32.xlu1 %v3466_v4 }
0x1a2b   :  { %v6224_v49 = vpop.eup %6223 }
0x1a2c   :  { %v3469_v50 = vsel %vm365_vm5, %v6224_v49, 0.0 }
0x1a2d   :  { %3470 = vadd.xlane.f32.xlu1 %v3469_v50 }
0x1a3e   :  { %3476 = vrot.lane.b32.xlu1 %v6857_v53, %s7409_s29 }
0x1a42   :  { %3789 = vrot.lane.b32.xlu1 %v6855_v6, %s7411_s2  ;;  %s5317_s2 = sld [smem:[#allocation2 + $0x2]] }
0x1a54   :  { %v3052_v51 = vpop.f32.mrb[18].mxu0 }
0x1a55   :  { %v5761_v52 = vpop.f32.mrb[19].mxu0  ;;  %5769 = vmatprep.mubr.msk.f32.mxu0 %vm365_vm5, %v3052_v51 }
0x1a56   :  { %5770 = vmatmul.mubr.msk.f32.vlgmr.msra.gmra.mrb[20].mxu0 %vm365_vm5, %v3128_v27 }
0x1a57   :  { %5774 = vmatprep.mubr.msk.f32.mxu0 %vm365_vm5, %v6913_v45  ;;  %5773 = vmatpush3.msra.mxu0 %v5244_v42 }
0x1a58   :  { %5787 = vmatprep.subr.mxu0 %v6299_v15 }
0x1a5e   :  { %5775 = vmatmul.mubr.msk.f32.vlgmr.msra.gmra.mrb[20].mxu0 %vm365_vm5, %v6915_v46 }
0x1a5f   :  { %5789 = vmatprep.mubr.msk.f32.mxu0 %vm6300_vm4, %v6299_v15 }
0x1ab6   :  { %v3468_v54 = vpop.xlane.xlu1 %3467 }
0x1ab7   :  { %6225 = vrcp.f32 %v3468_v54 }
0x1aba   :  { %v3471_v55 = vpop.xlane.xlu1 %3470 }
0x1abb   :  { %6227 = vrcp.f32 %v3471_v55 }
0x1abe   :  { %v3477_v57 = vpop.permute.xlu1 %3476 }
0x1abf   :  { %5788 = vmatpush3.msra.mxu0 %v3477_v57 }
0x1ac0   :  { %5797 = vmatprep.subr.mxu0 %v5246_v56 }
0x1ac1   :  { %v6226_v45 = vpop.eup %6225 }
0x1ac2   :  { %v3473_v59 = vmul.f32 %v6226_v45, %v6222_v48  ;;  %v3790_v63 = vpop.permute.xlu1 %3789 }
0x1ac4   :  { %5790 = vmatmul.mubr.msk.f32.vlgmr.msra.gmra.mrb[22].mxu0 %vm365_vm5, %v3473_v59 }
0x1ac5   :  { %v6228_v46 = vpop.eup %6227  ;;  %5798 = vmatpush3.msra.mxu0 %v5246_v56 }
0x1ac6   :  { %v3475_v0 = vmul.f32 %v6228_v46, %v6224_v49  ;;  %5807 = vmatprep.subr.mxu0 %v6299_v15 }
0x1ac8   :  { %5795 = vmatmul.mubr.msk.f32.vlgmr.msra.gmra.mrb[44].mxu1 %vm365_vm5, %v3475_v0 }
0x1ac9   :  { %5803 = vmatpush3.xpose.msk.msra.mxu1 %vm365_vm5, %v3714_v58  ;;  %5804 = vmatprep.mubr.msk.f32.mxu1 %vm6300_vm4, %v6299_v15 }
0x1aca   :  { %5812 = vmatprep.subr.mxu1 %v6299_v15 }
0x1acc   :  { %5805 = vmatmul.mubr.msk.f32.vlgmr.msra.gmra.mrb[46].mxu1 %vm365_vm5, %v3712_v60  ;;  %v5288_v60 = vld [vmem:[%s7332_s14 + $0x30] sm:$0xff] }
0x1acd   :  { %5814 = vmatprep.mubr.msk.f32.mxu1 %vm6300_vm4, %v6299_v15 }
0x1b97   :  { %v3548_v5 = vpop.f32.mrb[22].mxu0 }
0x1b98   :  { %v5791_v7 = vpop.f32.mrb[23].mxu0  ;;  %5799 = vmatprep.mubr.msk.f32.mxu0 %vm365_vm5, %v3548_v5  ;;  %v5289_v5 = vld [vmem:[%s7332_s14 + $0x38] sm:$0xff] }
0x1b99   :  { %v6034_v7 = vpack.c.bf16 %v5289_v5, %v5288_v60 }
0x1b9b   :  { %v3624_v8 = vpop.f32.mrb[44].mxu1 }
0x1b9c   :  { %v5796_v9 = vpop.f32.mrb[45].mxu1  ;;  %5800 = vmatmul.mubr.msk.f32.vlgmr.msra.gmra.mrb[20].mxu0 %vm365_vm5, %v3624_v8  ;;  %v5294_v8 = vld [vmem:[%s7334_s16 + $0x80] sm:$0xff] }
0x1b9d   :  { %5808 = vmatpush3.xpose.msk.msra.mxu0 %vm365_vm5, %v3792_v62  ;;  %5809 = vmatprep.mubr.msk.f32.mxu0 %vm6300_vm4, %v6299_v15  ;;  %v5287_v62 = vld [vmem:[%s7332_s14 + $0x28] sm:$0xff] }
0x1b9e   :  { %5817 = vmatprep.subr.mxu0 %v6299_v15  ;;  %v5295_v9 = vld [vmem:[%s7334_s16 + $0x88] sm:$0xff] }
0x1b9f   :  { %v3785_v61 = vpop.f32.mrb[46].mxu1 }
0x1ba0   :  { %v3867_v11 = vmul.f32 0.35355338, %v3785_v61  ;;  %v5806_v12 = vpop.f32.mrb[47].mxu1  ;;  %5810 = vmatmul.mubr.msk.f32.vlgmr.msra.gmra.mrb[24].mxu0 %vm365_vm5, %v3790_v63  ;;  %v6038_v63 = vpack.c.bf16 %v5295_v9, %v5294_v8 }
0x1ba1   :  { %5819 = vmatprep.mubr.msk.f32.mxu0 %vm6300_vm4, %v6299_v15 }
0x1ba2   :  { %v3869_v13 = vadd.f32 %v3867_v11, %v6582_v26 }
0x1ba4   :  { %v3871_v14 = vsel %vm365_vm5, %v3869_v13, -inf }
0x1ba5   :  { %3872 = vmax.xlane.f32.xlu0 %v3871_v14 }
0x1c32   :  { %v3873_v17 = vpop.xlane.xlu0 %3872 }
0x1c33   :  { %v3877_v18 = vsub.f32 %v3869_v13, %v3873_v17 }
0x1c35   :  { %v3879_v19 = vmul.f32 1.442695, %v3877_v18 }
0x1c37   :  { %6229 = vpow2.f32 %v3879_v19  ;;  %v5284_v19 = vld [vmem:[%s7401_s5 + $0x1] ss:$0 sm:$0xff] }
0x1c41   :  { %v6230_v21 = vpop.eup %6229 }
0x1c42   :  { %v3883_v16 = vsel %vm365_vm5, %v6230_v21, 0.0 }
0x1c43   :  { %3884 = vadd.xlane.f32.xlu0 %v3883_v16 }
0x1c73   :  { %v3863_v23 = vpop.f32.mrb[24].mxu0 }
0x1c74   :  { %v3868_v24 = vmul.f32 0.35355338, %v3863_v23  ;;  %v5811_v25 = vpop.f32.mrb[25].mxu0 }
0x1c76   :  { %v3870_v27 = vadd.f32 %v3868_v24, %v6579_v22  ;;  %v5285_v24 = vld [vmem:[%s7331_s13 + $0x1] ss:$0 sm:$0xff] }
0x1c78   :  { %v3874_v28 = vsel %vm365_vm5, %v3870_v27, -inf }
0x1c79   :  { %3875 = vmax.xlane.f32.xlu1 %v3874_v28 }
0x1c8a   :  { %3893 = vrot.lane.b32.xlu1 %v6857_v53, %s7412_s6 }
0x1cd0   :  { %v3885_v26 = vpop.xlane.xlu0 %3884 }
0x1cd1   :  { %6231 = vrcp.f32 %v3885_v26 }
0x1cdb   :  { %v6232_v30 = vpop.eup %6231 }
0x1cdc   :  { %v3890_v33 = vmul.f32 %v6232_v30, %v6230_v21  ;;  %v5297_v30 = vld [vmem:[%s7334_s16 + $0x98] sm:$0xff] }
0x1d06   :  { %v3876_v29 = vpop.xlane.xlu1 %3875 }
0x1d07   :  { %v3878_v31 = vsub.f32 %v3870_v27, %v3876_v29  ;;  %v5296_v29 = vld [vmem:[%s7334_s16 + $0x90] sm:$0xff] }
0x1d09   :  { %v3881_v32 = vmul.f32 1.442695, %v3878_v31  ;;  %v6042_v31 = vpack.c.bf16 %v5297_v30, %v5296_v29 }
0x1d0a   :  { %v3894_v34 = vpop.permute.xlu1 %3893 }
0x1d0b   :  { %6233 = vpow2.f32 %v3881_v32  ;;  %5813 = vmatpush3.msra.mxu1 %v3894_v34  ;;  %v5298_v32 = vld [vmem:[%s7334_s16 + $0xa0] sm:$0xff] }
0x1d0c   :  { %5815 = vmatmul.mubr.msk.f32.vlgmr.msra.gmra.mrb[48].mxu1 %vm365_vm5, %v3890_v33  ;;  %v5299_v33 = vld [vmem:[%s7334_s16 + $0xa8] sm:$0xff] }
0x1d0d   :  { %v6046_v34 = vpack.c.bf16 %v5299_v33, %v5298_v32  ;;  %v4518_v32 = vld [vmem:[%s7338_s20 + $0x28] sm:$0xff]  ;;  %v4519_v33 = vld [vmem:[%s7338_s20 + $0x30] sm:$0xff] }
0x1d15   :  { %v6234_v35 = vpop.eup %6233 }
0x1d16   :  { %v3886_v22 = vsel %vm365_vm5, %v6234_v35, 0.0 }
0x1d17   :  { %3887 = vadd.xlane.f32.xlu0 %v3886_v22  ;;  %v5301_v22 = vld [vmem:[%s7334_s16 + $0xb8] sm:$0xff] }
0x1d2d   :  { %3969 = vrot.lane.b32.xlu0 %v6855_v6, %s7412_s6  ;;  %s5327_s6 = sld [smem:[#allocation2 + $0x81]] }
0x1da4   :  { %v3888_v53 = vpop.xlane.xlu0 %3887 }
0x1da5   :  { %6235 = vrcp.f32 %v3888_v53 }
0x1da8   :  { %v3970_v39 = vpop.permute.xlu0 %3969 }
0x1da9   :  { %5818 = vmatpush3.msra.mxu0 %v3970_v39  ;;  %v5303_v39 = vld [vmem:[%s7334_s16 + $0xc8] sm:$0xff] }
0x1daa   :  { %5822 = vmatprep.subr.mxu0 %v5247_v36 }
0x1daf   :  { %v6236_v40 = vpop.eup %6235 }
0x1db0   :  { %v3892_v41 = vmul.f32 %v6236_v40, %v6234_v35  ;;  %v5300_v35 = vld [vmem:[%s7334_s16 + $0xb0] sm:$0xff] }
0x1db1   :  { %v6050_v53 = vpack.c.bf16 %v5301_v22, %v5300_v35  ;;  %v4520_v22 = vld [vmem:[%s7338_s20 + $0x38] sm:$0xff] }
0x1db2   :  { %5820 = vmatmul.mubr.msk.f32.vlgmr.msra.gmra.mrb[26].mxu0 %vm365_vm5, %v3892_v41  ;;  %v5304_v41 = vld [vmem:[%s7334_s16 + $0xd0] sm:$0xff] }
0x1db3   :  { %5823 = vmatpush3.msra.mxu0 %v5247_v36  ;;  %v5302_v36 = vld [vmem:[%s7334_s16 + $0xc0] sm:$0xff] }
0x1db4   :  { %6039 = vmatprep.subr.bf16.mxu0 %v6038_v63  ;;  %v6054_v40 = vpack.c.bf16 %v5303_v39, %v5302_v36  ;;  %v4460_v36 = vstv %s5317_s2  ;;  %v4462_v39 = vstv %s5318_s7 }
0x1db5   :  { %vm4461_vm6 = vcmp.ge.s32.totalorder %v6569_v10, %v4460_v36  ;;  %vm4463_vm7 = vcmp.lt.s32.totalorder %v6569_v10, %v4462_v39 }
0x1db6   :  { %vm4464_vm8 = vmand %vm4461_vm6, %vm4463_vm7 }
0x1ddf   :  { %v3965_v42 = vpop.f32.mrb[48].mxu1 }
0x1de0   :  { %v5816_v43 = vpop.f32.mrb[49].mxu1  ;;  %5824 = vmatprep.mubr.msk.f32.mxu0 %vm365_vm5, %v3965_v42  ;;  %v5305_v42 = vld [vmem:[%s7334_s16 + $0xd8] sm:$0xff] }
0x1de1   :  { %v6058_v43 = vpack.c.bf16 %v5305_v42, %v5304_v41  ;;  %v4455_v41 = vstv %s5316_s9  ;;  %v5321_v42 = vsel %vm4464_vm8, 1.0, %v6299_v15 }
0x1de2   :  { %vm4456_vm10 = vcmp.lt.s32.totalorder %v6569_v10, %v4455_v41 }
0x1e85   :  { %v4041_v38 = vpop.f32.mrb[26].mxu0 }
0x1e86   :  { %v5821_v6 = vpop.f32.mrb[27].mxu0  ;;  %5825 = vmatmul.mubr.msk.f32.vlgmr.msra.gmra.mrb[20].mxu0 %vm365_vm5, %v4041_v38  ;;  %v5306_v38 = vld [vmem:[%s7334_s16 + $0xe0] sm:$0xff] }
0x1e87   :  { %6041 = vmatpush3.bf16.msra.mxu0 %v6038_v63  ;;  %v5307_v6 = vld [vmem:[%s7334_s16 + $0xe8] sm:$0xff]  ;;  %v5311_v63 = vld [vmem:[%s7335_s17 + $0x1] ss:$0 sm:$0xff] }
0x1e88   :  { %6043 = vmatprep.subr.bf16.mxu0 %v6042_v31 }
0x1e8b   :  { %6045 = vmatpush3.bf16.msra.mxu0 %v6042_v31  ;;  %v4517_v31 = vld [vmem:[%s7338_s20 + $0x20] sm:$0xff] }
0x1e8c   :  { %6047 = vmatprep.subr.bf16.mxu0 %v6046_v34  ;;  %v7138_v35 = vpack.c.bf16 %v4518_v32, %v4517_v31 }
0x1e8f   :  { %6049 = vmatpush3.bf16.msra.mxu0 %v6046_v34  ;;  %v6313_v34 = vmov 0.0|0.0  }
0x1e90   :  { %6051 = vmatprep.subr.bf16.mxu0 %v6050_v53 }
0x1e93   :  { %6053 = vmatpush3.bf16.msra.mxu0 %v6050_v53  ;;  %v7145_v53 = vpack.c.bf16 %v4520_v22, %v4519_v33 }
0x1e94   :  { %6055 = vmatprep.subr.bf16.mxu0 %v6054_v40 }
0x1e97   :  { %6057 = vmatpush3.bf16.msra.mxu0 %v6054_v40  ;;  %v4453_v40 = vstv %s4446_s8 }
0x1e98   :  { %6059 = vmatprep.subr.bf16.mxu0 %v6058_v43  ;;  %vm4454_vm9 = vcmp.ge.s32.totalorder %v6569_v10, %v4453_v40 }
0x1e99   :  { %vm4457_vm11 = vmand %vm4454_vm9, %vm4456_vm10 }
0x1e9b   :  { %6061 = vmatpush3.bf16.msra.mxu0 %v6058_v43  ;;  %v4478_v43 = vrot.slane %v5321_v42, 4 }
0x1f59   :  { %v5826_v44 = vpop.f32.mrb[20].mxu0 }
0x1f5a   :  { %v4137_v2 = vadd.f32 %v5826_v44, %v5281_v37  ;;  %v4117_v47 = vpop.f32.mrb[21].mxu0  ;;  %v5308_v44 = vld [vmem:[%s7334_s16 + $0xf0] sm:$0xff] }
0x1f5b   :  { %v4136_v48 = vadd.f32 %v5281_v37, %v4117_v47  ;;  %v6062_v37 = vpack.c.bf16 %v5307_v6, %v5306_v38 }
0x1f5c   :  { %v4139_v4 = vadd.f32 %v4137_v2, %v6844_v3  ;;  %v5309_v2 = vld [vmem:[%s7334_s16 + $0xf8] sm:$0xff] }
0x1f5d   :  { %v4138_v49 = vadd.f32 %v4136_v48, %v6842_v1  ;;  %v5286_v1 = vld [vmem:[%s7332_s14 + $0x20] sm:$0xff]  ;;  %6063 = vmatprep.subr.bf16.mxu0 %v6062_v37  ;;  %v6066_v47 = vpack.c.bf16 %v5309_v2, %v5308_v44  ;;  %v5320_v2 = vsel %vm4457_vm11, 1.0, %v6299_v15 }
0x1f5e   :  { %v4147_v50 = vsel %vm221_vm3, %v4139_v4, 0.0  ;;  %v6030_v0 = vpack.c.bf16 %v5287_v62, %v5286_v1  ;;  %6065 = vmatpush3.bf16.msra.mxu0 %v6062_v37  ;;  %v5291_v48 = vld [vmem:[%s7333_s15 + $0x1] ss:$0 sm:$0xff]  ;;  %v4479_v37 = vadd.f32 %v5321_v42, %v4478_v43 }
0x1f5f   :  { %4148 = vadd.xlane.f32.xlu0 %v4147_v50  ;;  %v4144_v51 = vsel %vm221_vm3, %v4138_v49, 0.0  ;;  %6067 = vmatprep.subr.bf16.mxu0 %v6066_v47 }
0x1f60   :  { %4145 = vadd.xlane.f32.xlu1 %v4144_v51  ;;  %6031 = vmatprep.subr.bf16.mxu1 %v6030_v0 }
0x1f61   :  { %6033 = vmatpush3.bf16.msra.mxu1 %v6030_v0 }
0x1f62   :  { %6035 = vmatprep.subr.bf16.mxu1 %v6034_v7  ;;  %6069 = vmatpush3.bf16.msra.mxu0 %v6066_v47 }
0x1f63   :  { %6106 = vmatprep.subr.bf16.mxu0 %v6313_v34 }
0x1f65   :  { %6037 = vmatpush3.bf16.msra.mxu1 %v6034_v7 }
0x1f66   :  { %6070 = vmatprep.subr.bf16.mxu1 %v6313_v34 }
0x1fec   :  { %v4149_v52 = vpop.xlane.xlu0 %4148 }
0x1fed   :  { %v4151_v54 = vmul.f32 0.03125, %v4149_v52  ;;  %v4146_v55 = vpop.xlane.xlu1 %4145 }
0x1fee   :  { %v4150_v56 = vmul.f32 0.03125, %v4146_v55 }
0x1fef   :  { %v4153_v57 = vsub.f32 %v4139_v4, %v4151_v54 }
0x1ff0   :  { %v4152_v58 = vsub.f32 %v4138_v49, %v4150_v56 }
0x1ff1   :  { %v4155_v45 = vmul.f32 %v4153_v57, %v4153_v57 }
0x1ff2   :  { %v4154_v59 = vmul.f32 %v4152_v58, %v4152_v58 }
0x1ff3   :  { %v4159_v46 = vsel %vm221_vm3, %v4155_v45, 0.0 }
0x1ff4   :  { %4160 = vadd.xlane.f32.xlu0 %v4159_v46  ;;  %v4156_v3 = vsel %vm221_vm3, %v4154_v59, 0.0 }
0x1ff5   :  { %4157 = vadd.xlane.f32.xlu1 %v4156_v3 }
0x2081   :  { %v4161_v61 = vpop.xlane.xlu0 %4160 }
0x2082   :  { %v4163_v11 = vmul.f32 0.03125, %v4161_v61  ;;  %v4158_v12 = vpop.xlane.xlu1 %4157 }
0x2083   :  { %v4162_v13 = vmul.f32 0.03125, %v4158_v12 }
0x2084   :  { %v4165_v14 = vadd.f32 1e-12, %v4163_v11 }
0x2085   :  { %v4164_v17 = vadd.f32 1e-12, %v4162_v13 }
0x2086   :  { %6237 = vrsqrt.f32 %v4165_v14 }
0x2087   :  { %6239 = vrsqrt.f32 %v4164_v17 }
0x2090   :  { %v6238_v18 = vpop.eup %6237 }
0x2091   :  { %v6240_v21 = vpop.eup %6239  ;;  %v4169_v16 = vmul.f32 %v6238_v18, %v4153_v57 }
0x2092   :  { %v4168_v23 = vmul.f32 %v6240_v21, %v4152_v58 }
0x2093   :  { %v4177_v25 = vmul.f32 %v5284_v19, %v4169_v16 }
0x2094   :  { %v4176_v27 = vmul.f32 %v5284_v19, %v4168_v23 }
0x2095   :  { %v7056_v26 = vadd.f32 %v5285_v24, %v4177_v25 }
0x2096   :  { %v7054_v28 = vadd.f32 %v5285_v24, %v4176_v27 }
0x2098   :  { %5835 = vmatprep.mubr.msk.f32.mxu1 %vm221_vm3, %v7054_v28 }
0x2099   :  { %5836 = vmatmul.mubr.msk.f32.vlgmr.msra.gmra.mrb[50].mxu1 %vm221_vm3, %v7056_v26 }
0x209a   :  { %5881 = vmatprep.mubr.msk.f32.mxu1 %vm6300_vm4, %v6299_v15  ;;  %6072 = vmatpush3.bf16.msra.mxu1 %v7138_v35 }
0x209b   :  { %6073 = vmatprep.subr.bf16.mxu1 %v6313_v34 }
0x209e   :  { %6075 = vmatpush3.bf16.msra.mxu1 %v7145_v53 }
0x209f   :  { %6076 = vmatprep.subr.bf16.mxu1 %v6313_v34 }
0x216c   :  { %v5837_v4 = vpop.f32.mrb[50].mxu1 }
0x216d   :  { %v4277_v49 = vadd.f32 %v5837_v4, %v5291_v48  ;;  %v4271_v50 = vpop.f32.mrb[51].mxu1 }
0x216e   :  { %v4272_v51 = vadd.f32 %v5291_v48, %v4271_v50  ;;  %v4480_v50 = vrot.slane %v4479_v37, 2 }
0x216f   :  { %v4283_v52 = vmul.f32 0.044715, %v4277_v49  ;;  %v4281_v7 = vmul.f32 0.5, %v4277_v49 }
0x2170   :  { %v4282_v54 = vmul.f32 0.044715, %v4272_v51  ;;  %v4280_v60 = vmul.f32 0.5, %v4272_v51 }
0x2171   :  { %v4285_v55 = vmul.f32 %v4283_v52, %v4277_v49  ;;  %v4759_v52 = vstv %s5329_s12 }
0x2172   :  { %v4284_v56 = vmul.f32 %v4282_v54, %v4272_v51  ;;  %vm4760_vm13 = vcmp.lt.s32.totalorder %v6569_v10, %v4759_v52 }
0x2173   :  { %v4287_v57 = vmul.f32 %v4285_v55, %v4277_v49  ;;  %v4481_v55 = vadd.f32 %v4480_v50, %v4479_v37 }
0x2174   :  { %v4286_v58 = vmul.f32 %v4284_v56, %v4272_v51 }
0x2175   :  { %v4289_v45 = vadd.f32 %v4287_v57, %v4277_v49  ;;  %v4471_v49 = vrot.slane %v5320_v2, 4  ;;  %v4482_v57 = vrot.slane %v4481_v55, 1 }
0x2176   :  { %v4288_v59 = vadd.f32 %v4286_v58, %v4272_v51  ;;  %v4757_v51 = vstv %s5328_s0 }
0x2177   :  { %v4291_v46 = vmul.f32 0.7978846, %v4289_v45  ;;  %v4472_v54 = vadd.f32 %v5320_v2, %v4471_v49  ;;  %vm4758_vm12 = vcmp.ge.s32.totalorder %v6569_v10, %v4757_v51 }
0x2178   :  { %v4290_v3 = vmul.f32 0.7978846, %v4288_v59  ;;  %vm4761_vm14 = vmand %vm4758_vm12, %vm4760_vm13  ;;  %v5314_v59 = vld [vmem:[%s7336_s18 + $0x1] ss:$0 sm:$0xff] }
0x2179   :  { %6241 = vtanh.f32 %v4291_v46  ;;  %v4473_v56 = vrot.slane %v4472_v54, 2  ;;  %v4750_v46 = vstv %s5326_s3 }
0x217a   :  { %6243 = vtanh.f32 %v4290_v3  ;;  %v4752_v3 = vstv %s5327_s6  ;;  %vm7168_vm15 = vcmp.ge.s32.totalorder %v6569_v10, %v4750_v46 }
0x217b   :  { %vm7173_vm1 = vcmp.lt.s32.totalorder %v6569_v10, %v4752_v3 }
0x217c   :  { %vm4754_vm5 = vmand %vm7168_vm15, %vm7173_vm1 }
0x2183   :  { %v6242_v1 = vpop.eup %6241 }
0x2184   :  { %v6244_v62 = vpop.eup %6243  ;;  %v4295_v0 = vadd.f32 1.0, %v6242_v1  ;;  %v5332_v1 = vsel %vm4761_vm14, 1.0, %v6299_v15 }
0x2185   :  { %v4294_v5 = vadd.f32 1.0, %v6244_v62 }
0x2186   :  { %v4297_v9 = vmul.f32 %v4295_v0, %v4281_v7  ;;  %v4483_v0 = vadd.f32 %v4482_v57, %v4481_v55  ;;  %v4467_v7 = vstv %s5319_s4  ;;  %v4516_v57 = vld [vmem:[%s7338_s20 + $0x18] sm:$0xff]  ;;  %s6314_s4 = smov [#allocation5]  }
0x2187   :  { %v4296_v8 = vmul.f32 %v4294_v5, %v4280_v60  ;;  %v4474_v60 = vadd.f32 %v4473_v56, %v4472_v54  ;;  %v5315_v5 = vld [vmem:[%s7337_s19 + $0x1] ss:$0 sm:$0xff]  ;;  %vm4468_vm2 = vcmp.eq.s32.totalorder %v6569_v10, %v4467_v7  ;;  %v4515_v56 = vld [vmem:[%s7338_s20 + $0x10] sm:$0xff]  ;;  %s5175_s11 = sshll.u32 %s6314_s4, 4  ;;  %s5176_s11 = int_to_ptr.vmem [resolvable:$true] %s5175_s11 }
0x2188   :  { %v7210_v3 = vpack.c.bf16 %v4516_v57, %v4515_v56  ;;  %v5087_v56 = vld [vmem:[%s7344_s26 + $0x38] sm:$0xff]  ;;  %p6276_p6 = scmp.lt.s32.totalorder %s5176_s11, %s5176_s11 }
0x2189   :  { %5870 = vmatprep.mubr.f32.mxu0 %v4296_v8 }
0x218a   :  { %5871 = vmatmul.mubr.f32.vlgmr.msra.gmra.mrb[28].mxu0 %v4297_v9 }
0x218b   :  { %5955 = vmatprep.mubr.msk.f32.mxu0 %vm6300_vm4, %v6299_v15 }
0x225d   :  { %v5872_v61 = vpop.f32.mrb[28].mxu0 }
0x225e   :  { %v4395_v11 = vadd.f32 %v5872_v61, %v5311_v63  ;;  %v4389_v12 = vpop.f32.mrb[29].mxu0 }
0x225f   :  { %v4390_v13 = vadd.f32 %v5311_v63, %v4389_v12 }
0x2260   :  { %v4399_v14 = vadd.f32 %v4395_v11, %v7056_v26  ;;  %v4775_v11 = vrot.slane %v5332_v1, 4 }
0x2261   :  { %v4398_v17 = vadd.f32 %v4390_v13, %v7054_v28  ;;  %v4484_v13 = vmax.f32 %v4483_v0, 1.0 }
0x2262   :  { %v4407_v18 = vsel %vm221_vm3, %v4399_v14, 0.0 }
0x2263   :  { %4408 = vadd.xlane.f32.xlu0 %v4407_v18  ;;  %v4404_v19 = vsel %vm221_vm3, %v4398_v17, 0.0 }
0x2264   :  { %4405 = vadd.xlane.f32.xlu1 %v4404_v19 }
0x22f0   :  { %v4409_v21 = vpop.xlane.xlu0 %4408 }
0x22f1   :  { %v4411_v16 = vmul.f32 0.03125, %v4409_v21  ;;  %v4406_v23 = vpop.xlane.xlu1 %4405  ;;  %v4776_v21 = vadd.f32 %v5332_v1, %v4775_v11 }
0x22f2   :  { %v4410_v24 = vmul.f32 0.03125, %v4406_v23 }
0x22f3   :  { %v7118_v25 = vsub.f32 %v4399_v14, %v4411_v16  ;;  %v4475_v14 = vrot.slane %v4474_v60, 1  ;;  %v5322_v16 = vsel %vm4468_vm2, 1.0, %v6299_v15  ;;  %v4777_v22 = vrot.slane %v4776_v21, 2 }
0x22f4   :  { %v7120_v27 = vsub.f32 %v4398_v17, %v4410_v24 }
0x22f5   :  { %v4415_v29 = vmul.f32 %v7118_v25, %v7118_v25  ;;  %v4476_v24 = vadd.f32 %v4475_v14, %v4474_v60  ;;  %v4667_v60 = vld [vmem:[%s7338_s20 + $0x40] sm:$0xff] }
0x22f6   :  { %v4414_v28 = vmul.f32 %v7120_v27, %v7120_v27 }
0x22f7   :  { %v4419_v26 = vsel %vm221_vm3, %v4415_v29, 0.0  ;;  %v4477_v36 = vmax.f32 %v4476_v24, 1.0 }
0x22f8   :  { %4420 = vadd.xlane.f32.xlu0 %v4419_v26  ;;  %v4416_v30 = vsel %vm221_vm3, %v4414_v28, 0.0 }
0x22f9   :  { %4417 = vadd.xlane.f32.xlu1 %v4416_v30 }
0x2385   :  { %v4421_v38 = vpop.xlane.xlu0 %4420 }
0x2386   :  { %v4423_v6 = vmul.f32 0.03125, %v4421_v38  ;;  %v4418_v44 = vpop.xlane.xlu1 %4417 }
0x2387   :  { %v4422_v47 = vmul.f32 0.03125, %v4418_v44  ;;  %v4513_v44 = vld [vmem:[%s7338_s20] sm:$0xff] }
0x2388   :  { %v4425_v48 = vadd.f32 1e-12, %v4423_v6  ;;  %v4778_v6 = vadd.f32 %v4777_v22, %v4776_v21 }
0x2389   :  { %v4424_v4 = vadd.f32 1e-12, %v4422_v47 }
0x238a   :  { %6245 = vrsqrt.f32 %v4425_v48  ;;  %v4779_v54 = vrot.slane %v4778_v6, 1 }
0x238b   :  { %6247 = vrsqrt.f32 %v4424_v4 }
0x238c   :  { %6249 = vrcp.f32 %v4484_v13 }
0x238d   :  { %6251 = vrcp.f32 %v4477_v36 }
0x2394   :  { %v6246_v58 = vpop.eup %6245 }
0x2395   :  { %v6248_v45 = vpop.eup %6247  ;;  %v4429_v8 = vmul.f32 %v6246_v58, %v7118_v25 }
0x2396   :  { %v4428_v62 = vmul.f32 %v6248_v45, %v7120_v27  ;;  %v5331_v27 = vsel %vm4754_vm5, 1.0, %v6299_v15  ;;  %v6250_v4 = vpop.eup %6249 }
0x2397   :  { %v4437_v17 = vmul.f32 %v5314_v59, %v4429_v8  ;;  %v4768_v33 = vrot.slane %v5331_v27, 4  ;;  %v6252_v63 = vpop.eup %6251 }
0x2398   :  { %v4436_v9 = vmul.f32 %v5314_v59, %v4428_v62 }
0x2399   :  { %v7186_v26 = vadd.f32 %v5315_v5, %v4437_v17  ;;  %v4769_v38 = vadd.f32 %v5331_v27, %v4768_v33  ;;  %v4669_v17 = vld [vmem:[%s7338_s20 + $0x50] sm:$0xff] }
0x239a   :  { %v4444_v12 = vadd.f32 %v5315_v5, %v4436_v9  ;;  %v4668_v5 = vld [vmem:[%s7338_s20 + $0x48] sm:$0xff]  ;;  %v4764_v9 = vstv %s7196_s10 }
0x239b   :  { %v4792_v41 = vmul.f32 %v5332_v1, %v7186_v26  ;;  %v4770_v51 = vrot.slane %v4769_v38, 2  ;;  %v4782_v46 = vmul.f32 %v5331_v27, %v7186_v26  ;;  %v4780_v1 = vadd.f32 %v4779_v54, %v4778_v6 }
0x239c   :  { %v4485_v18 = vmul.f32 %v5320_v2, %v4444_v12  ;;  %v4495_v19 = vmul.f32 %v5321_v42, %v4444_v12  ;;  %v4505_v30 = vmul.f32 %v5322_v16, %v4444_v12  ;;  %v4514_v2 = vld [vmem:[%s7338_s20 + $0x8] sm:$0xff]  ;;  %v6083_v11 = vpack.c.bf16 %v4668_v5, %v4667_v60 }
0x239d   :  { %v4793_v49 = vsel %vm221_vm3, %v4792_v41, 0.0  ;;  %v7199_v52 = vpack.c.bf16 %v4514_v2, %v4513_v44  ;;  %v4771_v62 = vadd.f32 %v4770_v51, %v4769_v38  ;;  %v4783_v61 = vsel %vm221_vm3, %v4782_v46, 0.0  ;;  %v5084_v51 = vld [vmem:[%s7344_s26 + $0x20] sm:$0xff] }
0x239e   :  { %v4496_v23 = vsel %vm221_vm3, %v4495_v19, 0.0  ;;  %v4486_v25 = vsel %vm221_vm3, %v4485_v18, 0.0  ;;  %v4506_v42 = vsel %vm221_vm3, %v4505_v30, 0.0  ;;  %v4794_v59 = vrot.slane %v4793_v49, 4  ;;  %v4670_v18 = vld [vmem:[%s7338_s20 + $0x58] sm:$0xff] }
0x239f   :  { %v4497_v29 = vrot.slane %v4496_v23, 4  ;;  %v4487_v28 = vrot.slane %v4486_v25, 4  ;;  %v4507_v48 = vrot.slane %v4506_v42, 4  ;;  %v4781_v12 = vmax.f32 %v4780_v1, 1.0 }
0x23a0   :  { %v4795_v8 = vadd.f32 %v4794_v59, %v4793_v49  ;;  %v4772_v13 = vrot.slane %v4771_v62, 1  ;;  %vm4765_vm6 = vcmp.eq.s32.totalorder %v6569_v10, %v4764_v9  ;;  %v4784_v16 = vrot.slane %v4783_v61, 4  ;;  %v5083_v49 = vld [vmem:[%s7344_s26 + $0x18] sm:$0xff]  ;;  %v5051_v59 = vld [vmem:[%s7343_s25] sm:$0x1] }
0x23a1   :  { %v4498_v31 = vadd.f32 %v4497_v29, %v4496_v23  ;;  %v4488_v32 = vadd.f32 %v4487_v28, %v4486_v25  ;;  %v4508_v45 = vadd.f32 %v4507_v48, %v4506_v42  ;;  %v5333_v23 = vsel %vm4765_vm6, 1.0, %v6299_v15  ;;  %v5081_v48 = vld [vmem:[%s7344_s26 + $0x8] sm:$0xff] }
0x23a2   :  { %v4796_v21 = vrot.slane %v4795_v8, 2  ;;  %v6086_v10 = vpack.c.bf16 %v4670_v18, %v4669_v17  ;;  %6253 = vrcp.f32 %v4781_v12  ;;  %v4773_v24 = vadd.f32 %v4772_v13, %v4771_v62 }
0x23a3   :  { %v4499_v39 = vrot.slane %v4498_v31, 2  ;;  %v4489_v40 = vrot.slane %v4488_v32, 2  ;;  %v4509_v7 = vrot.slane %v4508_v45, 2  ;;  %v4785_v29 = vadd.f32 %v4784_v16, %v4783_v61 }
0x23a4   :  { %v4797_v27 = vadd.f32 %v4796_v21, %v4795_v8  ;;  %v4802_v28 = vmul.f32 %v5333_v23, %v7186_v26  ;;  %v4774_v30 = vmax.f32 %v4773_v24, 1.0  ;;  %v5052_v46 = vadd.f32 1e-05, %v5051_v59 }
0x23a5   :  { %v4500_v43 = vadd.f32 %v4499_v39, %v4498_v31  ;;  %v4490_v47 = vadd.f32 %v4489_v40, %v4488_v32  ;;  %v4510_v19 = vadd.f32 %v4509_v7, %v4508_v45  ;;  %v4786_v33 = vrot.slane %v4785_v29, 2 }
0x23a6   :  { %v4798_v32 = vrot.slane %v4797_v27, 1  ;;  %v4803_v22 = vsel %vm221_vm3, %v4802_v28, 0.0  ;;  %6255 = vrcp.f32 %v4774_v30 }
0x23a7   :  { %v4501_v37 = vrot.slane %v4500_v43, 1  ;;  %v4491_v58 = vrot.slane %v4490_v47, 1  ;;  %v4511_v25 = vrot.slane %v4510_v19, 1  ;;  %v4787_v36 = vadd.f32 %v4786_v33, %v4785_v29 }
0x23a8   :  { %v4799_v26 = vadd.f32 %v4798_v32, %v4797_v27  ;;  %v4804_v39 = vrot.slane %v4803_v22, 4  ;;  %6257 = vrsqrt.f32 %v5052_v46 }
0x23a9   :  { %v4502_v50 = vadd.f32 %v4501_v37, %v4500_v43  ;;  %v4492_v0 = vadd.f32 %v4491_v58, %v4490_v47  ;;  %v4512_v31 = vadd.f32 %v4511_v25, %v4510_v19  ;;  %v4788_v42 = vrot.slane %v4787_v36, 1  ;;  %v5080_v47 = vld [vmem:[%s7344_s26] sm:$0xff] }
0x23aa   :  { %v4805_v43 = vadd.f32 %v4804_v39, %v4803_v22 }
0x23ab   :  { %v4504_v55 = vmul.f32 %v6250_v4, %v4502_v50  ;;  %v4494_v14 = vmul.f32 %v6252_v63, %v4492_v0  ;;  %v6107_v4 = vpack.c.bf16 %v5081_v48, %v5080_v47  ;;  %v5337_v0 = vld [vmem:[%s7339_s21] ss:$0 sm:$0xff] }
0x23ac   :  { %v6254_v40 = vpop.eup %6253  ;;  %v4806_v38 = vrot.slane %v4805_v43, 2  ;;  %v5339_v63 = vld [vmem:[%s7340_s22] ss:$0 sm:$0xff]  ;;  %s6271_s22 = scalar_lea.vmem %s5176_s11, 32 }
0x23ad   :  { %5882 = vmatmul.mubr.msk.f32.vlgmr.msra.gmra.mrb[52].mxu1 %vm221_vm3, %v4504_v55  ;;  %v4801_v41 = vmul.f32 %v6254_v40, %v4799_v26  ;;  %6108 = vmatpush3.bf16.msra.mxu0 %v6107_v4  ;;  %v5086_v55 = vld [vmem:[%s7344_s26 + $0x30] sm:$0xff]  ;;  %p6272_p5 = scmp.ne.s32.totalorder %s5176_s11, %s6271_s22  ;;  %p6277_p7 = scmp.lt.s32.totalorder %s6271_s22, %s6271_s22 }
0x23ae   :  { %6078 = vmatpush3.bf16.msra.mxu1 %v7199_v52  ;;  %5892 = vmatprep.mubr.msk.f32.mxu1 %vm6300_vm4, %v6299_v15  ;;  %v4807_v37 = vadd.f32 %v4806_v38, %v4805_v43  ;;  %v6116_v57 = vpack.c.bf16 %v5087_v56, %v5086_v55 }
0x23af   :  { %6079 = vmatprep.subr.bf16.mxu1 %v6313_v34  ;;  %6109 = vmatprep.subr.bf16.mxu0 %v6313_v34  ;;  %p6278_p8 = por %p6277_p7, %p6276_p6 }
0x23b0   :  { %v6256_v6 = vpop.eup %6255  ;;  %v4808_v44 = vrot.slane %v4807_v37, 1 }
0x23b1   :  { %p6279_p9 = pnand %p6278_p8, %p6272_p5 }
0x23b2   :  { %6081 = vmatpush3.bf16.msra.mxu1 %v7210_v3  ;;  %v4809_v2 = vadd.f32 %v4808_v44, %v4807_v37  ;;  %v6258_v1 = vpop.eup %6257 }
0x23b3   :  { %6082 = vmatprep.subr.bf16.mxu1 %v6313_v34  ;;  %v5058_v8 = vrot.slane %v6258_v1, %v6576_v20  ;;  %v5341_v20 = vld [vmem:[%s7345_s27] ss:$0 sm:$0xff] }
0x23b5   :  { %5893 = vmatmul.mubr.msk.f32.vlgmr.msra.gmra.mrb[52].mxu1 %vm221_vm3, %v4494_v14 }
0x23b6   :  { %6084 = vmatpush3.bf16.msra.mxu1 %v6083_v11  ;;  %5903 = vmatprep.mubr.msk.f32.mxu1 %vm6300_vm4, %v6299_v15 }
0x23b7   :  { %6085 = vmatprep.subr.bf16.mxu1 %v6313_v34 }
0x23ba   :  { %6087 = vmatpush3.bf16.msra.mxu1 %v6086_v10 }
0x23bb   :  { %6088 = vmatprep.subr.bf16.mxu1 %v6313_v34 }
0x23bd   :  { %5904 = vmatmul.mubr.msk.f32.vlgmr.msra.gmra.mrb[52].mxu1 %vm221_vm3, %v4512_v31 }
0x23be   :  { %6090 = vmatpush3.bf16.msra.mxu1 %v7138_v35  ;;  %5914 = vmatprep.mubr.msk.f32.mxu1 %vm6300_vm4, %v6299_v15  ;;  %v4789_v35 = vadd.f32 %v4788_v42, %v4787_v36 }
0x23bf   :  { %6091 = vmatprep.subr.bf16.mxu1 %v6313_v34 }
0x23c2   :  { %6093 = vmatpush3.bf16.msra.mxu1 %v7145_v53  ;;  %v4791_v53 = vmul.f32 %v6256_v6, %v4789_v35 }
0x23c3   :  { %6094 = vmatprep.subr.bf16.mxu1 %v6313_v34 }
0x23c5   :  { %5915 = vmatmul.mubr.msk.f32.vlgmr.msra.gmra.mrb[54].mxu1 %vm221_vm3, %v4801_v41 }
0x23c6   :  { %6096 = vmatpush3.bf16.msra.mxu1 %v7199_v52  ;;  %5925 = vmatprep.mubr.msk.f32.mxu1 %vm6300_vm4, %v6299_v15  ;;  %v5085_v52 = vld [vmem:[%s7344_s26 + $0x28] sm:$0xff] }
0x23c7   :  { %6097 = vmatprep.subr.bf16.mxu1 %v6313_v34  ;;  %v6113_v54 = vpack.c.bf16 %v5085_v52, %v5084_v51 }
0x23ca   :  { %6099 = vmatpush3.bf16.msra.mxu1 %v7210_v3 }
0x23cb   :  { %6100 = vmatprep.subr.bf16.mxu1 %v6313_v34 }
0x23cd   :  { %5926 = vmatmul.mubr.msk.f32.vlgmr.msra.gmra.mrb[54].mxu1 %vm221_vm3, %v4791_v53 }
0x23ce   :  { %6102 = vmatpush3.bf16.msra.mxu1 %v6083_v11  ;;  %5936 = vmatprep.mubr.msk.f32.mxu1 %vm6300_vm4, %v6299_v15  ;;  %v5082_v15 = vld [vmem:[%s7344_s26 + $0x10] sm:$0xff]  ;;  %v5340_v11 = vld [vmem:[%s7341_s23] ss:$0 sm:$0xff] }
0x23cf   :  { %6103 = vmatprep.subr.bf16.mxu1 %v6313_v34  ;;  %v6110_v50 = vpack.c.bf16 %v5083_v49, %v5082_v15 }
0x23d1   :  { %6111 = vmatpush3.bf16.msra.mxu0 %v6110_v50 }
0x23d2   :  { %6105 = vmatpush3.bf16.msra.mxu1 %v6086_v10  ;;  %6112 = vmatprep.subr.bf16.mxu0 %v6313_v34 }
0x23d5   :  { %5937 = vmatmul.mubr.msk.f32.vlgmr.msra.gmra.mrb[54].mxu1 %vm221_vm3, %v4809_v2  ;;  %6114 = vmatpush3.bf16.msra.mxu0 %v6113_v54  ;;  %vm5033_vm3 = vcmask 1040384  }
0x23d6   :  { %6115 = vmatprep.subr.bf16.mxu0 %v6313_v34  ;;  %v5338_v34 = vld [vmem:[%s7342_s24] ss:$0 sm:$0xff] }
0x23d9   :  { %6117 = vmatpush3.bf16.msra.mxu0 %v6116_v57 }
0x2490   :  { %v4740_v58 = vpop.f32.mrb[52].mxu1 }
0x2491   :  { %v5905_v45 = vpop.f32.mrb[53].mxu1 }
0x24a8   :  { %v5025_v3 = vpop.f32.mrb[54].mxu1 }
0x24a9   :  { %v5031_v62 = vrot.slane %v5025_v3, 7  ;;  %v5938_v60 = vpop.f32.mrb[55].mxu1 }
0x24ab   :  { %v5034_v5 = vsel %vm5033_vm3, %v4740_v58, %v5031_v62 }
0x24ac   :  { %v5042_v7 = vadd.f32 %v5337_v0, %v5034_v5 }
0x24ae   :  { %v5050_v9 = vsub.f32 %v5042_v7, %v5338_v34 }
0x24b0   :  { %v5060_v61 = vmul.f32 %v5058_v8, %v5050_v9 }
0x24b2   :  { %v5068_v12 = vmul.f32 %v5339_v63, %v5060_v61 }
0x24b4   :  { %v5076_v13 = vadd.f32 %v5340_v11, %v5068_v12 }
0x24b6   :  { %vm5077_vm4 = vcmp.ge.f32.partialorder %v5076_v13, 0.0  ;;  %v5078_v14 = vmul.f32 0.01, %v5076_v13 }
0x24b8   :  { %v5079_v17 = vsel %vm5077_vm4, %v5076_v13, %v5078_v14 }
0x24b9   :  { %5956 = vmatmul.mubr.msk.f32.vlgmr.msra.gmra.mrb[30].mxu0 %vm128_vm0, %v5079_v17 }
0x258c   :  { %v5164_v18 = vpop.f32.mrb[30].mxu0 }
0x258d   :  { %v5165_v19 = vadd.f32 %v5341_v20, %v5164_v18  ;;  %v5957_v21 = vpop.f32.mrb[31].mxu0 }
0x258f   :  { %5168 = vst [vmem:[#allocation5] sm:$0x3] %v5165_v19 }
0x2590   :  { %6282 = shalt.err (!%p6279_p9)
}
0x2591   :  { %s6283_s16 = scalar_lea.hbm %s7346_s28, 32 }
0x2592   :  { %p6284_p10 = scmp.ne.s32.totalorder %s7346_s28, %s6283_s16  ;;  %p6287_p11 = scmp.lt.u32.totalorder %s6283_s16, %s7346_s28 }
0x2594   :  { %p6289_p12 = pnand %p6287_p11, %p6284_p10 }
0x2596   :  { %6292 = shalt.err (!%p6289_p12)
}
0x2597   :  { %5178 = dma.vmem_to_hbm [thread:$0]  %s5176_s11, 32, %s7346_s28, [#allocation3]  }
0x2598   :  { %6295 = dma.done.wait [#allocation3], 32  }
0x2599   :  { %6296 = vsyncadd [#allocation3], 4294967264 }
0x259a   :  { %5182 = vsyncpa [#allocation3], 1 }
0x259b   :  { %5183 = vsyncpa [#allocation4], 1 }

</bundles_post_ra>
